<compile_context>
chip_gen: v6e
topology: v6e:2x2x1
jax: 0.10.0
libtpu: 0.0.40
codegen_flags: <defaults>
</compile_context>

<pallas_src>
import functools

import jax
import jax.numpy as jnp
import numpy as np
from jax.experimental import pallas as pl
from jax.experimental.pallas import tpu as pltpu


# ---------------------------------------------------------------------------
# Kernels
# ---------------------------------------------------------------------------
def _conv_bn_relu_pool_kernel(x_ref, w_ref, scale_ref, shift_ref,
                              se_ref, so_ref, sr_ref, o_ref, *,
                              rows, offs, hp, row_span):
    """3x3x3 conv (pad=1) + folded BN + ReLU + fused 2x2x2 max-pool, one sample.

    Layout: rows index (depth, padded-height) pairs; lanes are Wp*Cin for the input
    and W*Cout (== 128 at every layer here) for the conv output.

    x_ref       : (Lf, Wp*Cin)        f32  guard-padded sample
    w_ref       : (9, Wp*Cin, W*Cout) bf16 banded conv taps, (kd, kh)-major
    scale/shift : (1, W*Cout)         f32  folded BN affine, tiled over width
    se/so_ref   : (W*Cout, Wo*Cout)   f32  0/1 even/odd width-column selectors
    sr_ref      : (Do*Ho, row_span)   f32  0/1 pooled-anchor row selector
    o_ref       : (Do*Ho, Wo*Cout)    f32  pooled output for this sample
    """
    # --- conv: 9 banded (kd, kh) matmuls accumulated in a register-resident value ---
    lhs = x_ref[pl.ds(offs[0], rows), :].astype(jnp.bfloat16)
    acc = jnp.dot(lhs, w_ref[0], preferred_element_type=jnp.float32)
    for t in range(1, 9):
        lhs = x_ref[pl.ds(offs[t], rows), :].astype(jnp.bfloat16)
        acc = acc + jnp.dot(lhs, w_ref[t], preferred_element_type=jnp.float32)

    # --- folded BatchNorm affine + ReLU (f32 epilogue) ---
    act = jnp.maximum(acc * scale_ref[...] + shift_ref[...], 0.0)

    # --- 2x2x2 max pool ---
    # (a) max over the four (depth, height) row shifts; anchor row of (d=0,h=0) is 1.
    m = jnp.maximum(act[1:1 + row_span, :], act[2:2 + row_span, :])
    m = jnp.maximum(m, act[1 + hp:1 + hp + row_span, :])
    m = jnp.maximum(m, act[2 + hp:2 + hp + row_span, :])
    # (b) max over width pairs via even/odd 0/1 column-selection matmuls.
    mw = jnp.maximum(jnp.dot(m, se_ref[...], preferred_element_type=jnp.float32),
                     jnp.dot(m, so_ref[...], preferred_element_type=jnp.float32))
    # (c) pick the pooled anchor rows with a 0/1 row-selection matmul.
    pooled = jnp.dot(sr_ref[...], mw, preferred_element_type=jnp.float32)
    o_ref[...] = pooled.astype(o_ref.dtype)


def _conv_bn_relu_gap_kernel(x_ref, w_ref, scale_ref, shift_ref,
                             avg_ref, acol_ref, o_ref, *, rows, offs):
    """conv3 + folded BN + ReLU + global average pool for one sample -> (1, Cout)."""
    lhs = x_ref[pl.ds(offs[0], rows), :].astype(jnp.bfloat16)
    acc = jnp.dot(lhs, w_ref[0], preferred_element_type=jnp.float32)
    for t in range(1, 9):
        lhs = x_ref[pl.ds(offs[t], rows), :].astype(jnp.bfloat16)
        acc = acc + jnp.dot(lhs, w_ref[t], preferred_element_type=jnp.float32)
    act = jnp.maximum(acc * scale_ref[...] + shift_ref[...], 0.0)
    # average over the valid rows, then sum the per-width channel blocks.
    s = jnp.dot(avg_ref[...], act, preferred_element_type=jnp.float32)      # (1, W*Cout)
    gap = jnp.dot(s, acol_ref[...], preferred_element_type=jnp.float32)     # (1, Cout)
    o_ref[...] = gap


def _fc_head_kernel(x_ref, w1_ref, b1_ref, w2_ref, b2_ref, o_ref):
    """Batched fc1 + ReLU + fc2 over all samples at once (M = N)."""
    h = jnp.maximum(jnp.dot(x_ref[...], w1_ref[...],
                            preferred_element_type=jnp.float32) + b1_ref[...], 0.0)
    o_ref[...] = jnp.dot(h, w2_ref[...],
                         preferred_element_type=jnp.float32) + b2_ref[...]


# ---------------------------------------------------------------------------
# Host-side layout helpers (trace-time constants / parameter prep only)
# ---------------------------------------------------------------------------
def _pad_flatten(x):
    """(N, D, H, W, C) -> (N, (D+4)*(H+2), (W+2)*C).

    h/w zero-pad of 1 (matching the PyTorch convs) + 2 guard depth planes per side so
    every shifted row slice inside the kernel stays in bounds.
    """
    N, D, H, W, C = x.shape
    xp = jnp.pad(x, ((0, 0), (2, 2), (1, 1), (1, 1), (0, 0)))
    return xp.reshape(N, (D + 4) * (H + 2), (W + 2) * C)


def _conv_row_offsets(Hp):
    # input-row offset (relative to output row o = d*Hp + h + 1) for tap pair (kd, kh)
    return tuple((kd + 1) * Hp + kh - 1 for kd in range(3) for kh in range(3))


def _banded_weights(w, W):
    """(3,3,3,Cin,Cout) conv weights -> (9, (W+2)*Cin, W*Cout) banded taps, (kd,kh)-major.

    out[kd,kh][(wo+kw)*Cin + ci, wo*Cout + co] = w[kd, kh, kw, ci, co]
    so one matmul contracts over (padded width, Cin) and produces all width positions.
    """
    Cin, Cout = w.shape[3], w.shape[4]
    Wp = W + 2
    out = np.zeros((3, 3, Wp * Cin, W * Cout), np.float32)
    for kd in range(3):
        for kh in range(3):
            for kw in range(3):
                tap = np.asarray(w[kd, kh, kw], np.float32)           # (Cin, Cout)
                for wo in range(W):
                    wp = wo + kw
                    out[kd, kh, wp * Cin:(wp + 1) * Cin,
                        wo * Cout:(wo + 1) * Cout] = tap
    return out.reshape(9, Wp * Cin, W * Cout)


def _pool_matrices(D, H, W, Cout):
    """0/1 selection matrices implementing the 2x2x2 max-pool gather."""
    Hp = H + 2
    Do, Ho, Wo = D // 2, H // 2, W // 2
    row_span = (D - 2) * Hp + H - 1
    se = np.zeros((W * Cout, Wo * Cout), np.float32)
    so = np.zeros((W * Cout, Wo * Cout), np.float32)
    eye = np.eye(Cout, dtype=np.float32)
    for wo in range(Wo):
        se[(2 * wo) * Cout:(2 * wo + 1) * Cout, wo * Cout:(wo + 1) * Cout] = eye
        so[(2 * wo + 1) * Cout:(2 * wo + 2) * Cout, wo * Cout:(wo + 1) * Cout] = eye
    sr = np.zeros((Do * Ho, row_span), np.float32)
    for do in range(Do):
        for ho in range(Ho):
            sr[do * Ho + ho, 2 * do * Hp + 2 * ho] = 1.0
    return se, so, sr, row_span


def _gap_matrices(D, H, W, Cout):
    """Row-averaging vector + width-block column-sum matrix for global average pool."""
    Hp = H + 2
    avg = np.zeros((1, D * Hp), np.float32)
    inv = 1.0 / float(D * H * W)
    for d in range(D):
        avg[0, d * Hp + 1:d * Hp + 1 + H] = inv
    acol = np.zeros((W * Cout, Cout), np.float32)
    eye = np.eye(Cout, dtype=np.float32)
    for w in range(W):
        acol[w * Cout:(w + 1) * Cout, :] = eye
    return avg, acol


# ---------------------------------------------------------------------------
# Pallas wrappers
# ---------------------------------------------------------------------------
def conv_bn_relu_pool(x, w2, scale, shift):
    """Conv3d(3x3x3, pad=1) + BN + ReLU + MaxPool3d(2).  x: (N, D, H, W, Cin) f32."""
    N, D, H, W, Cin = x.shape
    assert D % 2 == 0 and H % 2 == 0 and W % 2 == 0
    Hp, Wp = H + 2, W + 2
    Cout = w2.shape[2] // W
    rows = D * Hp
    Lf = (D + 4) * Hp
    offs = _conv_row_offsets(Hp)
    se, so, sr, row_span = _pool_matrices(D, H, W, Cout)
    Do, Ho, Wo = D // 2, H // 2, W // 2

    xf = _pad_flatten(x)
    kernel = functools.partial(_conv_bn_relu_pool_kernel, rows=rows, offs=offs,
                               hp=Hp, row_span=row_span)

    flops = int(2 * N * (9 * rows * (Wp * Cin) * (W * Cout)
                         + 2 * row_span * (W * Cout) * (Wo * Cout)
                         + (Do * Ho) * row_span * (Wo * Cout)))
    bytes_accessed = int(xf.size * 4 + w2.size * 2
                         + (se.size + so.size + sr.size) * 4
                         + N * Do * Ho * Wo * Cout * 4)

    out = pl.pallas_call(
        kernel,
        out_shape=jax.ShapeDtypeStruct((N, Do * Ho, Wo * Cout), jnp.float32),
        grid=(N,),
        in_specs=[
            pl.BlockSpec((None, Lf, Wp * Cin), lambda n: (n, 0, 0)),
            pl.BlockSpec((9, Wp * Cin, W * Cout), lambda n: (0, 0, 0)),
            pl.BlockSpec((1, W * Cout), lambda n: (0, 0)),
            pl.BlockSpec((1, W * Cout), lambda n: (0, 0)),
            pl.BlockSpec((W * Cout, Wo * Cout), lambda n: (0, 0)),
            pl.BlockSpec((W * Cout, Wo * Cout), lambda n: (0, 0)),
            pl.BlockSpec((Do * Ho, row_span), lambda n: (0, 0)),
        ],
        out_specs=pl.BlockSpec((None, Do * Ho, Wo * Cout), lambda n: (n, 0, 0)),
        compiler_params=pltpu.CompilerParams(dimension_semantics=("parallel",)),
        cost_estimate=pl.CostEstimate(flops=flops, transcendentals=0,
                                      bytes_accessed=bytes_accessed),
    )(xf, w2, scale, shift, jnp.asarray(se), jnp.asarray(so), jnp.asarray(sr))
    return out.reshape(N, Do, Ho, Wo, Cout)


def conv_bn_relu_gap(x, w2, scale, shift):
    """conv3 + BN + ReLU + global-average-pool -> (N, Cout) f32."""
    N, D, H, W, Cin = x.shape
    Hp, Wp = H + 2, W + 2
    Cout = w2.shape[2] // W
    rows = D * Hp
    Lf = (D + 4) * Hp
    offs = _conv_row_offsets(Hp)
    avg, acol = _gap_matrices(D, H, W, Cout)

    xf = _pad_flatten(x)
    kernel = functools.partial(_conv_bn_relu_gap_kernel, rows=rows, offs=offs)

    flops = int(2 * N * (9 * rows * (Wp * Cin) * (W * Cout)
                         + rows * (W * Cout) + (W * Cout) * Cout))
    bytes_accessed = int(xf.size * 4 + w2.size * 2 + (avg.size + acol.size) * 4
                         + N * Cout * 4)

    out = pl.pallas_call(
        kernel,
        out_shape=jax.ShapeDtypeStruct((N, 1, Cout), jnp.float32),
        grid=(N,),
        in_specs=[
            pl.BlockSpec((None, Lf, Wp * Cin), lambda n: (n, 0, 0)),
            pl.BlockSpec((9, Wp * Cin, W * Cout), lambda n: (0, 0, 0)),
            pl.BlockSpec((1, W * Cout), lambda n: (0, 0)),
            pl.BlockSpec((1, W * Cout), lambda n: (0, 0)),
            pl.BlockSpec((1, rows), lambda n: (0, 0)),
            pl.BlockSpec((W * Cout, Cout), lambda n: (0, 0)),
        ],
        out_specs=pl.BlockSpec((None, 1, Cout), lambda n: (n, 0, 0)),
        compiler_params=pltpu.CompilerParams(dimension_semantics=("parallel",)),
        cost_estimate=pl.CostEstimate(flops=flops, transcendentals=0,
                                      bytes_accessed=bytes_accessed),
    )(xf, w2, scale, shift, jnp.asarray(avg), jnp.asarray(acol))
    return out.reshape(N, Cout)


def fc_head(x, w1, b1, w2, b2):
    """Batched fc1 + ReLU + fc2 for the whole batch in one kernel invocation."""
    N = x.shape[0]
    return pl.pallas_call(
        _fc_head_kernel,
        out_shape=jax.ShapeDtypeStruct((N, 1), jnp.float32),
    )(x, w1, b1, w2, b2)


# ---------------------------------------------------------------------------
# Parameter preparation (host-side, outside jit)
# ---------------------------------------------------------------------------
def fold_bn(conv_bias, gamma, beta, mean, var, eps=1e-5):
    """Fold conv bias + inference BatchNorm into per-channel scale/shift (numpy)."""
    scale = np.asarray(gamma) / np.sqrt(np.asarray(var) + eps)
    shift = (np.asarray(conv_bias) - np.asarray(mean)) * scale + np.asarray(beta)
    return scale, shift


def prepare_params(raw, D, H, W):
    """Turn PyTorch-layout params into the kernels' banded / folded / tiled layouts."""
    assert D % 4 == 0 and H % 4 == 0 and W % 4 == 0
    dims = [(D, H, W), (D // 2, H // 2, W // 2), (D // 4, H // 4, W // 4)]
    prep = {}
    for i in range(3):
        d, h, w = dims[i]
        cw = np.asarray(raw[f"conv{i+1}_w"])                # (Cout, Cin, 3, 3, 3)
        cw = np.transpose(cw, (2, 3, 4, 1, 0))              # (kd, kh, kw, Cin, Cout)
        cout = cw.shape[-1]
        scale, shift = fold_bn(raw[f"conv{i+1}_b"], raw[f"bn{i+1}_gamma"],
                               raw[f"bn{i+1}_beta"], raw[f"bn{i+1}_mean"],
                               raw[f"bn{i+1}_var"])
        prep[f"w{i+1}"] = jnp.asarray(_banded_weights(cw, w), jnp.bfloat16)
        prep[f"s{i+1}"] = jnp.asarray(np.tile(scale, w).reshape(1, w * cout),
                                      jnp.float32)
        prep[f"sh{i+1}"] = jnp.asarray(np.tile(shift, w).reshape(1, w * cout),
                                       jnp.float32)
    prep["fc1_w"] = jnp.asarray(np.asarray(raw["fc1_w"]).T, jnp.float32)   # (64, 256)
    prep["fc1_b"] = jnp.asarray(np.asarray(raw["fc1_b"]).reshape(1, -1), jnp.float32)
    prep["fc2_w"] = jnp.asarray(np.asarray(raw["fc2_w"]).T, jnp.float32)   # (256, 1)
    prep["fc2_b"] = jnp.asarray(np.asarray(raw["fc2_b"]).reshape(1, -1), jnp.float32)
    return prep


@jax.jit
def enhanced_cnn_forward(x, prep):
    """x: (N, C=6, D, H, W) NCDHW (PyTorch convention) -> (N, 1) logits."""
    h = jnp.transpose(x, (0, 2, 3, 4, 1))                    # NDHWC (channels in lanes)
    h = conv_bn_relu_pool(h, prep["w1"], prep["s1"], prep["sh1"])
    h = conv_bn_relu_pool(h, prep["w2"], prep["s2"], prep["sh2"])
    g = conv_bn_relu_gap(h, prep["w3"], prep["s3"], prep["sh3"])
    return fc_head(g, prep["fc1_w"], prep["fc1_b"], prep["fc2_w"], prep["fc2_b"])


# ---------------------------------------------------------------------------
# Deterministic synthetic parameters + smoke test
# ---------------------------------------------------------------------------
def make_raw_params(key, channels=6):
    ks = jax.random.split(key, 8)

    def cw(k, cout, cin):
        return 0.1 * jax.random.normal(k, (cout, cin, 3, 3, 3), jnp.float32)

    def cb(k, cout):
        return 0.01 * jax.random.normal(k, (cout,), jnp.float32)

    def bn(c):  # gamma=1, beta=0, running_mean=0, running_var=1 (fresh PyTorch BN)
        return (jnp.ones((c,), jnp.float32), jnp.zeros((c,), jnp.float32),
                jnp.zeros((c,), jnp.float32), jnp.ones((c,), jnp.float32))

    g1, be1, m1, v1 = bn(16)
    g2, be2, m2, v2 = bn(32)
    g3, be3, m3, v3 = bn(64)
    return dict(
        conv1_w=cw(ks[0], 16, channels), conv1_b=cb(ks[1], 16),
        bn1_gamma=g1, bn1_beta=be1, bn1_mean=m1, bn1_var=v1,
        conv2_w=cw(ks[2], 32, 16), conv2_b=cb(ks[3], 32),
        bn2_gamma=g2, bn2_beta=be2, bn2_mean=m2, bn2_var=v2,
        conv3_w=cw(ks[4], 64, 32), conv3_b=cb(ks[5], 64),
        bn3_gamma=g3, bn3_beta=be3, bn3_mean=m3, bn3_var=v3,
        fc1_w=0.1 * jax.random.normal(ks[6], (256, 64), jnp.float32),
        fc1_b=jnp.zeros((256,), jnp.float32),
        fc2_w=0.1 * jax.random.normal(ks[7], (1, 256), jnp.float32),
        fc2_b=jnp.zeros((1,), jnp.float32),
    )


if __name__ == "__main__":
    key = jax.random.PRNGKey(0)
    k_x, k_p = jax.random.split(key)

    N, C, D, H, W = 2, 6, 8, 8, 8                            # small NCDHW input
    x = jax.random.normal(k_x, (N, C, D, H, W), jnp.float32)
    raw = make_raw_params(k_p, channels=C)
    prep = prepare_params(raw, D, H, W)

    out = jax.block_until_ready(enhanced_cnn_forward(x, prep))

    assert out.shape == (N, 1), out.shape
    assert out.dtype == jnp.float32
    assert bool(jnp.all(jnp.isfinite(out)))
    print("KERNEL_OK")
</pallas_src>

<mosaic_0001>
module attributes {stable_mosaic.version = 11 : i64} {
  func.func @_conv_bn_relu_pool_kernel(%arg0: i32, %arg1: memref<1x120x60xf32, #tpu.memory_space<vmem>>, %arg2: memref<9x60x128xbf16, #tpu.memory_space<vmem>>, %arg3: memref<1x128xf32, #tpu.memory_space<vmem>>, %arg4: memref<1x128xf32, #tpu.memory_space<vmem>>, %arg5: memref<128x64xf32, #tpu.memory_space<vmem>>, %arg6: memref<128x64xf32, #tpu.memory_space<vmem>>, %arg7: memref<16x67xf32, #tpu.memory_space<vmem>>, %arg8: memref<1x16x64xf32, #tpu.memory_space<vmem>>) attributes {dimension_semantics = [#tpu.dimension_semantics<parallel>], iteration_bounds = array<i64: 2>, scalar_prefetch = 0 : i64, scratch_operands = 0 : i64, tpu.core_type = #tpu.core_type<tc>, window_params = [{transform_indices = @transform_0, window_bounds = array<i64: 1, 120, 60>}, {pipeline_mode = #tpu.pipeline_mode<synchronous>, transform_indices = @transform_1, window_bounds = array<i64: 9, 60, 128>}, {pipeline_mode = #tpu.pipeline_mode<synchronous>, transform_indices = @transform_2, window_bounds = array<i64: 1, 128>}, {pipeline_mode = #tpu.pipeline_mode<synchronous>, transform_indices = @transform_3, window_bounds = array<i64: 1, 128>}, {pipeline_mode = #tpu.pipeline_mode<synchronous>, transform_indices = @transform_4, window_bounds = array<i64: 128, 64>}, {pipeline_mode = #tpu.pipeline_mode<synchronous>, transform_indices = @transform_5, window_bounds = array<i64: 128, 64>}, {pipeline_mode = #tpu.pipeline_mode<synchronous>, transform_indices = @transform_6, window_bounds = array<i64: 16, 67>}, {transform_indices = @transform_7, window_bounds = array<i64: 1, 16, 64>}]} {
    %c0 = arith.constant 0 : index
    %c9 = arith.constant 9 : index
    %c0_0 = arith.constant 0 : index
    %0 = vector.load %arg1[%c0, %c9, %c0_0] : memref<1x120x60xf32, #tpu.memory_space<vmem>>, vector<1x80x60xf32>
    %1 = vector.shape_cast %0 : vector<1x80x60xf32> to vector<80x60xf32>
    %2 = arith.truncf %1 : vector<80x60xf32> to vector<80x60xbf16>
    %c0_1 = arith.constant 0 : index
    %c0_2 = arith.constant 0 : index
    %c0_3 = arith.constant 0 : index
    %3 = vector.load %arg2[%c0_1, %c0_2, %c0_3] : memref<9x60x128xbf16, #tpu.memory_space<vmem>>, vector<1x60x128xbf16>
    %4 = vector.shape_cast %3 : vector<1x60x128xbf16> to vector<60x128xbf16>
    %cst = arith.constant dense<0.000000e+00> : vector<80x128xf32>
    %5 = tpu.matmul %2, %4, %cst {dimension_numbers = #tpu.dot_dimension_numbers<[1], [0], [0], [1], [0, 0, 1, 1], [], []>} : vector<80x60xbf16>, vector<60x128xbf16>, vector<80x128xf32> -> vector<80x128xf32>
    %c0_4 = arith.constant 0 : index
    %c10 = arith.constant 10 : index
    %c0_5 = arith.constant 0 : index
    %6 = vector.load %arg1[%c0_4, %c10, %c0_5] : memref<1x120x60xf32, #tpu.memory_space<vmem>>, vector<1x80x60xf32>
    %7 = vector.shape_cast %6 : vector<1x80x60xf32> to vector<80x60xf32>
    %8 = arith.truncf %7 : vector<80x60xf32> to vector<80x60xbf16>
    %c1 = arith.constant 1 : index
    %c0_6 = arith.constant 0 : index
    %c0_7 = arith.constant 0 : index
    %9 = vector.load %arg2[%c1, %c0_6, %c0_7] : memref<9x60x128xbf16, #tpu.memory_space<vmem>>, vector<1x60x128xbf16>
    %10 = vector.shape_cast %9 : vector<1x60x128xbf16> to vector<60x128xbf16>
    %cst_8 = arith.constant dense<0.000000e+00> : vector<80x128xf32>
    %11 = tpu.matmul %8, %10, %cst_8 {dimension_numbers = #tpu.dot_dimension_numbers<[1], [0], [0], [1], [0, 0, 1, 1], [], []>} : vector<80x60xbf16>, vector<60x128xbf16>, vector<80x128xf32> -> vector<80x128xf32>
    %12 = arith.addf %5, %11 : vector<80x128xf32>
    %c0_9 = arith.constant 0 : index
    %c11 = arith.constant 11 : index
    %c0_10 = arith.constant 0 : index
    %13 = vector.load %arg1[%c0_9, %c11, %c0_10] : memref<1x120x60xf32, #tpu.memory_space<vmem>>, vector<1x80x60xf32>
    %14 = vector.shape_cast %13 : vector<1x80x60xf32> to vector<80x60xf32>
    %15 = arith.truncf %14 : vector<80x60xf32> to vector<80x60xbf16>
    %c2 = arith.constant 2 : index
    %c0_11 = arith.constant 0 : index
    %c0_12 = arith.constant 0 : index
    %16 = vector.load %arg2[%c2, %c0_11, %c0_12] : memref<9x60x128xbf16, #tpu.memory_space<vmem>>, vector<1x60x128xbf16>
    %17 = vector.shape_cast %16 : vector<1x60x128xbf16> to vector<60x128xbf16>
    %cst_13 = arith.constant dense<0.000000e+00> : vector<80x128xf32>
    %18 = tpu.matmul %15, %17, %cst_13 {dimension_numbers = #tpu.dot_dimension_numbers<[1], [0], [0], [1], [0, 0, 1, 1], [], []>} : vector<80x60xbf16>, vector<60x128xbf16>, vector<80x128xf32> -> vector<80x128xf32>
    %19 = arith.addf %12, %18 : vector<80x128xf32>
    %c0_14 = arith.constant 0 : index
    %c19 = arith.constant 19 : index
    %c0_15 = arith.constant 0 : index
    %20 = vector.load %arg1[%c0_14, %c19, %c0_15] : memref<1x120x60xf32, #tpu.memory_space<vmem>>, vector<1x80x60xf32>
    %21 = vector.shape_cast %20 : vector<1x80x60xf32> to vector<80x60xf32>
    %22 = arith.truncf %21 : vector<80x60xf32> to vector<80x60xbf16>
    %c3 = arith.constant 3 : index
    %c0_16 = arith.constant 0 : index
    %c0_17 = arith.constant 0 : index
    %23 = vector.load %arg2[%c3, %c0_16, %c0_17] : memref<9x60x128xbf16, #tpu.memory_space<vmem>>, vector<1x60x128xbf16>
    %24 = vector.shape_cast %23 : vector<1x60x128xbf16> to vector<60x128xbf16>
    %cst_18 = arith.constant dense<0.000000e+00> : vector<80x128xf32>
    %25 = tpu.matmul %22, %24, %cst_18 {dimension_numbers = #tpu.dot_dimension_numbers<[1], [0], [0], [1], [0, 0, 1, 1], [], []>} : vector<80x60xbf16>, vector<60x128xbf16>, vector<80x128xf32> -> vector<80x128xf32>
    %26 = arith.addf %19, %25 : vector<80x128xf32>
    %c0_19 = arith.constant 0 : index
    %c20 = arith.constant 20 : index
    %c0_20 = arith.constant 0 : index
    %27 = vector.load %arg1[%c0_19, %c20, %c0_20] : memref<1x120x60xf32, #tpu.memory_space<vmem>>, vector<1x80x60xf32>
    %28 = vector.shape_cast %27 : vector<1x80x60xf32> to vector<80x60xf32>
    %29 = arith.truncf %28 : vector<80x60xf32> to vector<80x60xbf16>
    %c4 = arith.constant 4 : index
    %c0_21 = arith.constant 0 : index
    %c0_22 = arith.constant 0 : index
    %30 = vector.load %arg2[%c4, %c0_21, %c0_22] : memref<9x60x128xbf16, #tpu.memory_space<vmem>>, vector<1x60x128xbf16>
    %31 = vector.shape_cast %30 : vector<1x60x128xbf16> to vector<60x128xbf16>
    %cst_23 = arith.constant dense<0.000000e+00> : vector<80x128xf32>
    %32 = tpu.matmul %29, %31, %cst_23 {dimension_numbers = #tpu.dot_dimension_numbers<[1], [0], [0], [1], [0, 0, 1, 1], [], []>} : vector<80x60xbf16>, vector<60x128xbf16>, vector<80x128xf32> -> vector<80x128xf32>
    %33 = arith.addf %26, %32 : vector<80x128xf32>
    %c0_24 = arith.constant 0 : index
    %c21 = arith.constant 21 : index
    %c0_25 = arith.constant 0 : index
    %34 = vector.load %arg1[%c0_24, %c21, %c0_25] : memref<1x120x60xf32, #tpu.memory_space<vmem>>, vector<1x80x60xf32>
    %35 = vector.shape_cast %34 : vector<1x80x60xf32> to vector<80x60xf32>
    %36 = arith.truncf %35 : vector<80x60xf32> to vector<80x60xbf16>
    %c5 = arith.constant 5 : index
    %c0_26 = arith.constant 0 : index
    %c0_27 = arith.constant 0 : index
    %37 = vector.load %arg2[%c5, %c0_26, %c0_27] : memref<9x60x128xbf16, #tpu.memory_space<vmem>>, vector<1x60x128xbf16>
    %38 = vector.shape_cast %37 : vector<1x60x128xbf16> to vector<60x128xbf16>
    %cst_28 = arith.constant dense<0.000000e+00> : vector<80x128xf32>
    %39 = tpu.matmul %36, %38, %cst_28 {dimension_numbers = #tpu.dot_dimension_numbers<[1], [0], [0], [1], [0, 0, 1, 1], [], []>} : vector<80x60xbf16>, vector<60x128xbf16>, vector<80x128xf32> -> vector<80x128xf32>
    %40 = arith.addf %33, %39 : vector<80x128xf32>
    %c0_29 = arith.constant 0 : index
    %c29 = arith.constant 29 : index
    %c0_30 = arith.constant 0 : index
    %41 = vector.load %arg1[%c0_29, %c29, %c0_30] : memref<1x120x60xf32, #tpu.memory_space<vmem>>, vector<1x80x60xf32>
    %42 = vector.shape_cast %41 : vector<1x80x60xf32> to vector<80x60xf32>
    %43 = arith.truncf %42 : vector<80x60xf32> to vector<80x60xbf16>
    %c6 = arith.constant 6 : index
    %c0_31 = arith.constant 0 : index
    %c0_32 = arith.constant 0 : index
    %44 = vector.load %arg2[%c6, %c0_31, %c0_32] : memref<9x60x128xbf16, #tpu.memory_space<vmem>>, vector<1x60x128xbf16>
    %45 = vector.shape_cast %44 : vector<1x60x128xbf16> to vector<60x128xbf16>
    %cst_33 = arith.constant dense<0.000000e+00> : vector<80x128xf32>
    %46 = tpu.matmul %43, %45, %cst_33 {dimension_numbers = #tpu.dot_dimension_numbers<[1], [0], [0], [1], [0, 0, 1, 1], [], []>} : vector<80x60xbf16>, vector<60x128xbf16>, vector<80x128xf32> -> vector<80x128xf32>
    %47 = arith.addf %40, %46 : vector<80x128xf32>
    %c0_34 = arith.constant 0 : index
    %c30 = arith.constant 30 : index
    %c0_35 = arith.constant 0 : index
    %48 = vector.load %arg1[%c0_34, %c30, %c0_35] : memref<1x120x60xf32, #tpu.memory_space<vmem>>, vector<1x80x60xf32>
    %49 = vector.shape_cast %48 : vector<1x80x60xf32> to vector<80x60xf32>
    %50 = arith.truncf %49 : vector<80x60xf32> to vector<80x60xbf16>
    %c7 = arith.constant 7 : index
    %c0_36 = arith.constant 0 : index
    %c0_37 = arith.constant 0 : index
    %51 = vector.load %arg2[%c7, %c0_36, %c0_37] : memref<9x60x128xbf16, #tpu.memory_space<vmem>>, vector<1x60x128xbf16>
    %52 = vector.shape_cast %51 : vector<1x60x128xbf16> to vector<60x128xbf16>
    %cst_38 = arith.constant dense<0.000000e+00> : vector<80x128xf32>
    %53 = tpu.matmul %50, %52, %cst_38 {dimension_numbers = #tpu.dot_dimension_numbers<[1], [0], [0], [1], [0, 0, 1, 1], [], []>} : vector<80x60xbf16>, vector<60x128xbf16>, vector<80x128xf32> -> vector<80x128xf32>
    %54 = arith.addf %47, %53 : vector<80x128xf32>
    %c0_39 = arith.constant 0 : index
    %c31 = arith.constant 31 : index
    %c0_40 = arith.constant 0 : index
    %55 = vector.load %arg1[%c0_39, %c31, %c0_40] : memref<1x120x60xf32, #tpu.memory_space<vmem>>, vector<1x80x60xf32>
    %56 = vector.shape_cast %55 : vector<1x80x60xf32> to vector<80x60xf32>
    %57 = arith.truncf %56 : vector<80x60xf32> to vector<80x60xbf16>
    %c8 = arith.constant 8 : index
    %c0_41 = arith.constant 0 : index
    %c0_42 = arith.constant 0 : index
    %58 = vector.load %arg2[%c8, %c0_41, %c0_42] : memref<9x60x128xbf16, #tpu.memory_space<vmem>>, vector<1x60x128xbf16>
    %59 = vector.shape_cast %58 : vector<1x60x128xbf16> to vector<60x128xbf16>
    %cst_43 = arith.constant dense<0.000000e+00> : vector<80x128xf32>
    %60 = tpu.matmul %57, %59, %cst_43 {dimension_numbers = #tpu.dot_dimension_numbers<[1], [0], [0], [1], [0, 0, 1, 1], [], []>} : vector<80x60xbf16>, vector<60x128xbf16>, vector<80x128xf32> -> vector<80x128xf32>
    %61 = arith.addf %54, %60 : vector<80x128xf32>
    %c0_44 = arith.constant 0 : index
    %c0_45 = arith.constant 0 : index
    %62 = vector.load %arg3[%c0_44, %c0_45] : memref<1x128xf32, #tpu.memory_space<vmem>>, vector<1x128xf32>
    %63 = vector.broadcast %62 : vector<1x128xf32> to vector<80x128xf32>
    %64 = arith.mulf %61, %63 : vector<80x128xf32>
    %c0_46 = arith.constant 0 : index
    %c0_47 = arith.constant 0 : index
    %65 = vector.load %arg4[%c0_46, %c0_47] : memref<1x128xf32, #tpu.memory_space<vmem>>, vector<1x128xf32>
    %66 = vector.broadcast %65 : vector<1x128xf32> to vector<80x128xf32>
    %67 = arith.addf %64, %66 : vector<80x128xf32>
    %cst_48 = arith.constant 0.000000e+00 : f32
    %68 = vector.broadcast %cst_48 : f32 to vector<80x128xf32>
    %69 = arith.maximumf %67, %68 : vector<80x128xf32>
    %70 = vector.extract_strided_slice %69 {offsets = [1, 0], sizes = [67, 128], strides = [1, 1]} : vector<80x128xf32> to vector<67x128xf32>
    %71 = vector.extract_strided_slice %69 {offsets = [2, 0], sizes = [67, 128], strides = [1, 1]} : vector<80x128xf32> to vector<67x128xf32>
    %72 = arith.maximumf %70, %71 : vector<67x128xf32>
    %73 = vector.extract_strided_slice %69 {offsets = [11, 0], sizes = [67, 128], strides = [1, 1]} : vector<80x128xf32> to vector<67x128xf32>
    %74 = arith.maximumf %72, %73 : vector<67x128xf32>
    %75 = vector.extract_strided_slice %69 {offsets = [12, 0], sizes = [67, 128], strides = [1, 1]} : vector<80x128xf32> to vector<67x128xf32>
    %76 = arith.maximumf %74, %75 : vector<67x128xf32>
    %c0_49 = arith.constant 0 : index
    %c0_50 = arith.constant 0 : index
    %77 = vector.load %arg5[%c0_49, %c0_50] : memref<128x64xf32, #tpu.memory_space<vmem>>, vector<128x64xf32>
    %cst_51 = arith.constant dense<0.000000e+00> : vector<67x64xf32>
    %78 = tpu.matmul %76, %77, %cst_51 {dimension_numbers = #tpu.dot_dimension_numbers<[1], [0], [0], [1], [0, 0, 1, 1], [], []>} : vector<67x128xf32>, vector<128x64xf32>, vector<67x64xf32> -> vector<67x64xf32>
    %c0_52 = arith.constant 0 : index
    %c0_53 = arith.constant 0 : index
    %79 = vector.load %arg6[%c0_52, %c0_53] : memref<128x64xf32, #tpu.memory_space<vmem>>, vector<128x64xf32>
    %cst_54 = arith.constant dense<0.000000e+00> : vector<67x64xf32>
    %80 = tpu.matmul %76, %79, %cst_54 {dimension_numbers = #tpu.dot_dimension_numbers<[1], [0], [0], [1], [0, 0, 1, 1], [], []>} : vector<67x128xf32>, vector<128x64xf32>, vector<67x64xf32> -> vector<67x64xf32>
    %81 = arith.maximumf %78, %80 : vector<67x64xf32>
    %c0_55 = arith.constant 0 : index
    %c0_56 = arith.constant 0 : index
    %82 = vector.load %arg7[%c0_55, %c0_56] : memref<16x67xf32, #tpu.memory_space<vmem>>, vector<16x67xf32>
    %cst_57 = arith.constant dense<0.000000e+00> : vector<16x64xf32>
    %83 = tpu.matmul %82, %81, %cst_57 {dimension_numbers = #tpu.dot_dimension_numbers<[1], [0], [0], [1], [0, 0, 1, 1], [], []>} : vector<16x67xf32>, vector<67x64xf32>, vector<16x64xf32> -> vector<16x64xf32>
    %c0_58 = arith.constant 0 : index
    %c0_59 = arith.constant 0 : index
    %c0_60 = arith.constant 0 : index
    %84 = vector.load %arg8[%c0_58, %c0_59, %c0_60] : memref<1x16x64xf32, #tpu.memory_space<vmem>>, vector<1x16x64xf32>
    %85 = vector.shape_cast %84 : vector<1x16x64xf32> to vector<16x64xf32>
    %86 = vector.shape_cast %83 : vector<16x64xf32> to vector<1x16x64xf32>
    tpu.vector_store %arg8[%c0_58, %c0_59, %c0_60], %86 {strides = array<i32>} : memref<1x16x64xf32, #tpu.memory_space<vmem>>, vector<1x16x64xf32>,
    return
  }
  func.func @transform_0(%arg0: i32) -> (i32, i32, i32) {
    %c0_i32 = arith.constant 0 : i32
    %c0_i32_0 = arith.constant 0 : i32
    %c0_i32_1 = arith.constant 0 : i32
    return %arg0, %c0_i32, %c0_i32_0 : i32, i32, i32
  }
  func.func @transform_1(%arg0: i32) -> (i32, i32, i32) {
    %c0_i32 = arith.constant 0 : i32
    %c0_i32_0 = arith.constant 0 : i32
    %c0_i32_1 = arith.constant 0 : i32
    %c0_i32_2 = arith.constant 0 : i32
    return %c0_i32, %c0_i32_0, %c0_i32_1 : i32, i32, i32
  }
  func.func @transform_2(%arg0: i32) -> (i32, i32) {
    %c0_i32 = arith.constant 0 : i32
    %c0_i32_0 = arith.constant 0 : i32
    %c0_i32_1 = arith.constant 0 : i32
    return %c0_i32, %c0_i32_0 : i32, i32
  }
  func.func @transform_3(%arg0: i32) -> (i32, i32) {
    %c0_i32 = arith.constant 0 : i32
    %c0_i32_0 = arith.constant 0 : i32
    %c0_i32_1 = arith.constant 0 : i32
    return %c0_i32, %c0_i32_0 : i32, i32
  }
  func.func @transform_4(%arg0: i32) -> (i32, i32) {
    %c0_i32 = arith.constant 0 : i32
    %c0_i32_0 = arith.constant 0 : i32
    %c0_i32_1 = arith.constant 0 : i32
    return %c0_i32, %c0_i32_0 : i32, i32
  }
  func.func @transform_5(%arg0: i32) -> (i32, i32) {
    %c0_i32 = arith.constant 0 : i32
    %c0_i32_0 = arith.constant 0 : i32
    %c0_i32_1 = arith.constant 0 : i32
    return %c0_i32, %c0_i32_0 : i32, i32
  }
  func.func @transform_6(%arg0: i32) -> (i32, i32) {
    %c0_i32 = arith.constant 0 : i32
    %c0_i32_0 = arith.constant 0 : i32
    %c0_i32_1 = arith.constant 0 : i32
    return %c0_i32, %c0_i32_0 : i32, i32
  }
  func.func @transform_7(%arg0: i32) -> (i32, i32, i32) {
    %c0_i32 = arith.constant 0 : i32
    %c0_i32_0 = arith.constant 0 : i32
    %c0_i32_1 = arith.constant 0 : i32
    return %arg0, %c0_i32, %c0_i32_0 : i32, i32, i32
  }
}

module attributes {stable_mosaic.version = 11 : i64} {
  func.func @_conv_bn_relu_pool_kernel(%arg0: i32, %arg1: memref<1x48x96xf32, #tpu.memory_space<vmem>>, %arg2: memref<9x96x128xbf16, #tpu.memory_space<vmem>>, %arg3: memref<1x128xf32, #tpu.memory_space<vmem>>, %arg4: memref<1x128xf32, #tpu.memory_space<vmem>>, %arg5: memref<128x64xf32, #tpu.memory_space<vmem>>, %arg6: memref<128x64xf32, #tpu.memory_space<vmem>>, %arg7: memref<4x15xf32, #tpu.memory_space<vmem>>, %arg8: memref<1x4x64xf32, #tpu.memory_space<vmem>>) attributes {dimension_semantics = [#tpu.dimension_semantics<parallel>], iteration_bounds = array<i64: 2>, scalar_prefetch = 0 : i64, scratch_operands = 0 : i64, tpu.core_type = #tpu.core_type<tc>, window_params = [{transform_indices = @transform_0, window_bounds = array<i64: 1, 48, 96>}, {pipeline_mode = #tpu.pipeline_mode<synchronous>, transform_indices = @transform_1, window_bounds = array<i64: 9, 96, 128>}, {pipeline_mode = #tpu.pipeline_mode<synchronous>, transform_indices = @transform_2, window_bounds = array<i64: 1, 128>}, {pipeline_mode = #tpu.pipeline_mode<synchronous>, transform_indices = @transform_3, window_bounds = array<i64: 1, 128>}, {pipeline_mode = #tpu.pipeline_mode<synchronous>, transform_indices = @transform_4, window_bounds = array<i64: 128, 64>}, {pipeline_mode = #tpu.pipeline_mode<synchronous>, transform_indices = @transform_5, window_bounds = array<i64: 128, 64>}, {pipeline_mode = #tpu.pipeline_mode<synchronous>, transform_indices = @transform_6, window_bounds = array<i64: 4, 15>}, {transform_indices = @transform_7, window_bounds = array<i64: 1, 4, 64>}]} {
    %c0 = arith.constant 0 : index
    %c5 = arith.constant 5 : index
    %c0_0 = arith.constant 0 : index
    %0 = vector.load %arg1[%c0, %c5, %c0_0] : memref<1x48x96xf32, #tpu.memory_space<vmem>>, vector<1x24x96xf32>
    %1 = vector.shape_cast %0 : vector<1x24x96xf32> to vector<24x96xf32>
    %2 = arith.truncf %1 : vector<24x96xf32> to vector<24x96xbf16>
    %c0_1 = arith.constant 0 : index
    %c0_2 = arith.constant 0 : index
    %c0_3 = arith.constant 0 : index
    %3 = vector.load %arg2[%c0_1, %c0_2, %c0_3] : memref<9x96x128xbf16, #tpu.memory_space<vmem>>, vector<1x96x128xbf16>
    %4 = vector.shape_cast %3 : vector<1x96x128xbf16> to vector<96x128xbf16>
    %cst = arith.constant dense<0.000000e+00> : vector<24x128xf32>
    %5 = tpu.matmul %2, %4, %cst {dimension_numbers = #tpu.dot_dimension_numbers<[1], [0], [0], [1], [0, 0, 1, 1], [], []>} : vector<24x96xbf16>, vector<96x128xbf16>, vector<24x128xf32> -> vector<24x128xf32>
    %c0_4 = arith.constant 0 : index
    %c6 = arith.constant 6 : index
    %c0_5 = arith.constant 0 : index
    %6 = vector.load %arg1[%c0_4, %c6, %c0_5] : memref<1x48x96xf32, #tpu.memory_space<vmem>>, vector<1x24x96xf32>
    %7 = vector.shape_cast %6 : vector<1x24x96xf32> to vector<24x96xf32>
    %8 = arith.truncf %7 : vector<24x96xf32> to vector<24x96xbf16>
    %c1 = arith.constant 1 : index
    %c0_6 = arith.constant 0 : index
    %c0_7 = arith.constant 0 : index
    %9 = vector.load %arg2[%c1, %c0_6, %c0_7] : memref<9x96x128xbf16, #tpu.memory_space<vmem>>, vector<1x96x128xbf16>
    %10 = vector.shape_cast %9 : vector<1x96x128xbf16> to vector<96x128xbf16>
    %cst_8 = arith.constant dense<0.000000e+00> : vector<24x128xf32>
    %11 = tpu.matmul %8, %10, %cst_8 {dimension_numbers = #tpu.dot_dimension_numbers<[1], [0], [0], [1], [0, 0, 1, 1], [], []>} : vector<24x96xbf16>, vector<96x128xbf16>, vector<24x128xf32> -> vector<24x128xf32>
    %12 = arith.addf %5, %11 : vector<24x128xf32>
    %c0_9 = arith.constant 0 : index
    %c7 = arith.constant 7 : index
    %c0_10 = arith.constant 0 : index
    %13 = vector.load %arg1[%c0_9, %c7, %c0_10] : memref<1x48x96xf32, #tpu.memory_space<vmem>>, vector<1x24x96xf32>
    %14 = vector.shape_cast %13 : vector<1x24x96xf32> to vector<24x96xf32>
    %15 = arith.truncf %14 : vector<24x96xf32> to vector<24x96xbf16>
    %c2 = arith.constant 2 : index
    %c0_11 = arith.constant 0 : index
    %c0_12 = arith.constant 0 : index
    %16 = vector.load %arg2[%c2, %c0_11, %c0_12] : memref<9x96x128xbf16, #tpu.memory_space<vmem>>, vector<1x96x128xbf16>
    %17 = vector.shape_cast %16 : vector<1x96x128xbf16> to vector<96x128xbf16>
    %cst_13 = arith.constant dense<0.000000e+00> : vector<24x128xf32>
    %18 = tpu.matmul %15, %17, %cst_13 {dimension_numbers = #tpu.dot_dimension_numbers<[1], [0], [0], [1], [0, 0, 1, 1], [], []>} : vector<24x96xbf16>, vector<96x128xbf16>, vector<24x128xf32> -> vector<24x128xf32>
    %19 = arith.addf %12, %18 : vector<24x128xf32>
    %c0_14 = arith.constant 0 : index
    %c11 = arith.constant 11 : index
    %c0_15 = arith.constant 0 : index
    %20 = vector.load %arg1[%c0_14, %c11, %c0_15] : memref<1x48x96xf32, #tpu.memory_space<vmem>>, vector<1x24x96xf32>
    %21 = vector.shape_cast %20 : vector<1x24x96xf32> to vector<24x96xf32>
    %22 = arith.truncf %21 : vector<24x96xf32> to vector<24x96xbf16>
    %c3 = arith.constant 3 : index
    %c0_16 = arith.constant 0 : index
    %c0_17 = arith.constant 0 : index
    %23 = vector.load %arg2[%c3, %c0_16, %c0_17] : memref<9x96x128xbf16, #tpu.memory_space<vmem>>, vector<1x96x128xbf16>
    %24 = vector.shape_cast %23 : vector<1x96x128xbf16> to vector<96x128xbf16>
    %cst_18 = arith.constant dense<0.000000e+00> : vector<24x128xf32>
    %25 = tpu.matmul %22, %24, %cst_18 {dimension_numbers = #tpu.dot_dimension_numbers<[1], [0], [0], [1], [0, 0, 1, 1], [], []>} : vector<24x96xbf16>, vector<96x128xbf16>, vector<24x128xf32> -> vector<24x128xf32>
    %26 = arith.addf %19, %25 : vector<24x128xf32>
    %c0_19 = arith.constant 0 : index
    %c12 = arith.constant 12 : index
    %c0_20 = arith.constant 0 : index
    %27 = vector.load %arg1[%c0_19, %c12, %c0_20] : memref<1x48x96xf32, #tpu.memory_space<vmem>>, vector<1x24x96xf32>
    %28 = vector.shape_cast %27 : vector<1x24x96xf32> to vector<24x96xf32>
    %29 = arith.truncf %28 : vector<24x96xf32> to vector<24x96xbf16>
    %c4 = arith.constant 4 : index
    %c0_21 = arith.constant 0 : index
    %c0_22 = arith.constant 0 : index
    %30 = vector.load %arg2[%c4, %c0_21, %c0_22] : memref<9x96x128xbf16, #tpu.memory_space<vmem>>, vector<1x96x128xbf16>
    %31 = vector.shape_cast %30 : vector<1x96x128xbf16> to vector<96x128xbf16>
    %cst_23 = arith.constant dense<0.000000e+00> : vector<24x128xf32>
    %32 = tpu.matmul %29, %31, %cst_23 {dimension_numbers = #tpu.dot_dimension_numbers<[1], [0], [0], [1], [0, 0, 1, 1], [], []>} : vector<24x96xbf16>, vector<96x128xbf16>, vector<24x128xf32> -> vector<24x128xf32>
    %33 = arith.addf %26, %32 : vector<24x128xf32>
    %c0_24 = arith.constant 0 : index
    %c13 = arith.constant 13 : index
    %c0_25 = arith.constant 0 : index
    %34 = vector.load %arg1[%c0_24, %c13, %c0_25] : memref<1x48x96xf32, #tpu.memory_space<vmem>>, vector<1x24x96xf32>
    %35 = vector.shape_cast %34 : vector<1x24x96xf32> to vector<24x96xf32>
    %36 = arith.truncf %35 : vector<24x96xf32> to vector<24x96xbf16>
    %c5_26 = arith.constant 5 : index
    %c0_27 = arith.constant 0 : index
    %c0_28 = arith.constant 0 : index
    %37 = vector.load %arg2[%c5_26, %c0_27, %c0_28] : memref<9x96x128xbf16, #tpu.memory_space<vmem>>, vector<1x96x128xbf16>
    %38 = vector.shape_cast %37 : vector<1x96x128xbf16> to vector<96x128xbf16>
    %cst_29 = arith.constant dense<0.000000e+00> : vector<24x128xf32>
    %39 = tpu.matmul %36, %38, %cst_29 {dimension_numbers = #tpu.dot_dimension_numbers<[1], [0], [0], [1], [0, 0, 1, 1], [], []>} : vector<24x96xbf16>, vector<96x128xbf16>, vector<24x128xf32> -> vector<24x128xf32>
    %40 = arith.addf %33, %39 : vector<24x128xf32>
    %c0_30 = arith.constant 0 : index
    %c17 = arith.constant 17 : index
    %c0_31 = arith.constant 0 : index
    %41 = vector.load %arg1[%c0_30, %c17, %c0_31] : memref<1x48x96xf32, #tpu.memory_space<vmem>>, vector<1x24x96xf32>
    %42 = vector.shape_cast %41 : vector<1x24x96xf32> to vector<24x96xf32>
    %43 = arith.truncf %42 : vector<24x96xf32> to vector<24x96xbf16>
    %c6_32 = arith.constant 6 : index
    %c0_33 = arith.constant 0 : index
    %c0_34 = arith.constant 0 : index
    %44 = vector.load %arg2[%c6_32, %c0_33, %c0_34] : memref<9x96x128xbf16, #tpu.memory_space<vmem>>, vector<1x96x128xbf16>
    %45 = vector.shape_cast %44 : vector<1x96x128xbf16> to vector<96x128xbf16>
    %cst_35 = arith.constant dense<0.000000e+00> : vector<24x128xf32>
    %46 = tpu.matmul %43, %45, %cst_35 {dimension_numbers = #tpu.dot_dimension_numbers<[1], [0], [0], [1], [0, 0, 1, 1], [], []>} : vector<24x96xbf16>, vector<96x128xbf16>, vector<24x128xf32> -> vector<24x128xf32>
    %47 = arith.addf %40, %46 : vector<24x128xf32>
    %c0_36 = arith.constant 0 : index
    %c18 = arith.constant 18 : index
    %c0_37 = arith.constant 0 : index
    %48 = vector.load %arg1[%c0_36, %c18, %c0_37] : memref<1x48x96xf32, #tpu.memory_space<vmem>>, vector<1x24x96xf32>
    %49 = vector.shape_cast %48 : vector<1x24x96xf32> to vector<24x96xf32>
    %50 = arith.truncf %49 : vector<24x96xf32> to vector<24x96xbf16>
    %c7_38 = arith.constant 7 : index
    %c0_39 = arith.constant 0 : index
    %c0_40 = arith.constant 0 : index
    %51 = vector.load %arg2[%c7_38, %c0_39, %c0_40] : memref<9x96x128xbf16, #tpu.memory_space<vmem>>, vector<1x96x128xbf16>
    %52 = vector.shape_cast %51 : vector<1x96x128xbf16> to vector<96x128xbf16>
    %cst_41 = arith.constant dense<0.000000e+00> : vector<24x128xf32>
    %53 = tpu.matmul %50, %52, %cst_41 {dimension_numbers = #tpu.dot_dimension_numbers<[1], [0], [0], [1], [0, 0, 1, 1], [], []>} : vector<24x96xbf16>, vector<96x128xbf16>, vector<24x128xf32> -> vector<24x128xf32>
    %54 = arith.addf %47, %53 : vector<24x128xf32>
    %c0_42 = arith.constant 0 : index
    %c19 = arith.constant 19 : index
    %c0_43 = arith.constant 0 : index
    %55 = vector.load %arg1[%c0_42, %c19, %c0_43] : memref<1x48x96xf32, #tpu.memory_space<vmem>>, vector<1x24x96xf32>
    %56 = vector.shape_cast %55 : vector<1x24x96xf32> to vector<24x96xf32>
    %57 = arith.truncf %56 : vector<24x96xf32> to vector<24x96xbf16>
    %c8 = arith.constant 8 : index
    %c0_44 = arith.constant 0 : index
    %c0_45 = arith.constant 0 : index
    %58 = vector.load %arg2[%c8, %c0_44, %c0_45] : memref<9x96x128xbf16, #tpu.memory_space<vmem>>, vector<1x96x128xbf16>
    %59 = vector.shape_cast %58 : vector<1x96x128xbf16> to vector<96x128xbf16>
    %cst_46 = arith.constant dense<0.000000e+00> : vector<24x128xf32>
    %60 = tpu.matmul %57, %59, %cst_46 {dimension_numbers = #tpu.dot_dimension_numbers<[1], [0], [0], [1], [0, 0, 1, 1], [], []>} : vector<24x96xbf16>, vector<96x128xbf16>, vector<24x128xf32> -> vector<24x128xf32>
    %61 = arith.addf %54, %60 : vector<24x128xf32>
    %c0_47 = arith.constant 0 : index
    %c0_48 = arith.constant 0 : index
    %62 = vector.load %arg3[%c0_47, %c0_48] : memref<1x128xf32, #tpu.memory_space<vmem>>, vector<1x128xf32>
    %63 = vector.broadcast %62 : vector<1x128xf32> to vector<24x128xf32>
    %64 = arith.mulf %61, %63 : vector<24x128xf32>
    %c0_49 = arith.constant 0 : index
    %c0_50 = arith.constant 0 : index
    %65 = vector.load %arg4[%c0_49, %c0_50] : memref<1x128xf32, #tpu.memory_space<vmem>>, vector<1x128xf32>
    %66 = vector.broadcast %65 : vector<1x128xf32> to vector<24x128xf32>
    %67 = arith.addf %64, %66 : vector<24x128xf32>
    %cst_51 = arith.constant 0.000000e+00 : f32
    %68 = vector.broadcast %cst_51 : f32 to vector<24x128xf32>
    %69 = arith.maximumf %67, %68 : vector<24x128xf32>
    %70 = vector.extract_strided_slice %69 {offsets = [1, 0], sizes = [15, 128], strides = [1, 1]} : vector<24x128xf32> to vector<15x128xf32>
    %71 = vector.extract_strided_slice %69 {offsets = [2, 0], sizes = [15, 128], strides = [1, 1]} : vector<24x128xf32> to vector<15x128xf32>
    %72 = arith.maximumf %70, %71 : vector<15x128xf32>
    %73 = vector.extract_strided_slice %69 {offsets = [7, 0], sizes = [15, 128], strides = [1, 1]} : vector<24x128xf32> to vector<15x128xf32>
    %74 = arith.maximumf %72, %73 : vector<15x128xf32>
    %75 = vector.extract_strided_slice %69 {offsets = [8, 0], sizes = [15, 128], strides = [1, 1]} : vector<24x128xf32> to vector<15x128xf32>
    %76 = arith.maximumf %74, %75 : vector<15x128xf32>
    %c0_52 = arith.constant 0 : index
    %c0_53 = arith.constant 0 : index
    %77 = vector.load %arg5[%c0_52, %c0_53] : memref<128x64xf32, #tpu.memory_space<vmem>>, vector<128x64xf32>
    %cst_54 = arith.constant dense<0.000000e+00> : vector<15x64xf32>
    %78 = tpu.matmul %76, %77, %cst_54 {dimension_numbers = #tpu.dot_dimension_numbers<[1], [0], [0], [1], [0, 0, 1, 1], [], []>} : vector<15x128xf32>, vector<128x64xf32>, vector<15x64xf32> -> vector<15x64xf32>
    %c0_55 = arith.constant 0 : index
    %c0_56 = arith.constant 0 : index
    %79 = vector.load %arg6[%c0_55, %c0_56] : memref<128x64xf32, #tpu.memory_space<vmem>>, vector<128x64xf32>
    %cst_57 = arith.constant dense<0.000000e+00> : vector<15x64xf32>
    %80 = tpu.matmul %76, %79, %cst_57 {dimension_numbers = #tpu.dot_dimension_numbers<[1], [0], [0], [1], [0, 0, 1, 1], [], []>} : vector<15x128xf32>, vector<128x64xf32>, vector<15x64xf32> -> vector<15x64xf32>
    %81 = arith.maximumf %78, %80 : vector<15x64xf32>
    %c0_58 = arith.constant 0 : index
    %c0_59 = arith.constant 0 : index
    %82 = vector.load %arg7[%c0_58, %c0_59] : memref<4x15xf32, #tpu.memory_space<vmem>>, vector<4x15xf32>
    %cst_60 = arith.constant dense<0.000000e+00> : vector<4x64xf32>
    %83 = tpu.matmul %82, %81, %cst_60 {dimension_numbers = #tpu.dot_dimension_numbers<[1], [0], [0], [1], [0, 0, 1, 1], [], []>} : vector<4x15xf32>, vector<15x64xf32>, vector<4x64xf32> -> vector<4x64xf32>
    %c0_61 = arith.constant 0 : index
    %c0_62 = arith.constant 0 : index
    %c0_63 = arith.constant 0 : index
    %84 = vector.load %arg8[%c0_61, %c0_62, %c0_63] : memref<1x4x64xf32, #tpu.memory_space<vmem>>, vector<1x4x64xf32>
    %85 = vector.shape_cast %84 : vector<1x4x64xf32> to vector<4x64xf32>
    %86 = vector.shape_cast %83 : vector<4x64xf32> to vector<1x4x64xf32>
    tpu.vector_store %arg8[%c0_61, %c0_62, %c0_63], %86 {strides = array<i32>} : memref<1x4x64xf32, #tpu.memory_space<vmem>>, vector<1x4x64xf32>,
    return
  }
  func.func @transform_0(%arg0: i32) -> (i32, i32, i32) {
    %c0_i32 = arith.constant 0 : i32
    %c0_i32_0 = arith.constant 0 : i32
    %c0_i32_1 = arith.constant 0 : i32
    return %arg0, %c0_i32, %c0_i32_0 : i32, i32, i32
  }
  func.func @transform_1(%arg0: i32) -> (i32, i32, i32) {
    %c0_i32 = arith.constant 0 : i32
    %c0_i32_0 = arith.constant 0 : i32
    %c0_i32_1 = arith.constant 0 : i32
    %c0_i32_2 = arith.constant 0 : i32
    return %c0_i32, %c0_i32_0, %c0_i32_1 : i32, i32, i32
  }
  func.func @transform_2(%arg0: i32) -> (i32, i32) {
    %c0_i32 = arith.constant 0 : i32
    %c0_i32_0 = arith.constant 0 : i32
    %c0_i32_1 = arith.constant 0 : i32
    return %c0_i32, %c0_i32_0 : i32, i32
  }
  func.func @transform_3(%arg0: i32) -> (i32, i32) {
    %c0_i32 = arith.constant 0 : i32
    %c0_i32_0 = arith.constant 0 : i32
    %c0_i32_1 = arith.constant 0 : i32
    return %c0_i32, %c0_i32_0 : i32, i32
  }
  func.func @transform_4(%arg0: i32) -> (i32, i32) {
    %c0_i32 = arith.constant 0 : i32
    %c0_i32_0 = arith.constant 0 : i32
    %c0_i32_1 = arith.constant 0 : i32
    return %c0_i32, %c0_i32_0 : i32, i32
  }
  func.func @transform_5(%arg0: i32) -> (i32, i32) {
    %c0_i32 = arith.constant 0 : i32
    %c0_i32_0 = arith.constant 0 : i32
    %c0_i32_1 = arith.constant 0 : i32
    return %c0_i32, %c0_i32_0 : i32, i32
  }
  func.func @transform_6(%arg0: i32) -> (i32, i32) {
    %c0_i32 = arith.constant 0 : i32
    %c0_i32_0 = arith.constant 0 : i32
    %c0_i32_1 = arith.constant 0 : i32
    return %c0_i32, %c0_i32_0 : i32, i32
  }
  func.func @transform_7(%arg0: i32) -> (i32, i32, i32) {
    %c0_i32 = arith.constant 0 : i32
    %c0_i32_0 = arith.constant 0 : i32
    %c0_i32_1 = arith.constant 0 : i32
    return %arg0, %c0_i32, %c0_i32_0 : i32, i32, i32
  }
}

module attributes {stable_mosaic.version = 11 : i64} {
  func.func @_conv_bn_relu_gap_kernel(%arg0: i32, %arg1: memref<1x24x128xf32, #tpu.memory_space<vmem>>, %arg2: memref<9x128x128xbf16, #tpu.memory_space<vmem>>, %arg3: memref<1x128xf32, #tpu.memory_space<vmem>>, %arg4: memref<1x128xf32, #tpu.memory_space<vmem>>, %arg5: memref<1x8xf32, #tpu.memory_space<vmem>>, %arg6: memref<128x64xf32, #tpu.memory_space<vmem>>, %arg7: memref<1x1x64xf32, #tpu.memory_space<vmem>>) attributes {dimension_semantics = [#tpu.dimension_semantics<parallel>], iteration_bounds = array<i64: 2>, scalar_prefetch = 0 : i64, scratch_operands = 0 : i64, tpu.core_type = #tpu.core_type<tc>, window_params = [{transform_indices = @transform_0, window_bounds = array<i64: 1, 24, 128>}, {pipeline_mode = #tpu.pipeline_mode<synchronous>, transform_indices = @transform_1, window_bounds = array<i64: 9, 128, 128>}, {pipeline_mode = #tpu.pipeline_mode<synchronous>, transform_indices = @transform_2, window_bounds = array<i64: 1, 128>}, {pipeline_mode = #tpu.pipeline_mode<synchronous>, transform_indices = @transform_3, window_bounds = array<i64: 1, 128>}, {pipeline_mode = #tpu.pipeline_mode<synchronous>, transform_indices = @transform_4, window_bounds = array<i64: 1, 8>}, {pipeline_mode = #tpu.pipeline_mode<synchronous>, transform_indices = @transform_5, window_bounds = array<i64: 128, 64>}, {transform_indices = @transform_6, window_bounds = array<i64: 1, 1, 64>}]} {
    %c0 = arith.constant 0 : index
    %c3 = arith.constant 3 : index
    %c0_0 = arith.constant 0 : index
    %0 = vector.load %arg1[%c0, %c3, %c0_0] : memref<1x24x128xf32, #tpu.memory_space<vmem>>, vector<1x8x128xf32>
    %1 = vector.shape_cast %0 : vector<1x8x128xf32> to vector<8x128xf32>
    %2 = arith.truncf %1 : vector<8x128xf32> to vector<8x128xbf16>
    %c0_1 = arith.constant 0 : index
    %c0_2 = arith.constant 0 : index
    %c0_3 = arith.constant 0 : index
    %3 = vector.load %arg2[%c0_1, %c0_2, %c0_3] : memref<9x128x128xbf16, #tpu.memory_space<vmem>>, vector<1x128x128xbf16>
    %4 = vector.shape_cast %3 : vector<1x128x128xbf16> to vector<128x128xbf16>
    %cst = arith.constant dense<0.000000e+00> : vector<8x128xf32>
    %5 = tpu.matmul %2, %4, %cst {dimension_numbers = #tpu.dot_dimension_numbers<[1], [0], [0], [1], [0, 0, 1, 1], [], []>} : vector<8x128xbf16>, vector<128x128xbf16>, vector<8x128xf32> -> vector<8x128xf32>
    %c0_4 = arith.constant 0 : index
    %c4 = arith.constant 4 : index
    %c0_5 = arith.constant 0 : index
    %6 = vector.load %arg1[%c0_4, %c4, %c0_5] : memref<1x24x128xf32, #tpu.memory_space<vmem>>, vector<1x8x128xf32>
    %7 = vector.shape_cast %6 : vector<1x8x128xf32> to vector<8x128xf32>
    %8 = arith.truncf %7 : vector<8x128xf32> to vector<8x128xbf16>
    %c1 = arith.constant 1 : index
    %c0_6 = arith.constant 0 : index
    %c0_7 = arith.constant 0 : index
    %9 = vector.load %arg2[%c1, %c0_6, %c0_7] : memref<9x128x128xbf16, #tpu.memory_space<vmem>>, vector<1x128x128xbf16>
    %10 = vector.shape_cast %9 : vector<1x128x128xbf16> to vector<128x128xbf16>
    %cst_8 = arith.constant dense<0.000000e+00> : vector<8x128xf32>
    %11 = tpu.matmul %8, %10, %cst_8 {dimension_numbers = #tpu.dot_dimension_numbers<[1], [0], [0], [1], [0, 0, 1, 1], [], []>} : vector<8x128xbf16>, vector<128x128xbf16>, vector<8x128xf32> -> vector<8x128xf32>
    %12 = arith.addf %5, %11 : vector<8x128xf32>
    %c0_9 = arith.constant 0 : index
    %c5 = arith.constant 5 : index
    %c0_10 = arith.constant 0 : index
    %13 = vector.load %arg1[%c0_9, %c5, %c0_10] : memref<1x24x128xf32, #tpu.memory_space<vmem>>, vector<1x8x128xf32>
    %14 = vector.shape_cast %13 : vector<1x8x128xf32> to vector<8x128xf32>
    %15 = arith.truncf %14 : vector<8x128xf32> to vector<8x128xbf16>
    %c2 = arith.constant 2 : index
    %c0_11 = arith.constant 0 : index
    %c0_12 = arith.constant 0 : index
    %16 = vector.load %arg2[%c2, %c0_11, %c0_12] : memref<9x128x128xbf16, #tpu.memory_space<vmem>>, vector<1x128x128xbf16>
    %17 = vector.shape_cast %16 : vector<1x128x128xbf16> to vector<128x128xbf16>
    %cst_13 = arith.constant dense<0.000000e+00> : vector<8x128xf32>
    %18 = tpu.matmul %15, %17, %cst_13 {dimension_numbers = #tpu.dot_dimension_numbers<[1], [0], [0], [1], [0, 0, 1, 1], [], []>} : vector<8x128xbf16>, vector<128x128xbf16>, vector<8x128xf32> -> vector<8x128xf32>
    %19 = arith.addf %12, %18 : vector<8x128xf32>
    %c0_14 = arith.constant 0 : index
    %c7 = arith.constant 7 : index
    %c0_15 = arith.constant 0 : index
    %20 = vector.load %arg1[%c0_14, %c7, %c0_15] : memref<1x24x128xf32, #tpu.memory_space<vmem>>, vector<1x8x128xf32>
    %21 = vector.shape_cast %20 : vector<1x8x128xf32> to vector<8x128xf32>
    %22 = arith.truncf %21 : vector<8x128xf32> to vector<8x128xbf16>
    %c3_16 = arith.constant 3 : index
    %c0_17 = arith.constant 0 : index
    %c0_18 = arith.constant 0 : index
    %23 = vector.load %arg2[%c3_16, %c0_17, %c0_18] : memref<9x128x128xbf16, #tpu.memory_space<vmem>>, vector<1x128x128xbf16>
    %24 = vector.shape_cast %23 : vector<1x128x128xbf16> to vector<128x128xbf16>
    %cst_19 = arith.constant dense<0.000000e+00> : vector<8x128xf32>
    %25 = tpu.matmul %22, %24, %cst_19 {dimension_numbers = #tpu.dot_dimension_numbers<[1], [0], [0], [1], [0, 0, 1, 1], [], []>} : vector<8x128xbf16>, vector<128x128xbf16>, vector<8x128xf32> -> vector<8x128xf32>
    %26 = arith.addf %19, %25 : vector<8x128xf32>
    %c0_20 = arith.constant 0 : index
    %c8 = arith.constant 8 : index
    %c0_21 = arith.constant 0 : index
    %27 = vector.load %arg1[%c0_20, %c8, %c0_21] : memref<1x24x128xf32, #tpu.memory_space<vmem>>, vector<1x8x128xf32>
    %28 = vector.shape_cast %27 : vector<1x8x128xf32> to vector<8x128xf32>
    %29 = arith.truncf %28 : vector<8x128xf32> to vector<8x128xbf16>
    %c4_22 = arith.constant 4 : index
    %c0_23 = arith.constant 0 : index
    %c0_24 = arith.constant 0 : index
    %30 = vector.load %arg2[%c4_22, %c0_23, %c0_24] : memref<9x128x128xbf16, #tpu.memory_space<vmem>>, vector<1x128x128xbf16>
    %31 = vector.shape_cast %30 : vector<1x128x128xbf16> to vector<128x128xbf16>
    %cst_25 = arith.constant dense<0.000000e+00> : vector<8x128xf32>
    %32 = tpu.matmul %29, %31, %cst_25 {dimension_numbers = #tpu.dot_dimension_numbers<[1], [0], [0], [1], [0, 0, 1, 1], [], []>} : vector<8x128xbf16>, vector<128x128xbf16>, vector<8x128xf32> -> vector<8x128xf32>
    %33 = arith.addf %26, %32 : vector<8x128xf32>
    %c0_26 = arith.constant 0 : index
    %c9 = arith.constant 9 : index
    %c0_27 = arith.constant 0 : index
    %34 = vector.load %arg1[%c0_26, %c9, %c0_27] : memref<1x24x128xf32, #tpu.memory_space<vmem>>, vector<1x8x128xf32>
    %35 = vector.shape_cast %34 : vector<1x8x128xf32> to vector<8x128xf32>
    %36 = arith.truncf %35 : vector<8x128xf32> to vector<8x128xbf16>
    %c5_28 = arith.constant 5 : index
    %c0_29 = arith.constant 0 : index
    %c0_30 = arith.constant 0 : index
    %37 = vector.load %arg2[%c5_28, %c0_29, %c0_30] : memref<9x128x128xbf16, #tpu.memory_space<vmem>>, vector<1x128x128xbf16>
    %38 = vector.shape_cast %37 : vector<1x128x128xbf16> to vector<128x128xbf16>
    %cst_31 = arith.constant dense<0.000000e+00> : vector<8x128xf32>
    %39 = tpu.matmul %36, %38, %cst_31 {dimension_numbers = #tpu.dot_dimension_numbers<[1], [0], [0], [1], [0, 0, 1, 1], [], []>} : vector<8x128xbf16>, vector<128x128xbf16>, vector<8x128xf32> -> vector<8x128xf32>
    %40 = arith.addf %33, %39 : vector<8x128xf32>
    %c0_32 = arith.constant 0 : index
    %c11 = arith.constant 11 : index
    %c0_33 = arith.constant 0 : index
    %41 = vector.load %arg1[%c0_32, %c11, %c0_33] : memref<1x24x128xf32, #tpu.memory_space<vmem>>, vector<1x8x128xf32>
    %42 = vector.shape_cast %41 : vector<1x8x128xf32> to vector<8x128xf32>
    %43 = arith.truncf %42 : vector<8x128xf32> to vector<8x128xbf16>
    %c6 = arith.constant 6 : index
    %c0_34 = arith.constant 0 : index
    %c0_35 = arith.constant 0 : index
    %44 = vector.load %arg2[%c6, %c0_34, %c0_35] : memref<9x128x128xbf16, #tpu.memory_space<vmem>>, vector<1x128x128xbf16>
    %45 = vector.shape_cast %44 : vector<1x128x128xbf16> to vector<128x128xbf16>
    %cst_36 = arith.constant dense<0.000000e+00> : vector<8x128xf32>
    %46 = tpu.matmul %43, %45, %cst_36 {dimension_numbers = #tpu.dot_dimension_numbers<[1], [0], [0], [1], [0, 0, 1, 1], [], []>} : vector<8x128xbf16>, vector<128x128xbf16>, vector<8x128xf32> -> vector<8x128xf32>
    %47 = arith.addf %40, %46 : vector<8x128xf32>
    %c0_37 = arith.constant 0 : index
    %c12 = arith.constant 12 : index
    %c0_38 = arith.constant 0 : index
    %48 = vector.load %arg1[%c0_37, %c12, %c0_38] : memref<1x24x128xf32, #tpu.memory_space<vmem>>, vector<1x8x128xf32>
    %49 = vector.shape_cast %48 : vector<1x8x128xf32> to vector<8x128xf32>
    %50 = arith.truncf %49 : vector<8x128xf32> to vector<8x128xbf16>
    %c7_39 = arith.constant 7 : index
    %c0_40 = arith.constant 0 : index
    %c0_41 = arith.constant 0 : index
    %51 = vector.load %arg2[%c7_39, %c0_40, %c0_41] : memref<9x128x128xbf16, #tpu.memory_space<vmem>>, vector<1x128x128xbf16>
    %52 = vector.shape_cast %51 : vector<1x128x128xbf16> to vector<128x128xbf16>
    %cst_42 = arith.constant dense<0.000000e+00> : vector<8x128xf32>
    %53 = tpu.matmul %50, %52, %cst_42 {dimension_numbers = #tpu.dot_dimension_numbers<[1], [0], [0], [1], [0, 0, 1, 1], [], []>} : vector<8x128xbf16>, vector<128x128xbf16>, vector<8x128xf32> -> vector<8x128xf32>
    %54 = arith.addf %47, %53 : vector<8x128xf32>
    %c0_43 = arith.constant 0 : index
    %c13 = arith.constant 13 : index
    %c0_44 = arith.constant 0 : index
    %55 = vector.load %arg1[%c0_43, %c13, %c0_44] : memref<1x24x128xf32, #tpu.memory_space<vmem>>, vector<1x8x128xf32>
    %56 = vector.shape_cast %55 : vector<1x8x128xf32> to vector<8x128xf32>
    %57 = arith.truncf %56 : vector<8x128xf32> to vector<8x128xbf16>
    %c8_45 = arith.constant 8 : index
    %c0_46 = arith.constant 0 : index
    %c0_47 = arith.constant 0 : index
    %58 = vector.load %arg2[%c8_45, %c0_46, %c0_47] : memref<9x128x128xbf16, #tpu.memory_space<vmem>>, vector<1x128x128xbf16>
    %59 = vector.shape_cast %58 : vector<1x128x128xbf16> to vector<128x128xbf16>
    %cst_48 = arith.constant dense<0.000000e+00> : vector<8x128xf32>
    %60 = tpu.matmul %57, %59, %cst_48 {dimension_numbers = #tpu.dot_dimension_numbers<[1], [0], [0], [1], [0, 0, 1, 1], [], []>} : vector<8x128xbf16>, vector<128x128xbf16>, vector<8x128xf32> -> vector<8x128xf32>
    %61 = arith.addf %54, %60 : vector<8x128xf32>
    %c0_49 = arith.constant 0 : index
    %c0_50 = arith.constant 0 : index
    %62 = vector.load %arg3[%c0_49, %c0_50] : memref<1x128xf32, #tpu.memory_space<vmem>>, vector<1x128xf32>
    %63 = vector.broadcast %62 : vector<1x128xf32> to vector<8x128xf32>
    %64 = arith.mulf %61, %63 : vector<8x128xf32>
    %c0_51 = arith.constant 0 : index
    %c0_52 = arith.constant 0 : index
    %65 = vector.load %arg4[%c0_51, %c0_52] : memref<1x128xf32, #tpu.memory_space<vmem>>, vector<1x128xf32>
    %66 = vector.broadcast %65 : vector<1x128xf32> to vector<8x128xf32>
    %67 = arith.addf %64, %66 : vector<8x128xf32>
    %cst_53 = arith.constant 0.000000e+00 : f32
    %68 = vector.broadcast %cst_53 : f32 to vector<8x128xf32>
    %69 = arith.maximumf %67, %68 : vector<8x128xf32>
    %c0_54 = arith.constant 0 : index
    %c0_55 = arith.constant 0 : index
    %70 = vector.load %arg5[%c0_54, %c0_55] : memref<1x8xf32, #tpu.memory_space<vmem>>, vector<1x8xf32>
    %cst_56 = arith.constant dense<0.000000e+00> : vector<1x128xf32>
    %71 = tpu.matmul %70, %69, %cst_56 {dimension_numbers = #tpu.dot_dimension_numbers<[1], [0], [0], [1], [0, 0, 1, 1], [], []>} : vector<1x8xf32>, vector<8x128xf32>, vector<1x128xf32> -> vector<1x128xf32>
    %c0_57 = arith.constant 0 : index
    %c0_58 = arith.constant 0 : index
    %72 = vector.load %arg6[%c0_57, %c0_58] : memref<128x64xf32, #tpu.memory_space<vmem>>, vector<128x64xf32>
    %cst_59 = arith.constant dense<0.000000e+00> : vector<1x64xf32>
    %73 = tpu.matmul %71, %72, %cst_59 {dimension_numbers = #tpu.dot_dimension_numbers<[1], [0], [0], [1], [0, 0, 1, 1], [], []>} : vector<1x128xf32>, vector<128x64xf32>, vector<1x64xf32> -> vector<1x64xf32>
    %c0_60 = arith.constant 0 : index
    %c0_61 = arith.constant 0 : index
    %c0_62 = arith.constant 0 : index
    %74 = vector.load %arg7[%c0_60, %c0_61, %c0_62] : memref<1x1x64xf32, #tpu.memory_space<vmem>>, vector<1x1x64xf32>
    %75 = vector.shape_cast %74 : vector<1x1x64xf32> to vector<1x64xf32>
    %76 = vector.shape_cast %73 : vector<1x64xf32> to vector<1x1x64xf32>
    tpu.vector_store %arg7[%c0_60, %c0_61, %c0_62], %76 {strides = array<i32>} : memref<1x1x64xf32, #tpu.memory_space<vmem>>, vector<1x1x64xf32>,
    return
  }
  func.func @transform_0(%arg0: i32) -> (i32, i32, i32) {
    %c0_i32 = arith.constant 0 : i32
    %c0_i32_0 = arith.constant 0 : i32
    %c0_i32_1 = arith.constant 0 : i32
    return %arg0, %c0_i32, %c0_i32_0 : i32, i32, i32
  }
  func.func @transform_1(%arg0: i32) -> (i32, i32, i32) {
    %c0_i32 = arith.constant 0 : i32
    %c0_i32_0 = arith.constant 0 : i32
    %c0_i32_1 = arith.constant 0 : i32
    %c0_i32_2 = arith.constant 0 : i32
    return %c0_i32, %c0_i32_0, %c0_i32_1 : i32, i32, i32
  }
  func.func @transform_2(%arg0: i32) -> (i32, i32) {
    %c0_i32 = arith.constant 0 : i32
    %c0_i32_0 = arith.constant 0 : i32
    %c0_i32_1 = arith.constant 0 : i32
    return %c0_i32, %c0_i32_0 : i32, i32
  }
  func.func @transform_3(%arg0: i32) -> (i32, i32) {
    %c0_i32 = arith.constant 0 : i32
    %c0_i32_0 = arith.constant 0 : i32
    %c0_i32_1 = arith.constant 0 : i32
    return %c0_i32, %c0_i32_0 : i32, i32
  }
  func.func @transform_4(%arg0: i32) -> (i32, i32) {
    %c0_i32 = arith.constant 0 : i32
    %c0_i32_0 = arith.constant 0 : i32
    %c0_i32_1 = arith.constant 0 : i32
    return %c0_i32, %c0_i32_0 : i32, i32
  }
  func.func @transform_5(%arg0: i32) -> (i32, i32) {
    %c0_i32 = arith.constant 0 : i32
    %c0_i32_0 = arith.constant 0 : i32
    %c0_i32_1 = arith.constant 0 : i32
    return %c0_i32, %c0_i32_0 : i32, i32
  }
  func.func @transform_6(%arg0: i32) -> (i32, i32, i32) {
    %c0_i32 = arith.constant 0 : i32
    %c0_i32_0 = arith.constant 0 : i32
    %c0_i32_1 = arith.constant 0 : i32
    return %arg0, %c0_i32, %c0_i32_0 : i32, i32, i32
  }
}

module attributes {stable_mosaic.version = 11 : i64} {
  func.func @_fc_head_kernel(%arg0: memref<2x64xf32, #tpu.memory_space<vmem>>, %arg1: memref<64x256xf32, #tpu.memory_space<vmem>>, %arg2: memref<1x256xf32, #tpu.memory_space<vmem>>, %arg3: memref<256x1xf32, #tpu.memory_space<vmem>>, %arg4: memref<1x1xf32, #tpu.memory_space<vmem>>, %arg5: memref<2x1xf32, #tpu.memory_space<vmem>>) attributes {dimension_semantics = [], scalar_prefetch = 0 : i64, scratch_operands = 0 : i64, tpu.core_type = #tpu.core_type<tc>} {
    %c0 = arith.constant 0 : index
    %c0_0 = arith.constant 0 : index
    %0 = vector.load %arg0[%c0, %c0_0] : memref<2x64xf32, #tpu.memory_space<vmem>>, vector<2x64xf32>
    %c0_1 = arith.constant 0 : index
    %c0_2 = arith.constant 0 : index
    %1 = vector.load %arg1[%c0_1, %c0_2] : memref<64x256xf32, #tpu.memory_space<vmem>>, vector<64x256xf32>
    %cst = arith.constant dense<0.000000e+00> : vector<2x256xf32>
    %2 = tpu.matmul %0, %1, %cst {dimension_numbers = #tpu.dot_dimension_numbers<[1], [0], [0], [1], [0, 0, 1, 1], [], []>} : vector<2x64xf32>, vector<64x256xf32>, vector<2x256xf32> -> vector<2x256xf32>
    %c0_3 = arith.constant 0 : index
    %c0_4 = arith.constant 0 : index
    %3 = vector.load %arg2[%c0_3, %c0_4] : memref<1x256xf32, #tpu.memory_space<vmem>>, vector<1x256xf32>
    %4 = vector.broadcast %3 : vector<1x256xf32> to vector<2x256xf32>
    %5 = arith.addf %2, %4 : vector<2x256xf32>
    %cst_5 = arith.constant 0.000000e+00 : f32
    %6 = vector.broadcast %cst_5 : f32 to vector<2x256xf32>
    %7 = arith.maximumf %5, %6 : vector<2x256xf32>
    %c0_6 = arith.constant 0 : index
    %c0_7 = arith.constant 0 : index
    %8 = vector.load %arg3[%c0_6, %c0_7] : memref<256x1xf32, #tpu.memory_space<vmem>>, vector<256x1xf32>
    %cst_8 = arith.constant dense<0.000000e+00> : vector<2x1xf32>
    %9 = tpu.matmul %7, %8, %cst_8 {dimension_numbers = #tpu.dot_dimension_numbers<[1], [0], [0], [1], [0, 0, 1, 1], [], []>} : vector<2x256xf32>, vector<256x1xf32>, vector<2x1xf32> -> vector<2x1xf32>
    %c0_9 = arith.constant 0 : index
    %c0_10 = arith.constant 0 : index
    %10 = vector.load %arg4[%c0_9, %c0_10] : memref<1x1xf32, #tpu.memory_space<vmem>>, vector<1x1xf32>
    %11 = vector.broadcast %10 : vector<1x1xf32> to vector<2x1xf32>
    %12 = arith.addf %9, %11 : vector<2x1xf32>
    %c0_11 = arith.constant 0 : index
    %c0_12 = arith.constant 0 : index
    %13 = vector.load %arg5[%c0_11, %c0_12] : memref<2x1xf32, #tpu.memory_space<vmem>>, vector<2x1xf32>
    tpu.vector_store %arg5[%c0_11, %c0_12], %12 {strides = array<i32>} : memref<2x1xf32, #tpu.memory_space<vmem>>, vector<2x1xf32>,
    return
  }
}

</mosaic_0001>

<bundles_post_ra>
// kernel: enhanced_cnn_forward.4
= control target key start
LH: loop header
LB: loop body
LE: loop exit
PB: predicated region body
PF: predicated region fallthrough
CT: control target
= control target key end

     0   :  { %s2995_s24 = smov 0   ;;  %s3777_s0 = inlined_call_operand.vmem [shape: f32[2,120,60], index: 0, kind: input, shape index: {}]   ;;  %s3778_s1 = inlined_call_operand.vmem [shape: bf16[9,60,128], index: 1, kind: input, shape index: {}]   ;;  %s3779_s2 = inlined_call_operand.vmem [shape: f32[1,128], index: 2, kind: input, shape index: {}]   ;;  %s3780_s3 = inlined_call_operand.vmem [shape: f32[1,128], index: 3, kind: input, shape index: {}]   ;;  %s3781_s4 = inlined_call_operand.vmem [shape: f32[128,64], index: 4, kind: input, shape index: {}]   ;;  %s3782_s5 = inlined_call_operand.vmem [shape: f32[128,64], index: 5, kind: input, shape index: {}]   ;;  %s3783_s6 = inlined_call_operand.vmem [shape: f32[16,67], index: 6, kind: input, shape index: {}]   ;;  %s3784_s7 = inlined_call_operand.vmem [shape: f32[2,16,64], index: 7, kind: output, shape index: {}]  }
   0x1 LB: > { %s2196_s25 = sadd.s32 4294967295, %s2951_s24   ;;  %p2200_p0 = scmp.ge.s32.totalorder %s2951_s24, 1  ;;  %s2951_s24 = sphi %s2995_s24, %s17_s24  }
   0x2   : > { %p237_p1 = scmp.lt.s32.totalorder %s2951_s24, 3 }
   0x4   : > { %p238_p2 = pnand %p2200_p0, %p237_p1 }
   0x5   : > { %p269_p3 = scmp.lt.s32.totalorder (!%p238_p2), %s2196_s25, 1 }
   0x6   : > { %241 = sbr.rel (%p238_p2) target bundleno = 906 (0x38a), region = 48 }
   0xb   : > { %vm366_vm0 = vcmask 1045504   ;;  %v2953_v0 = vmov 0.0   ;;  %v2909_v1 = vld [vmem:[%s3778_s1 + $0x38] sm:$0x3f]   ;;  %v2911_v5 = vld [vmem:[%s3778_s1 + $0x30] sm:$0xff]   ;;  %vm2954_vm1 = vmmov 0  }
   0xc   : > { %2499 = vmatprep.subr.bf16.mxu0 %v2953_v0  ;;  %2527 = vmatprep.subr.bf16.mxu1 %v2953_v0  ;;  %v2910_v2 = vld [vmem:[%s3778_s1 + $0x18] sm:$0x3f]   ;;  %v368_v3 = vsel %vm366_vm0, %v2909_v1, 0  ;;  %v2912_v6 = vld [vmem:[%s3778_s1 + $0x10] sm:$0xff]   ;;  %v2913_v7 = vld [vmem:[%s3778_s1 + $0x28] sm:$0xff]   ;;  %s3786_s25 = smov (!%p269_p3, %s2196_s25), 1 }
   0xd   : > { %2500 = vmatpush3.bf16.msra.mxu0 %v368_v3  ;;  %v482_v4 = vsel %vm366_vm0, %v2910_v2, 0  ;;  %2507 = vmatprep.mubr.msk.bf16.mxu0 %vm2954_vm1, %v2953_v0  ;;  %v2914_v8 = vld [vmem:[%s3778_s1 + $0x8] sm:$0xff]   ;;  %s2898_s15 = smul.u32 120, %s3786_s25  ;;  %v2915_v9 = vld [vmem:[%s3778_s1 + $0x20] sm:$0xff]   ;;  %v2917_v15 = vld [vmem:[%s3778_s1 + $0x58] sm:$0x3f]  }
   0xe   : > { %2528 = vmatpush3.bf16.msra.mxu1 %v482_v4  ;;  %2501 = vmatprep.subr.bf16.mxu0 %v2953_v0  ;;  %v2916_v10 = vld [vmem:[%s3778_s1] sm:$0xff]   ;;  %v2918_v17 = vld [vmem:[%s3778_s1 + $0x78] sm:$0x3f]   ;;  %vm350_vm2 = vcmask 490496   ;;  %v620_v19 = vsel %vm366_vm0, %v2917_v15, 0  ;;  %v2919_v23 = vld [vmem:[%s3778_s1 + $0x50] sm:$0xff]  }
   0xf   : > { %2529 = vmatprep.subr.bf16.mxu1 %v2953_v0  ;;  %2535 = vmatprep.mubr.msk.bf16.mxu1 %vm2954_vm1, %v2953_v0  ;;  %s3045_s22 = scalar_lea.vmem %s3777_s0, %s2898_s15  ;;  %v768_v22 = vsel %vm366_vm0, %v2918_v17, 0  ;;  %v2920_v26 = vld [vmem:[%s3778_s1 + $0x70] sm:$0xff]   ;;  %v2921_v29 = vld [vmem:[%s3778_s1 + $0x48] sm:$0xff]   ;;  %v2923_v35 = vld [vmem:[%s3778_s1 + $0x40] sm:$0xff]   ;;  %vm1646_vm3 = vcmask 1046528   ;;  %vm1718_vm4 = vcmask 1044480  }
  0x10   : > { %v303_v11 = vld [vmem:[%s3045_s22 + $0xa] sm:$0xff]  ;;  %v304_v12 = vld [vmem:[%s3045_s22 + $0x12] sm:$0xff]  ;;  %v305_v20 = vld [vmem:[%s3045_s22 + $0x1a] sm:$0xff]  ;;  %vm2052_vm5 = vcmask 547840   ;;  %vm2059_vm6 = vcmask 1042432   ;;  %s2356_s29 = sshll.u32 %s3786_s25, 4 }
  0x11   : > { %2502 = vmatpush3.bf16.msra.mxu0 %v2911_v5  ;;  %v280_v13 = vld [vmem:[%s3045_s22 + $0x9] sm:$0xff]  ;;  %v281_v14 = vld [vmem:[%s3045_s22 + $0x11] sm:$0xff]  ;;  %v313_v16 = vpack.c.bf16 %v304_v12, %v303_v11  ;;  %v282_v24 = vld [vmem:[%s3045_s22 + $0x19] sm:$0xff]  ;;  %s278_s9 = scalar_lea.vmem %s3784_s7, %s2356_s29  ;;  %vm2138_vm7 = vcmask 523264  }
  0x12   : > { %2530 = vmatpush3.bf16.msra.mxu1 %v2912_v6  ;;  %2503 = vmatprep.subr.bf16.mxu0 %v2953_v0  ;;  %v290_v18 = vpack.c.bf16 %v281_v14, %v280_v13  ;;  %v306_v21 = vld [vmem:[%s3045_s22 + $0x22] sm:$0xff]  ;;  %v307_v30 = vld [vmem:[%s3045_s22 + $0x2a] sm:$0xff]  ;;  %v308_v31 = vld [vmem:[%s3045_s22 + $0x32] sm:$0xff] }
  0x13   : > { %2531 = vmatprep.subr.bf16.mxu1 %v2953_v0  ;;  %v283_v25 = vld [vmem:[%s3045_s22 + $0x21] sm:$0xff]  ;;  %v314_v27 = vpack.c.bf16 %v306_v21, %v305_v20  ;;  %v284_v33 = vld [vmem:[%s3045_s22 + $0x29] sm:$0xff]  ;;  %v285_v34 = vld [vmem:[%s3045_s22 + $0x31] sm:$0xff]  ;;  %v315_v37 = vpack.c.bf16 %v308_v31, %v307_v30 }
  0x14   : > { %v291_v28 = vpack.c.bf16 %v283_v25, %v282_v24  ;;  %v2922_v32 = vld [vmem:[%s3778_s1 + $0x68] sm:$0xff]   ;;  %v2924_v36 = vld [vmem:[%s3778_s1 + $0x60] sm:$0xff]   ;;  %v292_v38 = vpack.c.bf16 %v285_v34, %v284_v33  ;;  %v312_v46 = vld [vmem:[%s3045_s22 + $0x52] sm:$0xff] }
  0x15   : > { %2504 = vmatpush3.bf16.msra.mxu0 %v2913_v7  ;;  %v309_v39 = vld [vmem:[%s3045_s22 + $0x3a] sm:$0xff]  ;;  %v310_v40 = vld [vmem:[%s3045_s22 + $0x42] sm:$0xff]  ;;  %v311_v45 = vld [vmem:[%s3045_s22 + $0x4a] sm:$0xff] }
  0x16   : > { %2532 = vmatpush3.bf16.msra.mxu1 %v2914_v8  ;;  %2505 = vmatprep.subr.bf16.mxu0 %v2953_v0  ;;  %v286_v41 = vld [vmem:[%s3045_s22 + $0x39] sm:$0xff]  ;;  %v287_v42 = vld [vmem:[%s3045_s22 + $0x41] sm:$0xff]  ;;  %v316_v43 = vpack.c.bf16 %v310_v40, %v309_v39  ;;  %v288_v47 = vld [vmem:[%s3045_s22 + $0x49] sm:$0xff]  ;;  %v317_v49 = vpack.c.bf16 %v312_v46, %v311_v45 }
  0x17   : > { %2533 = vmatprep.subr.bf16.mxu1 %v2953_v0  ;;  %v293_v44 = vpack.c.bf16 %v287_v42, %v286_v41  ;;  %v289_v48 = vld [vmem:[%s3045_s22 + $0x51] sm:$0xff]  ;;  %v706_v53 = vld [vmem:[%s3045_s22 + $0x1b] sm:$0xff]  ;;  %v560_v60 = vld [vmem:[%s3045_s22 + $0x23] sm:$0xff] }
  0x18   : > { %v294_v50 = vpack.c.bf16 %v289_v48, %v288_v47  ;;  %v557_v51 = vld [vmem:[%s3045_s22 + $0xb] sm:$0xff]  ;;  %v558_v52 = vld [vmem:[%s3045_s22 + $0x13] sm:$0xff]  ;;  %v568_v1 = vpack.c.bf16 %v560_v60, %v706_v53  ;;  %v710_v6 = vld [vmem:[%s3045_s22 + $0x3b] sm:$0xff] }
  0x19   : > { %2506 = vmatpush3.bf16.msra.mxu0 %v2915_v9  ;;  %v2925_v54 = vld [vmem:[%s3778_s1 + $0x98] sm:$0x3f]   ;;  %v567_v55 = vpack.c.bf16 %v558_v52, %v557_v51  ;;  %v715_v57 = vpack.c.bf16 %v706_v53, %v558_v52  ;;  %v708_v61 = vld [vmem:[%s3045_s22 + $0x2b] sm:$0xff]  ;;  %v2931_v7 = vld [vmem:[%s3778_s1 + $0x80] sm:$0xff]  }
  0x1a   : > { %2534 = vmatpush3.bf16.msra.mxu1 %v2916_v10  ;;  %2555 = vmatprep.subr.bf16.mxu0 %v2953_v0  ;;  %v2926_v56 = vld [vmem:[%s3778_s1 + $0xb8] sm:$0x3f]   ;;  %v916_v58 = vsel %vm366_vm0, %v2925_v54, 0  ;;  %v2927_v62 = vld [vmem:[%s3778_s1 + $0x90] sm:$0xff]   ;;  %v716_v2 = vpack.c.bf16 %v708_v61, %v560_v60  ;;  %v2929_v3 = vld [vmem:[%s3778_s1 + $0x88] sm:$0xff]  }
  0x1b   : > { %2583 = vmatprep.subr.bf16.mxu1 %v2953_v0  ;;  %v1064_v59 = vsel %vm366_vm0, %v2926_v56, 0  ;;  %v2928_v63 = vld [vmem:[%s3778_s1 + $0xb0] sm:$0xff]   ;;  %v2930_v4 = vld [vmem:[%s3778_s1 + $0xa8] sm:$0xff]   ;;  %v2932_v8 = vld [vmem:[%s3778_s1 + $0xa0] sm:$0xff]  }
  0x1c   : > { %2508 = vmatmul.mubr.msk.bf16.vlgmr.msra.gmra.mxu0 %vm350_vm2, %v313_v16  ;;  %v562_v5 = vld [vmem:[%s3045_s22 + $0x33] sm:$0xff]  ;;  %v564_v11 = vld [vmem:[%s3045_s22 + $0x43] sm:$0xff]  ;;  %v712_v12 = vld [vmem:[%s3045_s22 + $0x4b] sm:$0xff] }
  0x1d   : > { %2536 = vmatmul.mubr.msk.bf16.vlgmr.msra.gmra.mxu1 %vm350_vm2, %v290_v18  ;;  %2511 = vmatprep.mubr.msk.bf16.mxu0 %vm2954_vm1, %v2953_v0  ;;  %v569_v9 = vpack.c.bf16 %v562_v5, %v708_v61  ;;  %v717_v10 = vpack.c.bf16 %v710_v6, %v562_v5  ;;  %v570_v13 = vpack.c.bf16 %v564_v11, %v710_v6  ;;  %v566_v15 = vld [vmem:[%s3045_s22 + $0x53] sm:$0xff]  ;;  %v714_v16 = vld [vmem:[%s3045_s22 + $0x5b] sm:$0xff]  ;;  %v3236_v31 = vld [vmem:[%s3045_s22 + $0x25] sm:$0xff] }
  0x1e   : > { %2539 = vmatprep.mubr.msk.bf16.mxu1 %vm2954_vm1, %v2953_v0  ;;  %2556 = vmatpush3.bf16.msra.mxu0 %v620_v19  ;;  %v718_v14 = vpack.c.bf16 %v712_v12, %v564_v11  ;;  %v571_v17 = vpack.c.bf16 %v566_v15, %v712_v12  ;;  %v719_v18 = vpack.c.bf16 %v714_v16, %v566_v15  ;;  %v853_v19 = vld [vmem:[%s3045_s22 + $0x14] sm:$0xff]  ;;  %v854_v20 = vld [vmem:[%s3045_s22 + $0x1c] sm:$0xff]  ;;  %v856_v30 = vld [vmem:[%s3045_s22 + $0x2c] sm:$0xff] }
  0x1f   : > { %2584 = vmatpush3.bf16.msra.mxu1 %v768_v22  ;;  %2557 = vmatprep.subr.bf16.mxu0 %v2953_v0  ;;  %v1001_v21 = vld [vmem:[%s3045_s22 + $0x15] sm:$0xff]  ;;  %v3214_v22 = vld [vmem:[%s3045_s22 + $0x1d] sm:$0xff]  ;;  %v863_v24 = vpack.c.bf16 %v854_v20, %v853_v19  ;;  %v860_v48 = vld [vmem:[%s3045_s22 + $0x4c] sm:$0xff] }
  0x20   : > { %2585 = vmatprep.subr.bf16.mxu1 %v2953_v0  ;;  %v2936_v25 = vld [vmem:[%s3778_s1 + $0xf8] sm:$0x3f]   ;;  %v2934_v33 = vld [vmem:[%s3778_s1 + $0xd0] sm:$0xff]   ;;  %v859_v47 = vld [vmem:[%s3045_s22 + $0x44] sm:$0xff]  ;;  %v1159_v61 = vpack.c.bf16 %v3236_v31, %v3214_v22 }
  0x21   : > { %v3249_v34 = vld [vmem:[%s3778_s1 + $0xf0] sm:$0xff]   ;;  %v858_v40 = vld [vmem:[%s3045_s22 + $0x3c] sm:$0xff]  ;;  %v866_v51 = vpack.c.bf16 %v860_v48, %v859_v47  ;;  %v1158_v12 = vld [vmem:[%s3045_s22 + $0x65] sm:$0xff] }
  0x22   : > { %2558 = vmatpush3.bf16.msra.mxu0 %v2919_v23  ;;  %v2933_v23 = vld [vmem:[%s3778_s1 + $0xd8] sm:$0x3f]   ;;  %v1298_v15 = vld [vmem:[%s3045_s22 + $0x26] sm:$0xff]  ;;  %v2942_v19 = vld [vmem:[%s3778_s1 + $0x110] sm:$0xff]  }
  0x23   : > { %2586 = vmatpush3.bf16.msra.mxu1 %v2920_v26  ;;  %2559 = vmatprep.subr.bf16.mxu0 %v2953_v0  ;;  %v1011_v26 = vpack.c.bf16 %v3214_v22, %v1001_v21  ;;  %v857_v39 = vld [vmem:[%s3045_s22 + $0x34] sm:$0xff]  ;;  %v3275_v42 = vld [vmem:[%s3045_s22 + $0x3d] sm:$0xff]  ;;  %v2943_v20 = vld [vmem:[%s3778_s1 + $0x108] sm:$0xff]  }
  0x24   : > { %2512 = vmatmul.mubr.msk.bf16.gmra.mxu0 %vm350_vm2, %v314_v27  ;;  %2587 = vmatprep.subr.bf16.mxu1 %v2953_v0  ;;  %v1212_v27 = vsel %vm366_vm0, %v2933_v23, 0  ;;  %v1005_v41 = vld [vmem:[%s3045_s22 + $0x35] sm:$0xff]  ;;  %v865_v45 = vpack.c.bf16 %v858_v40, %v857_v39  ;;  %v1010_v56 = vld [vmem:[%s3045_s22 + $0x5d] sm:$0xff]  ;;  %v1446_v23 = vld [vmem:[%s3045_s22 + $0x27] sm:$0xff] }
  0x25   : > { %2540 = vmatmul.mubr.msk.bf16.gmra.mxu1 %vm350_vm2, %v291_v28  ;;  %2515 = vmatprep.mubr.msk.bf16.mxu0 %vm2954_vm1, %v2953_v0  ;;  %v3226_v28 = vsel %vm366_vm0, %v2936_v25, 0  ;;  %v1013_v46 = vpack.c.bf16 %v3275_v42, %v1005_v41  ;;  %v861_v53 = vld [vmem:[%s3045_s22 + $0x54] sm:$0xff]  ;;  %v862_v54 = vld [vmem:[%s3045_s22 + $0x5c] sm:$0xff]  ;;  %v1454_v47 = vld [vmem:[%s3045_s22 + $0x67] sm:$0xff] }
  0x26   : > { %2543 = vmatprep.mubr.msk.bf16.mxu1 %vm2954_vm1, %v2953_v0  ;;  %2560 = vmatpush3.bf16.msra.mxu0 %v2921_v29  ;;  %v855_v29 = vld [vmem:[%s3045_s22 + $0x24] sm:$0xff]  ;;  %v1300_v60 = vld [vmem:[%s3045_s22 + $0x36] sm:$0xff] }
  0x27   : > { %2588 = vmatpush3.bf16.msra.mxu1 %v2922_v32  ;;  %2561 = vmatprep.subr.bf16.mxu0 %v2953_v0  ;;  %v3239_v32 = vld [vmem:[%s3045_s22 + $0x2d] sm:$0xff]  ;;  %v1304_v5 = vld [vmem:[%s3045_s22 + $0x56] sm:$0xff]  ;;  %v2944_v21 = vld [vmem:[%s3778_s1 + $0x100] sm:$0xff]  }
  0x28   : > { %2589 = vmatprep.subr.bf16.mxu1 %v2953_v0  ;;  %v2941_v16 = vld [vmem:[%s3778_s1 + $0x118] sm:$0x3f]   ;;  %v1445_v22 = vld [vmem:[%s3045_s22 + $0x1f] sm:$0xff]  ;;  %v1447_v25 = vld [vmem:[%s3045_s22 + $0x2f] sm:$0xff] }
  0x2a   : > { %2562 = vmatpush3.bf16.msra.mxu0 %v2923_v35  ;;  %v864_v35 = vpack.c.bf16 %v856_v30, %v855_v29  ;;  %v1450_v29 = vld [vmem:[%s3045_s22 + $0x47] sm:$0xff] }
  0x2b   : > { %2590 = vmatpush3.bf16.msra.mxu1 %v2924_v36  ;;  %2611 = vmatprep.subr.bf16.mxu0 %v2953_v0  ;;  %v1012_v36 = vpack.c.bf16 %v3239_v32, %v3236_v31 }
  0x2c   : > { %2516 = vmatmul.mubr.msk.bf16.gmra.mxu0 %vm350_vm2, %v315_v37  ;;  %2639 = vmatprep.subr.bf16.mxu1 %v2953_v0  ;;  %v2935_v37 = vld [vmem:[%s3778_s1 + $0xc8] sm:$0xff]  }
  0x2d   : > { %2544 = vmatmul.mubr.msk.bf16.gmra.mxu1 %vm350_vm2, %v292_v38  ;;  %2519 = vmatprep.mubr.msk.bf16.mxu0 %vm2954_vm1, %v2953_v0  ;;  %v3262_v38 = vld [vmem:[%s3778_s1 + $0xe8] sm:$0xff]  }
  0x2e   : > { %2547 = vmatprep.mubr.msk.bf16.mxu1 %vm2954_vm1, %v2953_v0 }
  0x34   : > { %2520 = vmatmul.mubr.msk.bf16.gmra.mxu0 %vm350_vm2, %v316_v43  ;;  %v2937_v43 = vld [vmem:[%s3778_s1 + $0xc0] sm:$0xff]  }
  0x35   : > { %2548 = vmatmul.mubr.msk.bf16.gmra.mxu1 %vm350_vm2, %v293_v44  ;;  %2523 = vmatprep.mubr.msk.bf16.mxu0 %vm2954_vm1, %v2953_v0  ;;  %v2940_v44 = vld [vmem:[%s3778_s1 + $0xe0] sm:$0xff]  }
  0x36   : > { %2551 = vmatprep.mubr.msk.bf16.mxu1 %vm2954_vm1, %v2953_v0 }
  0x3c   : > { %2524 = vmatmul.mubr.msk.bf16.gmra.mxu0 %vm350_vm2, %v317_v49  ;;  %v1007_v49 = vld [vmem:[%s3045_s22 + $0x45] sm:$0xff] }
  0x3d   : > { %2552 = vmatmul.mubr.msk.bf16.gmra.mxu1 %vm350_vm2, %v294_v50  ;;  %2563 = vmatprep.mubr.msk.bf16.mxu0 %vm2954_vm1, %v2953_v0  ;;  %v1008_v50 = vld [vmem:[%s3045_s22 + $0x4d] sm:$0xff]  ;;  %v1161_v6 = vpack.c.bf16 %v1007_v49, %v3275_v42 }
  0x3e   : > { %2591 = vmatprep.mubr.msk.bf16.mxu1 %vm2954_vm1, %v2953_v0  ;;  %v1014_v52 = vpack.c.bf16 %v1008_v50, %v1007_v49 }
  0x44   : > { %2564 = vmatmul.mubr.msk.bf16.vlgmr.msra.gmra.mxu0 %vm350_vm2, %v567_v55  ;;  %v1009_v55 = vld [vmem:[%s3045_s22 + $0x55] sm:$0xff] }
  0x45   : > { %2592 = vmatmul.mubr.msk.bf16.vlgmr.msra.gmra.mxu1 %vm350_vm2, %v715_v57  ;;  %2567 = vmatprep.mubr.msk.bf16.mxu0 %vm2954_vm1, %v2953_v0  ;;  %v867_v57 = vpack.c.bf16 %v862_v54, %v861_v53 }
  0x46   : > { %2595 = vmatprep.mubr.msk.bf16.mxu1 %vm2954_vm1, %v2953_v0  ;;  %2612 = vmatpush3.bf16.msra.mxu0 %v916_v58  ;;  %v1015_v58 = vpack.c.bf16 %v1010_v56, %v1009_v55 }
  0x47   : > { %2640 = vmatpush3.bf16.msra.mxu1 %v1064_v59  ;;  %2613 = vmatprep.subr.bf16.mxu0 %v2953_v0  ;;  %v1299_v59 = vld [vmem:[%s3045_s22 + $0x2e] sm:$0xff] }
  0x48   : > { %2641 = vmatprep.subr.bf16.mxu1 %v2953_v0 }
  0x4a   : > { %2614 = vmatpush3.bf16.msra.mxu0 %v2927_v62  ;;  %v1308_v62 = vpack.c.bf16 %v1300_v60, %v1299_v59 }
  0x4b   : > { %2642 = vmatpush3.bf16.msra.mxu1 %v2928_v63  ;;  %2615 = vmatprep.subr.bf16.mxu0 %v2953_v0  ;;  %v1301_v63 = vld [vmem:[%s3045_s22 + $0x3e] sm:$0xff] }
  0x4c   : > { %2568 = vmatmul.mubr.msk.bf16.gmra.mxu0 %vm350_vm2, %v568_v1  ;;  %2643 = vmatprep.subr.bf16.mxu1 %v2953_v0  ;;  %v1302_v1 = vld [vmem:[%s3045_s22 + $0x46] sm:$0xff] }
  0x4d   : > { %2596 = vmatmul.mubr.msk.bf16.gmra.mxu1 %vm350_vm2, %v716_v2  ;;  %2571 = vmatprep.mubr.msk.bf16.mxu0 %vm2954_vm1, %v2953_v0  ;;  %v1160_v2 = vpack.c.bf16 %v1005_v41, %v3239_v32 }
  0x4e   : > { %2599 = vmatprep.mubr.msk.bf16.mxu1 %vm2954_vm1, %v2953_v0  ;;  %2616 = vmatpush3.bf16.msra.mxu0 %v2929_v3  ;;  %v1309_v3 = vpack.c.bf16 %v1302_v1, %v1301_v63 }
  0x4f   : > { %2644 = vmatpush3.bf16.msra.mxu1 %v2930_v4  ;;  %2617 = vmatprep.subr.bf16.mxu0 %v2953_v0  ;;  %v1303_v4 = vld [vmem:[%s3045_s22 + $0x4e] sm:$0xff] }
  0x50   : > { %2645 = vmatprep.subr.bf16.mxu1 %v2953_v0 }
  0x52   : > { %2618 = vmatpush3.bf16.msra.mxu0 %v2931_v7  ;;  %v1310_v7 = vpack.c.bf16 %v1304_v5, %v1303_v4 }
  0x53   : > { %2646 = vmatpush3.bf16.msra.mxu1 %v2932_v8  ;;  %2667 = vmatprep.subr.bf16.mxu0 %v2953_v0  ;;  %v1305_v8 = vld [vmem:[%s3045_s22 + $0x5e] sm:$0xff] }
  0x54   : > { %2572 = vmatmul.mubr.msk.bf16.gmra.mxu0 %vm350_vm2, %v569_v9  ;;  %2890 = vmatprep.subr.bf16.mxu1 %v2953_v0  ;;  %v1306_v9 = vld [vmem:[%s3045_s22 + $0x66] sm:$0xff] }
  0x55   : > { %2600 = vmatmul.mubr.msk.bf16.gmra.mxu1 %vm350_vm2, %v717_v10  ;;  %2575 = vmatprep.mubr.msk.bf16.mxu0 %vm2954_vm1, %v2953_v0  ;;  %v1162_v10 = vpack.c.bf16 %v1009_v55, %v1008_v50  ;;  %v1311_v11 = vpack.c.bf16 %v1306_v9, %v1305_v8 }
  0x56   : > { %2603 = vmatprep.mubr.msk.bf16.mxu1 %vm2954_vm1, %v2953_v0 }
  0x5c   : > { %2576 = vmatmul.mubr.msk.bf16.gmra.mxu0 %vm350_vm2, %v570_v13  ;;  %v1163_v13 = vpack.c.bf16 %v1158_v12, %v1010_v56 }
  0x5d   : > { %2604 = vmatmul.mubr.msk.bf16.gmra.mxu1 %vm350_vm2, %v718_v14  ;;  %2579 = vmatprep.mubr.msk.bf16.mxu0 %vm2954_vm1, %v2953_v0  ;;  %v1297_v14 = vld [vmem:[%s3045_s22 + $0x1e] sm:$0xff] }
  0x5e   : > { %2607 = vmatprep.mubr.msk.bf16.mxu1 %vm2954_vm1, %v2953_v0 }
  0x64   : > { %2580 = vmatmul.mubr.msk.bf16.gmra.mxu0 %vm350_vm2, %v571_v17  ;;  %v1307_v17 = vpack.c.bf16 %v1298_v15, %v1297_v14 }
  0x65   : > { %2608 = vmatmul.mubr.msk.bf16.gmra.mxu1 %vm350_vm2, %v719_v18  ;;  %2619 = vmatprep.mubr.msk.bf16.mxu0 %vm2954_vm1, %v2953_v0  ;;  %v1508_v18 = vsel %vm366_vm0, %v2941_v16, 0 }
  0x66   : > { %2647 = vmatprep.mubr.msk.bf16.mxu1 %vm2954_vm1, %v2953_v0 }
  0x6c   : > { %2620 = vmatmul.mubr.msk.bf16.vlgmr.msra.gmra.mxu0 %vm350_vm2, %v863_v24  ;;  %v1455_v24 = vpack.c.bf16 %v1446_v23, %v1445_v22 }
  0x6d   : > { %2648 = vmatmul.mubr.msk.bf16.vlgmr.msra.gmra.mxu1 %vm350_vm2, %v1011_v26  ;;  %2623 = vmatprep.mubr.msk.bf16.mxu0 %vm2954_vm1, %v2953_v0  ;;  %v1448_v26 = vld [vmem:[%s3045_s22 + $0x37] sm:$0xff] }
  0x6e   : > { %2651 = vmatprep.mubr.msk.bf16.mxu1 %vm2954_vm1, %v2953_v0  ;;  %2668 = vmatpush3.bf16.msra.mxu0 %v1212_v27  ;;  %v1456_v27 = vpack.c.bf16 %v1448_v26, %v1447_v25 }
  0x6f   : > { %2669 = vmatprep.subr.bf16.mxu0 %v2953_v0  ;;  %2894 = vmatpush3.bf16.msra.mxu1 %v3226_v28 }
  0x70   : > { %2891 = vmatprep.subr.bf16.mxu1 %v2953_v0 }
  0x72   : > { %2670 = vmatpush3.bf16.msra.mxu0 %v2934_v33  ;;  %v1451_v33 = vld [vmem:[%s3045_s22 + $0x4f] sm:$0xff] }
  0x73   : > { %2671 = vmatprep.subr.bf16.mxu0 %v2953_v0  ;;  %2895 = vmatpush3.bf16.msra.mxu1 %v3249_v34 }
  0x74   : > { %2624 = vmatmul.mubr.msk.bf16.gmra.mxu0 %vm350_vm2, %v864_v35  ;;  %2892 = vmatprep.subr.bf16.mxu1 %v2953_v0 }
  0x75   : > { %2652 = vmatmul.mubr.msk.bf16.gmra.mxu1 %vm350_vm2, %v1012_v36  ;;  %2627 = vmatprep.mubr.msk.bf16.mxu0 %vm2954_vm1, %v2953_v0 }
  0x76   : > { %2655 = vmatprep.mubr.msk.bf16.mxu1 %vm2954_vm1, %v2953_v0  ;;  %2672 = vmatpush3.bf16.msra.mxu0 %v2935_v37 }
  0x77   : > { %2673 = vmatprep.subr.bf16.mxu0 %v2953_v0  ;;  %2896 = vmatpush3.bf16.msra.mxu1 %v3262_v38 }
  0x78   : > { %2893 = vmatprep.subr.bf16.mxu1 %v2953_v0 }
  0x7a   : > { %2674 = vmatpush3.bf16.msra.mxu0 %v2937_v43 }
  0x7b   : > { %2897 = vmatpush3.bf16.msra.mxu1 %v2940_v44  ;;  %2695 = vmatprep.subr.bf16.mxu0 %v2953_v0 }
  0x7c   : > { %2628 = vmatmul.mubr.msk.bf16.gmra.mxu0 %vm350_vm2, %v865_v45  ;;  %2751 = vmatprep.subr.mxu1 %v2953_v0 }
  0x7d   : > { %2656 = vmatmul.mubr.msk.bf16.gmra.mxu1 %vm350_vm2, %v1013_v46  ;;  %2631 = vmatprep.mubr.msk.bf16.mxu0 %vm2954_vm1, %v2953_v0  ;;  %v1453_v46 = vld [vmem:[%s3045_s22 + $0x5f] sm:$0xff] }
  0x7e   : > { %2659 = vmatprep.mubr.msk.bf16.mxu1 %vm2954_vm1, %v2953_v0 }
  0x84   : > { %2632 = vmatmul.mubr.msk.bf16.gmra.mxu0 %vm350_vm2, %v866_v51 }
  0x85   : > { %2660 = vmatmul.mubr.msk.bf16.gmra.mxu1 %vm350_vm2, %v1014_v52  ;;  %2635 = vmatprep.mubr.msk.bf16.mxu0 %vm2954_vm1, %v2953_v0  ;;  %v1459_v52 = vpack.c.bf16 %v1454_v47, %v1453_v46 }
  0x86   : > { %2663 = vmatprep.mubr.msk.bf16.mxu1 %vm2954_vm1, %v2953_v0 }
  0x8c   : > { %2636 = vmatmul.mubr.msk.bf16.gmra.mxu0 %vm350_vm2, %v867_v57 }
  0x8d   : > { %2664 = vmatmul.mubr.msk.bf16.gmra.mxu1 %vm350_vm2, %v1015_v58  ;;  %2675 = vmatprep.mubr.msk.bf16.mxu0 %vm2954_vm1, %v2953_v0 }
  0x8e   : > { %2707 = vmatprep.mubr.msk.bf16.mxu1 %vm2954_vm1, %v2953_v0 }
  0x94   : > { %2676 = vmatmul.mubr.msk.bf16.vlgmr.msra.gmra.mxu0 %vm350_vm2, %v1159_v61 }
  0x95   : > { %2679 = vmatprep.mubr.msk.bf16.mxu0 %vm2954_vm1, %v2953_v0  ;;  %2708 = vmatmul.mubr.msk.bf16.vlgmr.msra.gmra.mxu1 %vm350_vm2, %v1308_v62 }
  0x96   : > { %2711 = vmatprep.mubr.msk.bf16.mxu1 %vm2954_vm1, %v2953_v0  ;;  %2696 = vmatpush3.bf16.msra.mxu0 %v3226_v28  ;;  %v1449_v28 = vld [vmem:[%s3045_s22 + $0x3f] sm:$0xff] }
  0x97   : > { %2697 = vmatprep.subr.bf16.mxu0 %v2953_v0  ;;  %v1457_v30 = vpack.c.bf16 %v1450_v29, %v1449_v28 }
  0x9a   : > { %2698 = vmatpush3.bf16.msra.mxu0 %v3249_v34  ;;  %v1452_v34 = vld [vmem:[%s3045_s22 + $0x57] sm:$0xff] }
  0x9b   : > { %2699 = vmatprep.subr.bf16.mxu0 %v2953_v0  ;;  %v1458_v39 = vpack.c.bf16 %v1452_v34, %v1451_v33 }
  0x9c   : > { %2680 = vmatmul.mubr.msk.bf16.gmra.mxu0 %vm350_vm2, %v1160_v2 }
  0x9d   : > { %2683 = vmatprep.mubr.msk.bf16.mxu0 %vm2954_vm1, %v2953_v0  ;;  %2712 = vmatmul.mubr.msk.bf16.gmra.mxu1 %vm350_vm2, %v1309_v3 }
  0x9e   : > { %2715 = vmatprep.mubr.msk.bf16.mxu1 %vm2954_vm1, %v2953_v0  ;;  %2700 = vmatpush3.bf16.msra.mxu0 %v3262_v38 }
  0x9f   : > { %2701 = vmatprep.subr.bf16.mxu0 %v2953_v0 }
  0xa2   : > { %2702 = vmatpush3.bf16.msra.mxu0 %v2940_v44 }
  0xa3   : > { %2723 = vmatprep.subr.bf16.mxu0 %v2953_v0 }
  0xa4   : > { %2684 = vmatmul.mubr.msk.bf16.gmra.mxu0 %vm350_vm2, %v1161_v6 }
  0xa5   : > { %2687 = vmatprep.mubr.msk.bf16.mxu0 %vm2954_vm1, %v2953_v0  ;;  %2716 = vmatmul.mubr.msk.bf16.gmra.mxu1 %vm350_vm2, %v1310_v7 }
  0xa6   : > { %2719 = vmatprep.mubr.msk.bf16.mxu1 %vm2954_vm1, %v2953_v0 }
  0xac   : > { %2688 = vmatmul.mubr.msk.bf16.gmra.mxu0 %vm350_vm2, %v1162_v10 }
  0xad   : > { %2691 = vmatprep.mubr.msk.bf16.mxu0 %vm2954_vm1, %v2953_v0  ;;  %2720 = vmatmul.mubr.msk.bf16.gmra.mxu1 %vm350_vm2, %v1311_v11 }
  0xae   : > { %2783 = vmatprep.mubr.msk.f32.mxu1 %vm2954_vm1, %v2953_v0 }
  0xb4   : > { %2692 = vmatmul.mubr.msk.bf16.gmra.mxu0 %vm350_vm2, %v1163_v13 }
  0xb5   : > { %2703 = vmatprep.mubr.msk.bf16.mxu0 %vm2954_vm1, %v2953_v0 }
  0xbc   : > { %2704 = vmatmul.mubr.msk.bf16.vlgmr.msra.gmra.mxu0 %vm350_vm2, %v1307_v17 }
  0xbd   : > { %2724 = vmatpush3.bf16.msra.mxu0 %v1508_v18  ;;  %2731 = vmatprep.mubr.msk.bf16.mxu0 %vm2954_vm1, %v2953_v0 }
  0xbe   : > { %2725 = vmatprep.subr.bf16.mxu0 %v2953_v0 }
  0xc1   : > { %2726 = vmatpush3.bf16.msra.mxu0 %v2942_v19 }
  0xc2   : > { %2727 = vmatprep.subr.bf16.mxu0 %v2953_v0 }
  0xc5   : > { %2728 = vmatpush3.bf16.msra.mxu0 %v2943_v20 }
  0xc6   : > { %2729 = vmatprep.subr.bf16.mxu0 %v2953_v0 }
  0xc9   : > { %2730 = vmatpush3.bf16.msra.mxu0 %v2944_v21 }
  0xcc   : > { %2732 = vmatmul.mubr.msk.bf16.vlgmr.msra.gmra.mxu0 %vm350_vm2, %v1455_v24 }
  0xcd   : > { %2735 = vmatprep.mubr.msk.bf16.mxu0 %vm2954_vm1, %v2953_v0 }
  0xd4   : > { %2736 = vmatmul.mubr.msk.bf16.gmra.mxu0 %vm350_vm2, %v1456_v27 }
  0xd5   : > { %2739 = vmatprep.mubr.msk.bf16.mxu0 %vm2954_vm1, %v2953_v0 }
  0xdc   : > { %2740 = vmatmul.mubr.msk.bf16.gmra.mxu0 %vm350_vm2, %v1457_v30  ;;  %v404_v31 = vpop.f32.mrf.mxu0 }
  0xdd   : > { %v518_v32 = vpop.f32.mrf.mxu1  ;;  %2743 = vmatprep.mubr.msk.bf16.mxu0 %vm2954_vm1, %v2953_v0 }
  0xde   : > { %v519_v35 = vadd.f32 %v518_v32, %v404_v31  ;;  %v2509_v36 = vpop.f32.mrf.mxu0 }
  0xdf   : > { %v2537_v37 = vpop.f32.mrf.mxu1 }
  0xe0   : > { %v407_v38 = vpop.f32.mrf.mxu0  ;;  %v1769_v37 = vld [vmem:[%s3781_s4 + $0x78] sm:$0xff] }
  0xe1   : > { %v521_v40 = vpop.f32.mrf.mxu1  ;;  %2752 = vmatpush3.msra.mxu1 %v1769_v37 }
  0xe2   : > { %v522_v41 = vadd.f32 %v521_v40, %v407_v38  ;;  %v2510_v42 = vpop.f32.mrf.mxu0  ;;  %2753 = vmatprep.subr.mxu1 %v2953_v0  ;;  %v1768_v40 = vld [vmem:[%s3781_s4 + $0x70] sm:$0xff] }
  0xe3   : > { %v2538_v43 = vpop.f32.mrf.mxu1  ;;  %2754 = vmatpush3.msra.mxu1 %v1768_v40 }
  0xe4   : > { %2744 = vmatmul.mubr.msk.bf16.gmra.mxu0 %vm350_vm2, %v1458_v39  ;;  %v412_v44 = vpop.f32.mrf.mxu0  ;;  %2755 = vmatprep.subr.mxu1 %v2953_v0 }
  0xe5   : > { %v526_v45 = vpop.f32.mrf.mxu1  ;;  %2747 = vmatprep.mubr.msk.bf16.mxu0 %vm2954_vm1, %v2953_v0 }
  0xe6   : > { %v527_v48 = vadd.f32 %v526_v45, %v412_v44  ;;  %v2513_v49 = vpop.f32.mrf.mxu0  ;;  %v1767_v44 = vld [vmem:[%s3781_s4 + $0x68] sm:$0xff] }
  0xe7   : > { %v2541_v50 = vpop.f32.mrf.mxu1  ;;  %2756 = vmatpush3.msra.mxu1 %v1767_v44 }
  0xe8   : > { %v415_v51 = vpop.f32.mrf.mxu0  ;;  %2757 = vmatprep.subr.mxu1 %v2953_v0 }
  0xe9   : > { %v529_v53 = vpop.f32.mrf.mxu1 }
  0xea   : > { %v530_v54 = vadd.f32 %v529_v53, %v415_v51  ;;  %v2514_v55 = vpop.f32.mrf.mxu0 }
  0xeb   : > { %v2542_v56 = vpop.f32.mrf.mxu1 }
  0xec   : > { %2748 = vmatmul.mubr.msk.bf16.gmra.mxu0 %vm350_vm2, %v1459_v52  ;;  %v420_v57 = vpop.f32.mrf.mxu0  ;;  %v1765_v52 = vld [vmem:[%s3781_s4 + $0x58] sm:$0xff]  ;;  %v1764_v56 = vld [vmem:[%s3781_s4 + $0x50] sm:$0xff] }
  0xed   : > { %v534_v58 = vpop.f32.mrf.mxu1 }
  0xee   : > { %v3406_v59 = vadd.f32 %v534_v58, %v420_v57  ;;  %v2517_v60 = vpop.f32.mrf.mxu0 }
  0xef   : > { %v2545_v61 = vpop.f32.mrf.mxu1 }
  0xf0   : > { %v423_v62 = vpop.f32.mrf.mxu0 }
  0xf1   : > { %v537_v63 = vpop.f32.mrf.mxu1 }
  0xf2   : > { %v3408_v1 = vadd.f32 %v537_v63, %v423_v62  ;;  %v2518_v2 = vpop.f32.mrf.mxu0  ;;  %v1763_v62 = vld [vmem:[%s3781_s4 + $0x48] sm:$0xff] }
  0xf3   : > { %v2546_v3 = vpop.f32.mrf.mxu1 }
  0xf4   : > { %v428_v4 = vpop.f32.mrf.mxu0  ;;  %v1762_v3 = vld [vmem:[%s3781_s4 + $0x40] sm:$0xff] }
  0xf5   : > { %v542_v5 = vpop.f32.mrf.mxu1 }
  0xf6   : > { %v3410_v6 = vadd.f32 %v542_v5, %v428_v4  ;;  %v2521_v7 = vpop.f32.mrf.mxu0 }
  0xf7   : > { %v2549_v8 = vpop.f32.mrf.mxu1 }
  0xf8   : > { %v431_v9 = vpop.f32.mrf.mxu0 }
  0xf9   : > { %v545_v10 = vpop.f32.mrf.mxu1 }
  0xfa   : > { %v3412_v11 = vadd.f32 %v545_v10, %v431_v9  ;;  %v2522_v12 = vpop.f32.mrf.mxu0 }
  0xfb   : > { %v2550_v13 = vpop.f32.mrf.mxu1  ;;  %v1760_v12 = vld [vmem:[%s3781_s4 + $0x30] sm:$0xff] }
  0xfc   : > { %v436_v14 = vpop.f32.mrf.mxu0 }
  0xfd   : > { %v550_v15 = vpop.f32.mrf.mxu1 }
  0xfe   : > { %v3414_v16 = vadd.f32 %v550_v15, %v436_v14  ;;  %v2525_v17 = vpop.f32.mrf.mxu0 }
  0xff   : > { %v2553_v18 = vpop.f32.mrf.mxu1 }
 0x100   : > { %v439_v19 = vpop.f32.mrf.mxu0 }
 0x101   : > { %v553_v20 = vpop.f32.mrf.mxu1 }
 0x102   : > { %v3416_v21 = vadd.f32 %v553_v20, %v439_v19  ;;  %v2526_v22 = vpop.f32.mrf.mxu0  ;;  %v1758_v20 = vld [vmem:[%s3781_s4 + $0x20] sm:$0xff] }
 0x103   : > { %v2554_v23 = vpop.f32.mrf.mxu1 }
 0x104   : > { %v656_v24 = vpop.f32.mrf.mxu0 }
 0x105   : > { %v695_v25 = vadd.f32 %v656_v24, %v519_v35  ;;  %v804_v26 = vpop.f32.mrf.mxu1 }
 0x106   : > { %v2565_v27 = vpop.f32.mrf.mxu0 }
 0x107   : > { %v3418_v28 = vadd.f32 %v804_v26, %v695_v25  ;;  %v2593_v29 = vpop.f32.mrf.mxu1 }
 0x108   : > { %v659_v30 = vpop.f32.mrf.mxu0  ;;  %v1756_v29 = vld [vmem:[%s3781_s4 + $0x10] sm:$0xff] }
 0x109   : > { %v696_v31 = vadd.f32 %v659_v30, %v522_v41  ;;  %v807_v32 = vpop.f32.mrf.mxu1 }
 0x10a   : > { %v2566_v33 = vpop.f32.mrf.mxu0 }
 0x10b   : > { %v3420_v34 = vadd.f32 %v807_v32, %v696_v31  ;;  %v2594_v36 = vpop.f32.mrf.mxu1 }
 0x10c   : > { %v664_v38 = vpop.f32.mrf.mxu0 }
 0x10d   : > { %v697_v39 = vadd.f32 %v664_v38, %v527_v48  ;;  %v812_v35 = vpop.f32.mrf.mxu1  ;;  %v1766_v48 = vld [vmem:[%s3781_s4 + $0x60] sm:$0xff] }
 0x10e   : > { %v2569_v41 = vpop.f32.mrf.mxu0  ;;  %2758 = vmatpush3.msra.mxu1 %v1766_v48  ;;  %v1754_v38 = vld [vmem:[%s3781_s4] sm:$0xff] }
 0x10f   : > { %v3429_v42 = vadd.f32 %v812_v35, %v697_v39  ;;  %v2597_v43 = vpop.f32.mrf.mxu1  ;;  %2759 = vmatprep.subr.mxu1 %v2953_v0 }
 0x110   : > { %v667_v45 = vpop.f32.mrf.mxu0  ;;  %2760 = vmatpush3.msra.mxu1 %v1765_v52 }
 0x111   : > { %v698_v46 = vadd.f32 %v667_v45, %v530_v54  ;;  %v815_v47 = vpop.f32.mrf.mxu1  ;;  %2761 = vmatprep.subr.mxu1 %v2953_v0 }
 0x112   : > { %v2570_v49 = vpop.f32.mrf.mxu0  ;;  %2762 = vmatpush3.msra.mxu1 %v1764_v56 }
 0x113   : > { %v3439_v50 = vadd.f32 %v815_v47, %v698_v46  ;;  %v2598_v51 = vpop.f32.mrf.mxu1  ;;  %2763 = vmatprep.subr.mxu1 %v2953_v0 }
 0x114   : > { %v672_v53 = vpop.f32.mrf.mxu0  ;;  %2764 = vmatpush3.msra.mxu1 %v1763_v62 }
 0x115   : > { %v699_v54 = vadd.f32 %v672_v53, %v3406_v59  ;;  %v820_v55 = vpop.f32.mrf.mxu1  ;;  %2765 = vmatprep.subr.mxu1 %v2953_v0 }
 0x116   : > { %v2573_v57 = vpop.f32.mrf.mxu0  ;;  %2766 = vmatpush3.msra.mxu1 %v1762_v3 }
 0x117   : > { %v3450_v58 = vadd.f32 %v820_v55, %v699_v54  ;;  %v2601_v60 = vpop.f32.mrf.mxu1  ;;  %2767 = vmatprep.subr.mxu1 %v2953_v0 }
 0x118   : > { %v675_v61 = vpop.f32.mrf.mxu0 }
 0x119   : > { %v700_v59 = vadd.f32 %v675_v61, %v3408_v1  ;;  %v823_v63 = vpop.f32.mrf.mxu1  ;;  %v1761_v1 = vld [vmem:[%s3781_s4 + $0x38] sm:$0xff] }
 0x11a   : > { %v2574_v2 = vpop.f32.mrf.mxu0  ;;  %2768 = vmatpush3.msra.mxu1 %v1761_v1 }
 0x11b   : > { %v3461_v4 = vadd.f32 %v823_v63, %v700_v59  ;;  %v2602_v5 = vpop.f32.mrf.mxu1  ;;  %2769 = vmatprep.subr.mxu1 %v2953_v0 }
 0x11c   : > { %v680_v7 = vpop.f32.mrf.mxu0  ;;  %2770 = vmatpush3.msra.mxu1 %v1760_v12 }
 0x11d   : > { %v701_v8 = vadd.f32 %v680_v7, %v3410_v6  ;;  %v828_v9 = vpop.f32.mrf.mxu1  ;;  %2771 = vmatprep.subr.mxu1 %v2953_v0  ;;  %v1759_v6 = vld [vmem:[%s3781_s4 + $0x28] sm:$0xff] }
 0x11e   : > { %v2577_v10 = vpop.f32.mrf.mxu0  ;;  %2772 = vmatpush3.msra.mxu1 %v1759_v6 }
 0x11f   : > { %v3472_v13 = vadd.f32 %v828_v9, %v701_v8  ;;  %v2605_v14 = vpop.f32.mrf.mxu1  ;;  %2773 = vmatprep.subr.mxu1 %v2953_v0 }
 0x120   : > { %v683_v15 = vpop.f32.mrf.mxu0  ;;  %2774 = vmatpush3.msra.mxu1 %v1758_v20 }
 0x121   : > { %v702_v17 = vadd.f32 %v683_v15, %v3412_v11  ;;  %v831_v18 = vpop.f32.mrf.mxu1  ;;  %2775 = vmatprep.subr.mxu1 %v2953_v0  ;;  %v1757_v11 = vld [vmem:[%s3781_s4 + $0x18] sm:$0xff] }
 0x122   : > { %v2578_v19 = vpop.f32.mrf.mxu0  ;;  %2776 = vmatpush3.msra.mxu1 %v1757_v11 }
 0x123   : > { %v3483_v22 = vadd.f32 %v831_v18, %v702_v17  ;;  %v2606_v23 = vpop.f32.mrf.mxu1  ;;  %2777 = vmatprep.subr.mxu1 %v2953_v0 }
 0x124   : > { %v688_v24 = vpop.f32.mrf.mxu0  ;;  %2778 = vmatpush3.msra.mxu1 %v1756_v29 }
 0x125   : > { %v703_v25 = vadd.f32 %v688_v24, %v3414_v16  ;;  %v836_v26 = vpop.f32.mrf.mxu1  ;;  %2779 = vmatprep.subr.mxu1 %v2953_v0  ;;  %v1755_v16 = vld [vmem:[%s3781_s4 + $0x8] sm:$0xff] }
 0x126   : > { %v2581_v27 = vpop.f32.mrf.mxu0  ;;  %2780 = vmatpush3.msra.mxu1 %v1755_v16 }
 0x127   : > { %v3494_v30 = vadd.f32 %v836_v26, %v703_v25  ;;  %v2609_v31 = vpop.f32.mrf.mxu1  ;;  %2781 = vmatprep.subr.mxu1 %v2953_v0 }
 0x128   : > { %v691_v32 = vpop.f32.mrf.mxu0  ;;  %2782 = vmatpush3.msra.mxu1 %v1754_v38 }
 0x129   : > { %v704_v33 = vadd.f32 %v691_v32, %v3416_v21  ;;  %v839_v36 = vpop.f32.mrf.mxu1  ;;  %2810 = vmatprep.subr.mxu1 %v2953_v0 }
 0x12a   : > { %v2582_v37 = vpop.f32.mrf.mxu0 }
 0x12b   : > { %v852_v39 = vadd.f32 %v839_v36, %v704_v33  ;;  %v2610_v35 = vpop.f32.mrf.mxu1 }
 0x12c   : > { %v952_v40 = vpop.f32.mrf.mxu0 }
 0x12d   : > { %v991_v41 = vadd.f32 %v952_v40, %v3418_v28  ;;  %v1100_v43 = vpop.f32.mrf.mxu1 }
 0x12e   : > { %v2621_v44 = vpop.f32.mrf.mxu0 }
 0x12f   : > { %v1139_v21 = vadd.f32 %v1100_v43, %v991_v41  ;;  %v2649_v45 = vpop.f32.mrf.mxu1 }
 0x130   : > { %v955_v46 = vpop.f32.mrf.mxu0 }
 0x131   : > { %v992_v47 = vadd.f32 %v955_v46, %v3420_v34  ;;  %v1103_v48 = vpop.f32.mrf.mxu1 }
 0x132   : > { %v2622_v49 = vpop.f32.mrf.mxu0 }
 0x133   : > { %v3508_v51 = vadd.f32 %v1103_v48, %v992_v47  ;;  %v2650_v52 = vpop.f32.mrf.mxu1 }
 0x134   : > { %v960_v53 = vpop.f32.mrf.mxu0 }
 0x135   : > { %v993_v54 = vadd.f32 %v960_v53, %v3429_v42  ;;  %v1108_v55 = vpop.f32.mrf.mxu1 }
 0x136   : > { %v2625_v56 = vpop.f32.mrf.mxu0 }
 0x137   : > { %v1141_v57 = vadd.f32 %v1108_v55, %v993_v54  ;;  %v2653_v60 = vpop.f32.mrf.mxu1 }
 0x138   : > { %v963_v28 = vpop.f32.mrf.mxu0 }
 0x139   : > { %v994_v61 = vadd.f32 %v963_v28, %v3439_v50  ;;  %v1111_v62 = vpop.f32.mrf.mxu1 }
 0x13a   : > { %v2626_v59 = vpop.f32.mrf.mxu0 }
 0x13b   : > { %v3512_v63 = vadd.f32 %v1111_v62, %v994_v61  ;;  %v2654_v34 = vpop.f32.mrf.mxu1 }
 0x13c   : > { %v968_v2 = vpop.f32.mrf.mxu0 }
 0x13d   : > { %v995_v3 = vadd.f32 %v968_v2, %v3450_v58  ;;  %v1116_v5 = vpop.f32.mrf.mxu1 }
 0x13e   : > { %v2629_v7 = vpop.f32.mrf.mxu0 }
 0x13f   : > { %v3515_v1 = vadd.f32 %v1116_v5, %v995_v3  ;;  %v2657_v42 = vpop.f32.mrf.mxu1 }
 0x140   : > { %v971_v8 = vpop.f32.mrf.mxu0 }
 0x141   : > { %v996_v9 = vadd.f32 %v971_v8, %v3461_v4  ;;  %v1119_v10 = vpop.f32.mrf.mxu1 }
 0x142   : > { %v2630_v12 = vpop.f32.mrf.mxu0 }
 0x143   : > { %v3518_v14 = vadd.f32 %v1119_v10, %v996_v9  ;;  %v2658_v50 = vpop.f32.mrf.mxu1 }
 0x144   : > { %v976_v15 = vpop.f32.mrf.mxu0 }
 0x145   : > { %v997_v6 = vadd.f32 %v976_v15, %v3472_v13  ;;  %v1124_v17 = vpop.f32.mrf.mxu1 }
 0x146   : > { %v2633_v18 = vpop.f32.mrf.mxu0 }
 0x147   : > { %v3521_v19 = vadd.f32 %v1124_v17, %v997_v6  ;;  %v2661_v58 = vpop.f32.mrf.mxu1 }
 0x148   : > { %v979_v20 = vpop.f32.mrf.mxu0 }
 0x149   : > { %v998_v23 = vadd.f32 %v979_v20, %v3483_v22  ;;  %v1127_v24 = vpop.f32.mrf.mxu1 }
 0x14a   : > { %v2634_v11 = vpop.f32.mrf.mxu0 }
 0x14b   : > { %v3524_v25 = vadd.f32 %v1127_v24, %v998_v23  ;;  %v2662_v4 = vpop.f32.mrf.mxu1 }
 0x14c   : > { %v984_v26 = vpop.f32.mrf.mxu0 }
 0x14d   : > { %v999_v27 = vadd.f32 %v984_v26, %v3494_v30  ;;  %v1132_v29 = vpop.f32.mrf.mxu1  ;;  %v3550_v26 = vld [vmem:[%s3779_s2] ss:$0 sm:$0xff] }
 0x14e   : > { %v2637_v31 = vpop.f32.mrf.mxu0 }
 0x14f   : > { %v3527_v32 = vadd.f32 %v1132_v29, %v999_v27  ;;  %v2665_v13 = vpop.f32.mrf.mxu1  ;;  %v3556_v31 = vld [vmem:[%s3780_s3] ss:$0 sm:$0xff] }
 0x150   : > { %v987_v16 = vpop.f32.mrf.mxu0 }
 0x151   : > { %v1000_v33 = vadd.f32 %v987_v16, %v852_v39  ;;  %v1135_v36 = vpop.f32.mrf.mxu1 }
 0x152   : > { %v2638_v37 = vpop.f32.mrf.mxu0 }
 0x153   : > { %v3529_v38 = vadd.f32 %v1135_v36, %v1000_v33  ;;  %v2666_v22 = vpop.f32.mrf.mxu1 }
 0x154   : > { %v1248_v35 = vpop.f32.mrf.mxu0 }
 0x155   : > { %v1287_v40 = vadd.f32 %v1248_v35, %v1139_v21  ;;  %v1404_v41 = vpop.f32.mrf.mxu1 }
 0x156   : > { %v2677_v43 = vpop.f32.mrf.mxu0 }
 0x157   : > { %v2709_v44 = vpop.f32.mrf.mxu1 }
 0x158   : > { %v1251_v45 = vpop.f32.mrf.mxu0 }
 0x159   : > { %v1407_v46 = vpop.f32.mrf.mxu1  ;;  %v1288_v27 = vadd.f32 %v1251_v45, %v3508_v51 }
 0x15a   : > { %v2678_v30 = vpop.f32.mrf.mxu0 }
 0x15b   : > { %v2710_v47 = vpop.f32.mrf.mxu1 }
 0x15c   : > { %v1256_v48 = vpop.f32.mrf.mxu0 }
 0x15d   : > { %v1289_v49 = vadd.f32 %v1256_v48, %v1141_v57  ;;  %v3531_v52 = vpop.f32.mrf.mxu1 }
 0x15e   : > { %v2681_v53 = vpop.f32.mrf.mxu0 }
 0x15f   : > { %v1437_v39 = vadd.f32 %v1404_v41, %v1289_v49  ;;  %v2713_v54 = vpop.f32.mrf.mxu1 }
 0x160   : > { %v1259_v55 = vpop.f32.mrf.mxu0 }
 0x161   : > { %v3533_v56 = vpop.f32.mrf.mxu1  ;;  %v1290_v41 = vadd.f32 %v1259_v55, %v3512_v63 }
 0x162   : > { %v2682_v60 = vpop.f32.mrf.mxu0 }
 0x163   : > { %v2714_v28 = vpop.f32.mrf.mxu1  ;;  %v1438_v53 = vadd.f32 %v1407_v46, %v1290_v41 }
 0x164   : > { %v1264_v21 = vpop.f32.mrf.mxu0 }
 0x165   : > { %v3535_v61 = vpop.f32.mrf.mxu1  ;;  %v1291_v47 = vadd.f32 %v1264_v21, %v3515_v1 }
 0x166   : > { %v2685_v62 = vpop.f32.mrf.mxu0 }
 0x167   : > { %v2717_v59 = vpop.f32.mrf.mxu1 }
 0x168   : > { %v1267_v34 = vpop.f32.mrf.mxu0 }
 0x169   : > { %v3537_v2 = vpop.f32.mrf.mxu1  ;;  %v1292_v63 = vadd.f32 %v1267_v34, %v3518_v14 }
 0x16a   : > { %v2686_v3 = vpop.f32.mrf.mxu0 }
 0x16b   : > { %v2718_v57 = vpop.f32.mrf.mxu1  ;;  %v1439_v3 = vadd.f32 %v3531_v52, %v1291_v47  ;;  %v1440_v14 = vadd.f32 %v3533_v56, %v1292_v63 }
 0x16c   : > { %v1272_v5 = vpop.f32.mrf.mxu0 }
 0x16d   : > { %v3539_v7 = vpop.f32.mrf.mxu1  ;;  %v1293_v34 = vadd.f32 %v1272_v5, %v3521_v19 }
 0x16e   : > { %v2689_v42 = vpop.f32.mrf.mxu0 }
 0x16f   : > { %v2721_v8 = vpop.f32.mrf.mxu1 }
 0x170   : > { %v1275_v9 = vpop.f32.mrf.mxu0 }
 0x171   : > { %v3541_v10 = vpop.f32.mrf.mxu1  ;;  %v1294_v52 = vadd.f32 %v1275_v9, %v3524_v25 }
 0x172   : > { %v2690_v12 = vpop.f32.mrf.mxu0 }
 0x173   : > { %v2722_v50 = vpop.f32.mrf.mxu1 }
 0x174   : > { %v3543_v15 = vpop.f32.mrf.mxu0 }
 0x176   : > { %v2693_v6 = vpop.f32.mrf.mxu0 }
 0x178   : > { %v3545_v17 = vpop.f32.mrf.mxu0 }
 0x179   : > { %v1296_v25 = vadd.f32 %v3545_v17, %v3529_v38 }
 0x17a   : > { %v2694_v18 = vpop.f32.mrf.mxu0 }
 0x17c   : > { %v1396_v58 = vpop.f32.mrf.mxu0 }
 0x17d   : > { %v1435_v11 = vadd.f32 %v1396_v58, %v1287_v40 }
 0x17e   : > { %v2705_v20 = vpop.f32.mrf.mxu0 }
 0x180   : > { %v1399_v23 = vpop.f32.mrf.mxu0 }
 0x181   : > { %v1436_v16 = vadd.f32 %v1399_v23, %v1288_v27  ;;  %v1295_v27 = vadd.f32 %v3543_v15, %v3527_v32 }
 0x182   : > { %v2706_v24 = vpop.f32.mrf.mxu0 }
 0x183   : > { %v1443_v41 = vadd.f32 %v3539_v7, %v1295_v27 }
 0x18c   : > { %v1544_v4 = vpop.f32.mrf.mxu0 }
 0x18d   : > { %v1583_v29 = vadd.f32 %v1544_v4, %v1435_v11 }
 0x18e   : > { %v2733_v13 = vpop.f32.mrf.mxu0 }
 0x18f   : > { %v1600_v33 = vmul.f32 %v3550_v26, %v1583_v29 }
 0x190   : > { %v1547_v36 = vpop.f32.mrf.mxu0 }
 0x191   : > { %v1617_v37 = vadd.f32 %v3556_v31, %v1600_v33  ;;  %v1584_v22 = vadd.f32 %v1547_v36, %v1436_v16 }
 0x192   : > { %v2734_v35 = vpop.f32.mrf.mxu0 }
 0x193   : > { %v1601_v40 = vmul.f32 %v3550_v26, %v1584_v22  ;;  %v1627_v43 = vmax.f32 %v1617_v37, 0.0  ;;  %v1441_v35 = vadd.f32 %v3535_v61, %v1293_v34 }
 0x194   : > { %v1552_v51 = vpop.f32.mrf.mxu0 }
 0x195   : > { %v1618_v44 = vadd.f32 %v3556_v31, %v1601_v40  ;;  %v1585_v45 = vadd.f32 %v1552_v51, %v1437_v39  ;;  %v1647_v60 = vrot.slane %v1627_v43, 1  ;;  %v1442_v40 = vadd.f32 %v3537_v2, %v1294_v52 }
 0x196   : > { %v2737_v30 = vpop.f32.mrf.mxu0 }
 0x197   : > { %v1628_v48 = vmax.f32 %v1618_v44, 0.0  ;;  %v1602_v49 = vmul.f32 %v3550_v26, %v1585_v45  ;;  %v1444_v30 = vadd.f32 %v3541_v10, %v1296_v25 }
 0x198   : > { %v1555_v54 = vpop.f32.mrf.mxu0 }
 0x199   : > { %v1648_v28 = vrot.slane %v1628_v48, 1  ;;  %v1619_v62 = vadd.f32 %v3556_v31, %v1602_v49  ;;  %v1586_v55 = vadd.f32 %v1555_v54, %v1438_v53  ;;  %v1683_v1 = vrot.slane %v1628_v48, 2 }
 0x19a   : > { %v2738_v59 = vpop.f32.mrf.mxu0  ;;  %v1719_v21 = vrot.slane %v1628_v48, 3 }
 0x19b   : > { %v1629_v39 = vmax.f32 %v1619_v62, 0.0  ;;  %v1649_v57 = vsel %vm1646_vm3, %v1647_v60, %v1648_v28  ;;  %v1603_v46 = vmul.f32 %v3550_v26, %v1586_v55 }
 0x19c   : > { %v1560_v42 = vpop.f32.mrf.mxu0  ;;  %v1673_v8 = vmax.f32 %v1627_v43, %v1649_v57 }
 0x19d   : > { %v1650_v12 = vrot.slane %v1629_v39, 1  ;;  %v1684_v50 = vrot.slane %v1629_v39, 2  ;;  %v1720_v6 = vrot.slane %v1629_v39, 3  ;;  %v1587_v18 = vadd.f32 %v1560_v42, %v1439_v3 }
 0x19e   : > { %v1620_v58 = vadd.f32 %v3556_v31, %v1603_v46  ;;  %v2741_v20 = vpop.f32.mrf.mxu0 }
 0x19f   : > { %v1604_v23 = vmul.f32 %v3550_v26, %v1587_v18  ;;  %v1651_v24 = vsel %vm1646_vm3, %v1648_v28, %v1650_v12  ;;  %v1685_v11 = vsel %vm366_vm0, %v1683_v1, %v1684_v50  ;;  %v1721_v4 = vsel %vm1718_vm4, %v1719_v21, %v1720_v6  ;;  %v1930_v18 = vld [vmem:[%s3782_s5 + $0x78] sm:$0xff] }
 0x1a0   : > { %v1630_v29 = vmax.f32 %v1620_v58, 0.0  ;;  %v1563_v56 = vpop.f32.mrf.mxu0  ;;  %v1674_v13 = vmax.f32 %v1628_v48, %v1651_v24  ;;  %v1709_v19 = vmax.f32 %v1673_v8, %v1685_v11 }
 0x1a1   : > { %v1621_v5 = vadd.f32 %v3556_v31, %v1604_v23  ;;  %v1588_v9 = vadd.f32 %v1563_v56, %v1440_v14  ;;  %v1929_v56 = vld [vmem:[%s3782_s5 + $0x70] sm:$0xff] }
 0x1a2   : > { %v1652_v16 = vrot.slane %v1630_v29, 1  ;;  %v1686_v33 = vrot.slane %v1630_v29, 2  ;;  %v1722_v36 = vrot.slane %v1630_v29, 3  ;;  %v2742_v37 = vpop.f32.mrf.mxu0  ;;  %v1745_v22 = vmax.f32 %v1709_v19, %v1721_v4 }
 0x1a3   : > { %v3585_v32 = vmax.f32 %v1621_v5, 0.0  ;;  %v1605_v15 = vmul.f32 %v3550_v26, %v1588_v9 }
 0x1a4   : > { %v1568_v51 = vpop.f32.mrf.mxu0  ;;  %v1687_v38 = vsel %vm366_vm0, %v1684_v50, %v1686_v33  ;;  %v1723_v17 = vsel %vm1718_vm4, %v1720_v6, %v1722_v36  ;;  %v1653_v43 = vsel %vm1646_vm3, %v1650_v12, %v1652_v16  ;;  %v1779_v46 = vrot.slane %v1745_v22, 1 }
 0x1a5   : > { %v1654_v44 = vrot.slane %v3585_v32, 1  ;;  %v1688_v45 = vrot.slane %v3585_v32, 2  ;;  %v1622_v61 = vadd.f32 %v3556_v31, %v1605_v15  ;;  %v1589_v2 = vadd.f32 %v1568_v51, %v1441_v35 }
 0x1a6   : > { %v2745_v47 = vpop.f32.mrf.mxu0  ;;  %v1710_v48 = vmax.f32 %v1674_v13, %v1687_v38  ;;  %v1675_v49 = vmax.f32 %v1629_v39, %v1653_v43  ;;  %v1724_v7 = vrot.slane %v3585_v32, 3 }
 0x1a7   : > { %v3597_v53 = vmax.f32 %v1622_v61, 0.0  ;;  %v1606_v54 = vmul.f32 %v3550_v26, %v1589_v2  ;;  %v1689_v60 = vsel %vm366_vm0, %v1686_v33, %v1688_v45  ;;  %v1655_v28 = vsel %vm1646_vm3, %v1652_v16, %v1654_v44 }
 0x1a8   : > { %v1571_v62 = vpop.f32.mrf.mxu0  ;;  %v1746_v63 = vmax.f32 %v1710_v48, %v1723_v17  ;;  %v1711_v55 = vmax.f32 %v1675_v49, %v1689_v60  ;;  %v1725_v59 = vsel %vm1718_vm4, %v1722_v36, %v1724_v7  ;;  %v1676_v3 = vmax.f32 %v1630_v29, %v1655_v28  ;;  %v1928_v36 = vld [vmem:[%s3782_s5 + $0x68] sm:$0xff]  ;;  %v1926_v49 = vld [vmem:[%s3782_s5 + $0x58] sm:$0xff] }
 0x1a9   : > { %v1656_v10 = vrot.slane %v3597_v53, 1  ;;  %v1690_v39 = vrot.slane %v3597_v53, 2  ;;  %v1623_v57 = vadd.f32 %v3556_v31, %v1606_v54  ;;  %v1590_v1 = vadd.f32 %v1571_v62, %v1442_v40 }
 0x1aa   : > { %v2746_v21 = vpop.f32.mrf.mxu0  ;;  %v1780_v42 = vrot.slane %v1746_v63, 1  ;;  %v1747_v8 = vmax.f32 %v1711_v55, %v1725_v59  ;;  %v1726_v12 = vrot.slane %v3597_v53, 3  ;;  %v1925_v59 = vld [vmem:[%s3782_s5 + $0x50] sm:$0xff] }
 0x1ab   : > { %v3607_v50 = vmax.f32 %v1623_v57, 0.0  ;;  %v1607_v6 = vmul.f32 %v3550_v26, %v1590_v1  ;;  %v1691_v14 = vsel %vm366_vm0, %v1688_v45, %v1690_v39  ;;  %v1657_v34 = vsel %vm1646_vm3, %v1654_v44, %v1656_v10  ;;  %v1927_v44 = vld [vmem:[%s3782_s5 + $0x60] sm:$0xff] }
 0x1ac   : > { %v3616_v52 = vsel %vm1646_vm3, %v1779_v46, %v1780_v42  ;;  %v1576_v58 = vpop.f32.mrf.mxu0  ;;  %v1782_v20 = vrot.slane %v1747_v8, 1  ;;  %v1712_v23 = vmax.f32 %v1676_v3, %v1691_v14  ;;  %v1727_v24 = vsel %vm1718_vm4, %v1724_v7, %v1726_v12 }
 0x1ad   : > { %v1658_v11 = vrot.slane %v3607_v50, 1  ;;  %v1692_v4 = vrot.slane %v3607_v50, 2  ;;  %v1624_v27 = vadd.f32 %v3556_v31, %v1607_v6  ;;  %2784 = vmatmul.mubr.f32.vlgmr.msra.gmra.mxu1 %v3616_v52  ;;  %v1591_v29 = vadd.f32 %v1576_v58, %v1443_v41 }
 0x1ae   : > { %v2749_v13 = vpop.f32.mrf.mxu0  ;;  %2786 = vmatprep.mubr.msk.f32.mxu1 %vm2954_vm1, %v2953_v0  ;;  %v3629_v19 = vsel %vm1646_vm3, %v1780_v42, %v1782_v20  ;;  %2811 = vmatpush3.msra.mxu1 %v1930_v18  ;;  %v1748_v25 = vmax.f32 %v1712_v23, %v1727_v24  ;;  %v1677_v5 = vmax.f32 %v3585_v32, %v1657_v34  ;;  %v1728_v9 = vrot.slane %v3607_v50, 3  ;;  %v1923_v18 = vld [vmem:[%s3782_s5 + $0x40] sm:$0xff] }
 0x1af   : > { %v3633_v16 = vmax.f32 %v1624_v27, 0.0  ;;  %v1608_v33 = vmul.f32 %v3550_v26, %v1591_v29  ;;  %2812 = vmatprep.subr.mxu1 %v2953_v0  ;;  %v1693_v37 = vsel %vm366_vm0, %v1690_v39, %v1692_v4  ;;  %v1659_v22 = vsel %vm1646_vm3, %v1656_v10, %v1658_v11  ;;  %v1921_v29 = vld [vmem:[%s3782_s5 + $0x30] sm:$0xff] }
 0x1b0   : > { %v1579_v35 = vpop.f32.mrf.mxu0  ;;  %2813 = vmatpush3.msra.mxu1 %v1929_v56  ;;  %v1784_v40 = vrot.slane %v1748_v25, 1  ;;  %v1713_v32 = vmax.f32 %v1677_v5, %v1693_v37  ;;  %v1729_v15 = vsel %vm1718_vm4, %v1726_v12, %v1728_v9  ;;  %v1678_v41 = vmax.f32 %v3597_v53, %v1659_v22  ;;  %v1920_v5 = vld [vmem:[%s3782_s5 + $0x28] sm:$0xff]  ;;  %v1918_v22 = vld [vmem:[%s3782_s5 + $0x18] sm:$0xff] }
 0x1b1   : > { %v1660_v51 = vrot.slane %v3633_v16, 1  ;;  %v1694_v38 = vrot.slane %v3633_v16, 2  ;;  %v1625_v17 = vadd.f32 %v3556_v31, %v1608_v33  ;;  %2787 = vmatmul.mubr.f32.gmra.mxu1 %v3629_v19  ;;  %v1592_v43 = vadd.f32 %v1579_v35, %v1444_v30  ;;  %2814 = vmatprep.subr.mxu1 %v2953_v0  ;;  %v1919_v33 = vld [vmem:[%s3782_s5 + $0x20] sm:$0xff]  ;;  %v1917_v35 = vld [vmem:[%s3782_s5 + $0x10] sm:$0xff] }
 0x1b2   : > { %v2750_v45 = vpop.f32.mrf.mxu0  ;;  %2789 = vmatprep.mubr.msk.f32.mxu1 %vm2954_vm1, %v2953_v0  ;;  %v3655_v61 = vsel %vm1646_vm3, %v1782_v20, %v1784_v40  ;;  %2815 = vmatpush3.msra.mxu1 %v1928_v36  ;;  %v1749_v2 = vmax.f32 %v1713_v32, %v1729_v15  ;;  %v1730_v47 = vrot.slane %v3633_v16, 3  ;;  %v1922_v20 = vld [vmem:[%s3782_s5 + $0x38] sm:$0xff]  ;;  %v1915_v32 = vld [vmem:[%s3782_s5] sm:$0xff] }
 0x1b3   : > { %v1635_v48 = vmax.f32 %v1625_v17, 0.0  ;;  %v1609_v30 = vmul.f32 %v3550_v26, %v1592_v43  ;;  %2816 = vmatprep.subr.mxu1 %v2953_v0  ;;  %v1695_v7 = vsel %vm366_vm0, %v1692_v4, %v1694_v38  ;;  %v1661_v53 = vsel %vm1646_vm3, %v1658_v11, %v1660_v51 }
 0x1b4   : > { %2817 = vmatpush3.msra.mxu1 %v1927_v44  ;;  %v1786_v54 = vrot.slane %v1749_v2, 1  ;;  %v1714_v60 = vmax.f32 %v1678_v41, %v1695_v7  ;;  %v1731_v28 = vsel %vm1718_vm4, %v1728_v9, %v1730_v47  ;;  %v1679_v62 = vmax.f32 %v3607_v50, %v1661_v53 }
 0x1b5   : > { %v1662_v63 = vrot.slane %v1635_v48, 1  ;;  %v1696_v55 = vrot.slane %v1635_v48, 2  ;;  %v1626_v26 = vadd.f32 %v3556_v31, %v1609_v30  ;;  %2790 = vmatmul.mubr.f32.gmra.mxu1 %v3655_v61  ;;  %2818 = vmatprep.subr.mxu1 %v2953_v0  ;;  %v1732_v3 = vrot.slane %v1635_v48, 3  ;;  %v1924_v31 = vld [vmem:[%s3782_s5 + $0x48] sm:$0xff] }
 0x1b6   : > { %2792 = vmatprep.mubr.msk.f32.mxu1 %vm2954_vm1, %v2953_v0  ;;  %v3676_v10 = vsel %vm1646_vm3, %v1784_v40, %v1786_v54  ;;  %2819 = vmatpush3.msra.mxu1 %v1926_v49  ;;  %v1750_v39 = vmax.f32 %v1714_v60, %v1731_v28  ;;  %v1916_v40 = vld [vmem:[%s3782_s5 + $0x8] sm:$0xff] }
 0x1b7   : > { %v1636_v57 = vmax.f32 %v1626_v26, 0.0  ;;  %2820 = vmatprep.subr.mxu1 %v2953_v0  ;;  %v1697_v1 = vsel %vm366_vm0, %v1694_v38, %v1696_v55  ;;  %v1733_v21 = vsel %vm1718_vm4, %v1730_v47, %v1732_v3  ;;  %v1663_v46 = vsel %vm1646_vm3, %v1660_v51, %v1662_v63 }
 0x1b8   : > { %2821 = vmatpush3.msra.mxu1 %v1925_v59  ;;  %v1788_v42 = vrot.slane %v1750_v39, 1  ;;  %v1715_v8 = vmax.f32 %v1679_v62, %v1697_v1  ;;  %v1680_v12 = vmax.f32 %v3633_v16, %v1663_v46  ;;  %v1681_v14 = vmax.f32 %v1635_v48, %v1662_v63 }
 0x1b9   : > { %v1698_v50 = vrot.slane %v1636_v57, 2  ;;  %v1734_v6 = vrot.slane %v1636_v57, 3  ;;  %2793 = vmatmul.mubr.f32.gmra.mxu1 %v3676_v10  ;;  %2822 = vmatprep.subr.mxu1 %v2953_v0 }
 0x1ba   : > { %2795 = vmatprep.mubr.msk.f32.mxu1 %vm2954_vm1, %v2953_v0  ;;  %v1789_v34 = vsel %vm1646_vm3, %v1786_v54, %v1788_v42  ;;  %2823 = vmatpush3.msra.mxu1 %v1924_v31  ;;  %v1751_v58 = vmax.f32 %v1715_v8, %v1733_v21 }
 0x1bb   : > { %2824 = vmatprep.subr.mxu1 %v2953_v0  ;;  %v1699_v23 = vsel %vm366_vm0, %v1696_v55, %v1698_v50  ;;  %v1735_v24 = vsel %vm1718_vm4, %v1732_v3, %v1734_v6  ;;  %v1717_v11 = vmax.f32 %v1681_v14, %v1698_v50 }
 0x1bc   : > { %2825 = vmatpush3.msra.mxu1 %v1923_v18  ;;  %v1790_v4 = vrot.slane %v1751_v58, 1  ;;  %v1716_v27 = vmax.f32 %v1680_v12, %v1699_v23 }
 0x1bd   : > { %2796 = vmatmul.mubr.f32.gmra.mxu1 %v1789_v34  ;;  %2826 = vmatprep.subr.mxu1 %v2953_v0  ;;  %v1753_v56 = vmax.f32 %v1717_v11, %v1734_v6 }
 0x1be   : > { %2798 = vmatprep.mubr.msk.f32.mxu1 %vm2954_vm1, %v2953_v0  ;;  %v1791_v13 = vsel %vm1646_vm3, %v1788_v42, %v1790_v4  ;;  %2827 = vmatpush3.msra.mxu1 %v1922_v20  ;;  %v1752_v25 = vmax.f32 %v1716_v27, %v1735_v24  ;;  %v2051_v24 = vld [vmem:[%s3783_s6 + $0x8] sm:$0xff] }
 0x1bf   : > { %2828 = vmatprep.subr.mxu1 %v2953_v0  ;;  %v1794_v9 = vrot.slane %v1753_v56, 1 }
 0x1c0   : > { %2829 = vmatpush3.msra.mxu1 %v1921_v29  ;;  %v1792_v16 = vrot.slane %v1752_v25, 1 }
 0x1c1   : > { %2799 = vmatmul.mubr.f32.gmra.mxu1 %v1791_v13  ;;  %2830 = vmatprep.subr.mxu1 %v2953_v0 }
 0x1c2   : > { %2801 = vmatprep.mubr.msk.f32.mxu1 %vm2954_vm1, %v2953_v0  ;;  %v1793_v36 = vsel %vm1646_vm3, %v1790_v4, %v1792_v16  ;;  %2831 = vmatpush3.msra.mxu1 %v1920_v5  ;;  %v1795_v37 = vsel %vm1646_vm3, %v1792_v16, %v1794_v9 }
 0x1c3   : > { %2832 = vmatprep.subr.mxu1 %v2953_v0 }
 0x1c4   : > { %2833 = vmatpush3.msra.mxu1 %v1919_v33 }
 0x1c5   : > { %2802 = vmatmul.mubr.f32.gmra.mxu1 %v1793_v36  ;;  %2834 = vmatprep.subr.mxu1 %v2953_v0 }
 0x1c6   : > { %2804 = vmatprep.mubr.msk.f32.mxu1 %vm2954_vm1, %v2953_v0  ;;  %2835 = vmatpush3.msra.mxu1 %v1918_v22 }
 0x1c7   : > { %2836 = vmatprep.subr.mxu1 %v2953_v0 }
 0x1c8   : > { %2837 = vmatpush3.msra.mxu1 %v1917_v35 }
 0x1c9   : > { %2805 = vmatmul.mubr.f32.gmra.mxu1 %v1795_v37  ;;  %2838 = vmatprep.subr.mxu1 %v2953_v0 }
 0x1ca   : > { %2807 = vmatprep.mubr.msk.f32.mxu1 %vm2954_vm1, %v2953_v0  ;;  %2839 = vmatpush3.msra.mxu1 %v1916_v40 }
 0x1cb   : > { %2840 = vmatprep.subr.mxu1 %v2953_v0 }
 0x1cc   : > { %2841 = vmatpush3.msra.mxu1 %v1915_v32 }
 0x1cd   : > { %2808 = vmatmul.mubr.f32.gmra.mxu1 %v1794_v9 }
 0x1ce   : > { %2842 = vmatprep.mubr.msk.f32.mxu1 %vm2954_vm1, %v2953_v0 }
 0x1d1   : > { %2843 = vmatmul.mubr.f32.vlgmr.msra.gmra.mxu1 %v3616_v52  ;;  %v2050_v52 = vld [vmem:[%s3783_s6] sm:$0xff] }
 0x1d2   : > { %2845 = vmatprep.mubr.msk.f32.mxu1 %vm2954_vm1, %v2953_v0  ;;  %2887 = vmatprep.mubr.msk.f32.mxu0 %vm2052_vm5, %v2050_v52 }
 0x1d5   : > { %2846 = vmatmul.mubr.f32.gmra.mxu1 %v3629_v19 }
 0x1d6   : > { %2848 = vmatprep.mubr.msk.f32.mxu1 %vm2954_vm1, %v2953_v0 }
 0x1d9   : > { %2849 = vmatmul.mubr.f32.gmra.mxu1 %v3655_v61 }
 0x1da   : > { %2851 = vmatprep.mubr.msk.f32.mxu1 %vm2954_vm1, %v2953_v0 }
 0x1dd   : > { %2852 = vmatmul.mubr.f32.gmra.mxu1 %v3676_v10 }
 0x1de   : > { %2854 = vmatprep.mubr.msk.f32.mxu1 %vm2954_vm1, %v2953_v0 }
 0x1e1   : > { %2855 = vmatmul.mubr.f32.gmra.mxu1 %v1789_v34 }
 0x1e2   : > { %2857 = vmatprep.mubr.msk.f32.mxu1 %vm2954_vm1, %v2953_v0 }
 0x1e5   : > { %2858 = vmatmul.mubr.f32.gmra.mxu1 %v1791_v13 }
 0x1e6   : > { %2860 = vmatprep.mubr.msk.f32.mxu1 %vm2954_vm1, %v2953_v0 }
 0x1e9   : > { %2861 = vmatmul.mubr.f32.gmra.mxu1 %v1793_v36 }
 0x1ea   : > { %2863 = vmatprep.mubr.msk.f32.mxu1 %vm2954_vm1, %v2953_v0 }
 0x1ed   : > { %2864 = vmatmul.mubr.f32.gmra.mxu1 %v1795_v37 }
 0x1ee   : > { %2866 = vmatprep.mubr.msk.f32.mxu1 %vm2954_vm1, %v2953_v0 }
 0x1f1   : > { %2867 = vmatmul.mubr.f32.gmra.mxu1 %v1794_v9 }
 0x26d   : > { %v1871_v19 = vpop.f32.mrf.mxu1 }
 0x26f   : > { %v2785_v15 = vpop.f32.mrf.mxu1 }
 0x271   : > { %v1876_v41 = vpop.f32.mrf.mxu1 }
 0x273   : > { %v2788_v51 = vpop.f32.mrf.mxu1 }
 0x275   : > { %v1881_v38 = vpop.f32.mrf.mxu1 }
 0x277   : > { %v2791_v17 = vpop.f32.mrf.mxu1 }
 0x279   : > { %v1886_v43 = vpop.f32.mrf.mxu1 }
 0x27b   : > { %v2794_v44 = vpop.f32.mrf.mxu1 }
 0x27d   : > { %v1891_v45 = vpop.f32.mrf.mxu1 }
 0x27f   : > { %v2797_v61 = vpop.f32.mrf.mxu1 }
 0x281   : > { %v1896_v2 = vpop.f32.mrf.mxu1 }
 0x283   : > { %v2800_v0 = vpop.f32.mrf.mxu1 }
 0x285   : > { %v1901_v47 = vpop.f32.mrf.mxu1 }
 0x287   : > { %v2803_v48 = vpop.f32.mrf.mxu1 }
 0x289   : > { %v1906_v30 = vpop.f32.mrf.mxu1 }
 0x28b   : > { %v2806_v49 = vpop.f32.mrf.mxu1 }
 0x28d   : > { %v1911_v7 = vpop.f32.mrf.mxu1 }
 0x28f   : > { %v2809_v53 = vpop.f32.mrf.mxu1 }
 0x291   : > { %v1997_v54 = vpop.f32.mrf.mxu1 }
 0x292   : > { %v2041_v23 = vmax.f32 %v1871_v19, %v1997_v54 }
 0x293   : > { %v2844_v60 = vpop.f32.mrf.mxu1 }
 0x295   : > { %v2002_v28 = vpop.f32.mrf.mxu1 }
 0x296   : > { %v2042_v20 = vmax.f32 %v1876_v41, %v2002_v28 }
 0x297   : > { %v2847_v62 = vpop.f32.mrf.mxu1 }
 0x299   : > { %v2007_v63 = vpop.f32.mrf.mxu1 }
 0x29a   : > { %v2043_v58 = vmax.f32 %v1881_v38, %v2007_v63 }
 0x29b   : > { %v2850_v55 = vpop.f32.mrf.mxu1 }
 0x29d   : > { %v2012_v26 = vpop.f32.mrf.mxu1 }
 0x29e   : > { %v2044_v34 = vmax.f32 %v1886_v43, %v2012_v26 }
 0x29f   : > { %v2853_v59 = vpop.f32.mrf.mxu1 }
 0x2a1   : > { %v2017_v3 = vpop.f32.mrf.mxu1 }
 0x2a2   : > { %v2045_v14 = vmax.f32 %v1891_v45, %v2017_v3 }
 0x2a3   : > { %v2856_v10 = vpop.f32.mrf.mxu1 }
 0x2a5   : > { %v2022_v39 = vpop.f32.mrf.mxu1 }
 0x2a6   : > { %v2046_v18 = vmax.f32 %v1896_v2, %v2022_v39 }
 0x2a7   : > { %v2859_v57 = vpop.f32.mrf.mxu1 }
 0x2a9   : > { %v2027_v31 = vpop.f32.mrf.mxu1 }
 0x2aa   : > { %v2047_v6 = vmax.f32 %v1901_v47, %v2027_v31 }
 0x2ab   : > { %v2862_v1 = vpop.f32.mrf.mxu1 }
 0x2ad   : > { %v2032_v21 = vpop.f32.mrf.mxu1 }
 0x2ae   : > { %v2048_v50 = vmax.f32 %v1906_v30, %v2032_v21 }
 0x2af   : > { %v2865_v46 = vpop.f32.mrf.mxu1 }
 0x2b1   : > { %v2037_v42 = vpop.f32.mrf.mxu1 }
 0x2b2   : > { %v2049_v8 = vmax.f32 %v1911_v7, %v2037_v42 }
 0x2b3   : > { %v2868_v12 = vpop.f32.mrf.mxu1 }
 0x2b4   : > { %2869 = vmatprep.subr.msk.mxu0 %vm2059_vm6, %v2049_v8 }
 0x2b5   : > { %2870 = vmatpush3.msk.msra.mxu0 %vm2059_vm6, %v2049_v8 }
 0x2b6   : > { %2871 = vmatprep.subr.mxu0 %v2048_v50 }
 0x2b7   : > { %2872 = vmatpush3.msra.mxu0 %v2048_v50 }
 0x2b8   : > { %2873 = vmatprep.subr.mxu0 %v2047_v6 }
 0x2b9   : > { %2874 = vmatpush3.msra.mxu0 %v2047_v6 }
 0x2ba   : > { %2875 = vmatprep.subr.mxu0 %v2046_v18 }
 0x2bb   : > { %2876 = vmatpush3.msra.mxu0 %v2046_v18 }
 0x2bc   : > { %2877 = vmatprep.subr.mxu0 %v2045_v14 }
 0x2bd   : > { %2878 = vmatpush3.msra.mxu0 %v2045_v14 }
 0x2be   : > { %2879 = vmatprep.subr.mxu0 %v2044_v34 }
 0x2bf   : > { %2880 = vmatpush3.msra.mxu0 %v2044_v34 }
 0x2c0   : > { %2881 = vmatprep.subr.mxu0 %v2043_v58 }
 0x2c1   : > { %2882 = vmatpush3.msra.mxu0 %v2043_v58 }
 0x2c2   : > { %2883 = vmatprep.subr.mxu0 %v2042_v20 }
 0x2c3   : > { %2884 = vmatpush3.msra.mxu0 %v2042_v20 }
 0x2c4   : > { %2885 = vmatprep.subr.mxu0 %v2041_v23 }
 0x2c5   : > { %2886 = vmatpush3.msra.mxu0 %v2041_v23 }
 0x2c6   : > { %2888 = vmatmul.mubr.msk.f32.vlgmr.msra.gmra.mxu0 %vm2052_vm5, %v2051_v24 }
 0x386   : > { %v2889_v11 = vpop.f32.mrf.mxu0 }
 0x387   : > { %2140 = vst.msk [vmem:[%s278_s9 + $0x8] sm:$0xff] %vm2138_vm7, %v2889_v11 }
 0x388   : > { %v2129_v4 = vpop.f32.mrf.mxu0 }
 0x389   : > { %2139 = vst.msk [vmem:[%s278_s9] sm:$0xff] %vm2138_vm7, %v2129_v4 }
 0x38a PF: > { %s17_s24 = sadd.s32 1, %s2951_s24  }
 0x38b   : > { %p14_p4 = scmp.ge.s32.totalorder %s17_s24, 4  }
 0x38d   :  { %16 = sbr.rel (!%p14_p4) target bundleno = 1 (0x1), region = 86 }

// kernel: enhanced_cnn_forward.7
= control target key start
LH: loop header
LB: loop body
LE: loop exit
PB: predicated region body
PF: predicated region fallthrough
CT: control target
= control target key end

     0   :  { %v281_v3 = vmov 0.0   ;;  %vm51_vm0 = vcmask 523264   ;;  %v41_v50 = vlaneseq  ;;  %vm237_vm1 = vcmask 1024   ;;  %s468_s1 = inlined_call_operand.vmem [shape: f32[64,256], index: 1, kind: input, shape index: {}]   ;;  %s469_s3 = inlined_call_operand.vmem [shape: f32[256,1], index: 3, kind: input, shape index: {}]   ;;  %s470_s0 = inlined_call_operand.vmem [shape: f32[2,64], index: 0, kind: input, shape index: {}]   ;;  %s471_s2 = inlined_call_operand.vmem [shape: f32[1,256], index: 2, kind: input, shape index: {}]   ;;  %s472_s4 = inlined_call_operand.<no memory space> [shape: f32[1,1], index: 4, kind: input, shape index: {}]   ;;  %s473_s5 = inlined_call_operand.vmem [shape: f32[2,1], index: 5, kind: output, shape index: {}]  }
   0x1   :  { %v38_v0 = vld [vmem:[%s468_s1 + $0x78] sm:$0xff]  ;;  %v37_v1 = vld [vmem:[%s468_s1 + $0x70] sm:$0xff]  ;;  %v36_v2 = vld [vmem:[%s468_s1 + $0x68] sm:$0xff]  ;;  %119 = vmatprep.mubr.f32.mxu0 %v281_v3  ;;  %v10_v63 = vstv %s472_s4 }
   0x2   :  { %71 = vmatprep.subr.mxu0 %v38_v0  ;;  %v35_v4 = vld [vmem:[%s468_s1 + $0x60] sm:$0xff]  ;;  %v34_v5 = vld [vmem:[%s468_s1 + $0x58] sm:$0xff]  ;;  %v33_v6 = vld [vmem:[%s468_s1 + $0x50] sm:$0xff]  ;;  %v42_v51 = vshrl.u32 %v41_v50, 7  ;;  %11 = vst [vmem:[#allocation2] sm:$0x1] %v10_v63 }
   0x3   :  { %72 = vmatpush1.msra.mxu0 %v37_v1  ;;  %v32_v7 = vld [vmem:[%s468_s1 + $0x48] sm:$0xff]  ;;  %v31_v8 = vld [vmem:[%s468_s1 + $0x40] sm:$0xff]  ;;  %v30_v9 = vld [vmem:[%s468_s1 + $0x38] sm:$0xff] }
   0x4   :  { %73 = vmatprep.subr.mxu0 %v36_v2  ;;  %v159_v10 = vld [vmem:[%s469_s3 + $0xf8] sm:$0xff]  ;;  %v158_v12 = vld [vmem:[%s469_s3 + $0xf0] sm:$0xff]  ;;  %v157_v15 = vld [vmem:[%s469_s3 + $0xe8] sm:$0xff]  ;;  %v43_v52 = vsub.s32 0, %v42_v51  ;;  %v47_v54 = vsub.s32 1, %v42_v51 }
   0x5   :  { %74 = vmatpush1.msra.mxu0 %v35_v4  ;;  %245 = vmatprep.subr.mxu1 %v159_v10  ;;  %v143_v11 = vld [vmem:[%s469_s3 + $0x78] sm:$0xff]  ;;  %v142_v13 = vld [vmem:[%s469_s3 + $0x70] sm:$0xff]  ;;  %v28_v16 = vld [vmem:[%s468_s1 + $0x28] sm:$0xff] }
   0x6   :  { %75 = vmatprep.subr.mxu0 %v34_v5  ;;  %v29_v14 = vld [vmem:[%s468_s1 + $0x30] sm:$0xff]  ;;  %246 = vmatpush3.msra.mxu1 %v143_v11  ;;  %v141_v17 = vld [vmem:[%s469_s3 + $0x68] sm:$0xff]  ;;  %v27_v18 = vld [vmem:[%s468_s1 + $0x20] sm:$0xff] }
   0x7   :  { %76 = vmatpush1.msra.mxu0 %v33_v6  ;;  %247 = vmatprep.subr.mxu1 %v158_v12  ;;  %v156_v19 = vld [vmem:[%s469_s3 + $0xe0] sm:$0xff]  ;;  %v26_v20 = vld [vmem:[%s468_s1 + $0x18] sm:$0xff]  ;;  %v25_v22 = vld [vmem:[%s468_s1 + $0x10] sm:$0xff] }
   0x8   :  { %77 = vmatprep.subr.mxu0 %v32_v7  ;;  %248 = vmatpush3.msra.mxu1 %v142_v13  ;;  %v140_v21 = vld [vmem:[%s469_s3 + $0x60] sm:$0xff]  ;;  %v155_v23 = vld [vmem:[%s469_s3 + $0xd8] sm:$0xff]  ;;  %v24_v24 = vld [vmem:[%s468_s1 + $0x8] sm:$0xff] }
   0x9   :  { %78 = vmatpush1.msra.mxu0 %v31_v8  ;;  %249 = vmatprep.subr.mxu1 %v157_v15  ;;  %v139_v25 = vld [vmem:[%s469_s3 + $0x58] sm:$0xff]  ;;  %v23_v26 = vld [vmem:[%s468_s1] sm:$0xff]  ;;  %v154_v27 = vld [vmem:[%s469_s3 + $0xd0] sm:$0xff] }
   0xa   :  { %79 = vmatprep.subr.mxu0 %v30_v9  ;;  %250 = vmatpush3.msra.mxu1 %v141_v17  ;;  %v22_v28 = vld [vmem:[%s470_s0] sm:$0x3]  ;;  %v138_v29 = vld [vmem:[%s469_s3 + $0x50] sm:$0xff]  ;;  %v153_v30 = vld [vmem:[%s469_s3 + $0xc8] sm:$0xff] }
   0xb   :  { %80 = vmatpush1.msra.mxu0 %v29_v14  ;;  %251 = vmatprep.subr.mxu1 %v156_v19  ;;  %v137_v31 = vld [vmem:[%s469_s3 + $0x48] sm:$0xff]  ;;  %v152_v32 = vld [vmem:[%s469_s3 + $0xc0] sm:$0xff]  ;;  %v151_v34 = vld [vmem:[%s469_s3 + $0xb8] sm:$0xff] }
   0xc   :  { %81 = vmatprep.subr.mxu0 %v28_v16  ;;  %252 = vmatpush3.msra.mxu1 %v140_v21  ;;  %v136_v33 = vld [vmem:[%s469_s3 + $0x40] sm:$0xff]  ;;  %v135_v35 = vld [vmem:[%s469_s3 + $0x38] sm:$0xff]  ;;  %v150_v36 = vld [vmem:[%s469_s3 + $0xb0] sm:$0xff] }
   0xd   :  { %82 = vmatpush1.msra.mxu0 %v27_v18  ;;  %253 = vmatprep.subr.mxu1 %v155_v23  ;;  %v134_v37 = vld [vmem:[%s469_s3 + $0x30] sm:$0xff]  ;;  %v149_v38 = vld [vmem:[%s469_s3 + $0xa8] sm:$0xff]  ;;  %v148_v40 = vld [vmem:[%s469_s3 + $0xa0] sm:$0xff] }
   0xe   :  { %83 = vmatprep.subr.mxu0 %v26_v20  ;;  %254 = vmatpush3.msra.mxu1 %v139_v25  ;;  %v133_v39 = vld [vmem:[%s469_s3 + $0x28] sm:$0xff]  ;;  %v132_v41 = vld [vmem:[%s469_s3 + $0x20] sm:$0xff]  ;;  %v147_v42 = vld [vmem:[%s469_s3 + $0x98] sm:$0xff] }
   0xf   :  { %84 = vmatpush1.msra.mxu0 %v25_v22  ;;  %255 = vmatprep.subr.mxu1 %v154_v27  ;;  %v131_v43 = vld [vmem:[%s469_s3 + $0x18] sm:$0xff]  ;;  %v146_v44 = vld [vmem:[%s469_s3 + $0x90] sm:$0xff]  ;;  %v145_v46 = vld [vmem:[%s469_s3 + $0x88] sm:$0xff] }
  0x10   :  { %85 = vmatprep.subr.mxu0 %v24_v24  ;;  %256 = vmatpush3.msra.mxu1 %v138_v29  ;;  %v130_v45 = vld [vmem:[%s469_s3 + $0x10] sm:$0xff]  ;;  %v129_v47 = vld [vmem:[%s469_s3 + $0x8] sm:$0xff]  ;;  %v144_v48 = vld [vmem:[%s469_s3 + $0x80] sm:$0xff] }
  0x11   :  { %86 = vmatpush1.msra.mxu0 %v23_v26  ;;  %257 = vmatprep.subr.mxu1 %v153_v30  ;;  %v128_v49 = vld [vmem:[%s469_s3] sm:$0xff] }
  0x12   :  { %243 = vmatmul.mubr.msk.f32.vlgmr.msra.gmra.mxu0 %vm51_vm0, %v22_v28  ;;  %258 = vmatpush3.msra.mxu1 %v137_v31  ;;  %v39_v53 = vld [vmem:[%s471_s2] sm:$0x3] }
  0x13   :  { %259 = vmatprep.subr.mxu1 %v152_v32  ;;  %v44_v55 = vrot.slane %v39_v53, %v43_v52  ;;  %v48_v56 = vrot.slane %v39_v53, %v47_v54  ;;  %v244_v1 = vld [vmem:[#allocation2] ss:$0 sm:$0xff] }
  0x14   :  { %260 = vmatpush3.msra.mxu1 %v136_v33 }
  0x15   :  { %261 = vmatprep.subr.mxu1 %v151_v34 }
  0x16   :  { %262 = vmatpush3.msra.mxu1 %v135_v35 }
  0x17   :  { %263 = vmatprep.subr.mxu1 %v150_v36 }
  0x18   :  { %264 = vmatpush3.msra.mxu1 %v134_v37 }
  0x19   :  { %265 = vmatprep.subr.mxu1 %v149_v38 }
  0x1a   :  { %266 = vmatpush3.msra.mxu1 %v133_v39 }
  0x1b   :  { %267 = vmatprep.subr.mxu1 %v148_v40 }
  0x1c   :  { %268 = vmatpush3.msra.mxu1 %v132_v41 }
  0x1d   :  { %269 = vmatprep.subr.mxu1 %v147_v42 }
  0x1e   :  { %270 = vmatpush3.msra.mxu1 %v131_v43 }
  0x1f   :  { %271 = vmatprep.subr.mxu1 %v146_v44 }
  0x20   :  { %272 = vmatpush3.msra.mxu1 %v130_v45 }
  0x21   :  { %273 = vmatprep.subr.mxu1 %v145_v46 }
  0x22   :  { %274 = vmatpush3.msra.mxu1 %v129_v47 }
  0x23   :  { %275 = vmatprep.subr.mxu1 %v144_v48 }
  0x24   :  { %276 = vmatpush3.msra.mxu1 %v128_v49 }
  0xd2   :  { %v121_v57 = vpop.f32.mrf.mxu0 }
  0xd3   :  { %v122_v58 = vadd.f32 %v121_v57, %v44_v55 }
  0xd4   :  { %v123_v59 = vpop.f32.mrf.mxu0 }
  0xd5   :  { %v124_v60 = vadd.f32 %v123_v59, %v48_v56  ;;  %v126_v62 = vmax.f32 %v122_v58, 0.0 }
  0xd7   :  { %v127_v61 = vmax.f32 %v124_v60, 0.0 }
  0xd9   :  { %231 = vmatprep.mubr.f32.mxu1 %v127_v61 }
  0xda   :  { %232 = vmatmul.mubr.f32.vlgmr.msra.gmra.mxu1 %v126_v62 }
 0x19a   :  { %v277_v0 = vpop.f32.mrf.mxu1 }
 0x19c   :  { %v278_v2 = vpop.f32.mrf.mxu1 }
 0x19d   :  { %v279_v3 = vadd.f32 %v278_v2, %v277_v0 }
 0x19f   :  { %v234_v4 = vadd.f32 %v279_v3, %v244_v1 }
 0x1a1   :  { %238 = vst.msk [vmem:[%s473_s5] sm:$0x3] %vm237_vm1, %v234_v4 }

// kernel: enhanced_cnn_forward.5
= control target key start
LH: loop header
LB: loop body
LE: loop exit
PB: predicated region body
PF: predicated region fallthrough
CT: control target
= control target key end

     0   :  { %s2277_s24 = smov 0   ;;  %s2630_s0 = inlined_call_operand.vmem [shape: f32[2,48,96], index: 0, kind: input, shape index: {}]   ;;  %s2631_s1 = inlined_call_operand.vmem [shape: bf16[9,96,128], index: 1, kind: input, shape index: {}]   ;;  %s2632_s2 = inlined_call_operand.vmem [shape: f32[1,128], index: 2, kind: input, shape index: {}]   ;;  %s2633_s3 = inlined_call_operand.vmem [shape: f32[1,128], index: 3, kind: input, shape index: {}]   ;;  %s2634_s4 = inlined_call_operand.vmem [shape: f32[128,64], index: 4, kind: input, shape index: {}]   ;;  %s2635_s5 = inlined_call_operand.vmem [shape: f32[128,64], index: 5, kind: input, shape index: {}]   ;;  %s2636_s6 = inlined_call_operand.vmem [shape: f32[4,15], index: 6, kind: input, shape index: {}]   ;;  %s2637_s7 = inlined_call_operand.vmem [shape: f32[2,4,64], index: 7, kind: output, shape index: {}]  }
   0x1 LB: > { %s1649_s25 = sadd.s32 4294967295, %s2233_s24   ;;  %p1653_p0 = scmp.ge.s32.totalorder %s2233_s24, 1  ;;  %s2233_s24 = sphi %s2277_s24, %s17_s24  }
   0x2   : > { %p237_p1 = scmp.lt.s32.totalorder %s2233_s24, 3 }
   0x4   : > { %p238_p2 = pnand %p1653_p0, %p237_p1 }
   0x5   : > { %p268_p3 = scmp.lt.s32.totalorder (!%p238_p2), %s1649_s25, 1 }
   0x6   : > { %241 = sbr.rel (%p238_p2) target bundleno = 745 (0x2e9), region = 48 }
   0xb   : > { %v2173_v0 = vld [vmem:[%s2631_s1 + $0x58] sm:$0xff]   ;;  %v2174_v1 = vld [vmem:[%s2631_s1 + $0x28] sm:$0xff]   ;;  %v2175_v2 = vld [vmem:[%s2631_s1 + $0x50] sm:$0xff]   ;;  %s2639_s25 = smov (!%p268_p3, %s1649_s25), 1  ;;  %vm349_vm0 = vcmask 785408   ;;  %vm1297_vm1 = vcmask 1046528  }
   0xc   : > { %1941 = vmatprep.subr.bf16.mxu0 %v2173_v0  ;;  %1957 = vmatprep.subr.bf16.mxu1 %v2174_v1  ;;  %v2176_v3 = vld [vmem:[%s2631_s1 + $0x20] sm:$0xff]   ;;  %v2177_v4 = vld [vmem:[%s2631_s1 + $0x48] sm:$0xff]   ;;  %v2178_v5 = vld [vmem:[%s2631_s1 + $0x18] sm:$0xff]   ;;  %s2162_s15 = smul.u32 48, %s2639_s25  ;;  %vm1307_vm2 = vcmask 1041408   ;;  %vm1317_vm3 = vcmask 1040384  }
   0xd   : > { %1942 = vmatpush3.bf16.msra.mxu0 %v2173_v0  ;;  %1958 = vmatpush3.bf16.msra.mxu1 %v2174_v1  ;;  %v2179_v6 = vld [vmem:[%s2631_s1 + $0x40] sm:$0xff]   ;;  %v2180_v7 = vld [vmem:[%s2631_s1 + $0x10] sm:$0xff]   ;;  %v2181_v8 = vld [vmem:[%s2631_s1 + $0x38] sm:$0xff]   ;;  %vm2236_vm4 = vmmov 0   ;;  %vm1517_vm5 = vcmask 121856   ;;  %s1655_s20 = sshll.u32 %s2639_s25, 2 }
   0xe   : > { %1943 = vmatprep.subr.bf16.mxu0 %v2175_v2  ;;  %1959 = vmatprep.subr.bf16.mxu1 %v2176_v3  ;;  %s2315_s22 = scalar_lea.vmem %s2630_s0, %s2162_s15  ;;  %v2182_v12 = vld [vmem:[%s2631_s1 + $0x8] sm:$0xff]   ;;  %v2183_v16 = vld [vmem:[%s2631_s1 + $0x30] sm:$0xff]   ;;  %v2184_v17 = vld [vmem:[%s2631_s1] sm:$0xff]   ;;  %s276_s26 = scalar_lea.vmem %s2637_s7, %s1655_s20  ;;  %vm1594_vm6 = vcmask 519168  }
   0xf   : > { %v295_v9 = vld [vmem:[%s2315_s22 + $0x6] sm:$0xff]  ;;  %v296_v10 = vld [vmem:[%s2315_s22 + $0xe] sm:$0xff]  ;;  %v297_v18 = vld [vmem:[%s2315_s22 + $0x16] sm:$0xff] }
  0x10   : > { %v278_v11 = vld [vmem:[%s2315_s22 + $0x5] sm:$0xff]  ;;  %v298_v13 = vpack.c.bf16 %v296_v10, %v295_v9  ;;  %v2327_v14 = vld [vmem:[%s2315_s22 + $0xd] sm:$0xff]  ;;  %v2340_v19 = vld [vmem:[%s2315_s22 + $0x15] sm:$0xff]  ;;  %v299_v22 = vpack.c.bf16 %v297_v18, %v297_v18 }
  0x11   : > { %1944 = vmatpush3.bf16.msra.mxu0 %v2175_v2  ;;  %1960 = vmatpush3.bf16.msra.mxu1 %v2176_v3  ;;  %v281_v15 = vpack.c.bf16 %v2327_v14, %v278_v11  ;;  %v2185_v20 = vld [vmem:[%s2631_s1 + $0x88] sm:$0xff]   ;;  %v2186_v21 = vld [vmem:[%s2631_s1 + $0xb8] sm:$0xff]   ;;  %v282_v23 = vpack.c.bf16 %v2340_v19, %v2340_v19  ;;  %v2187_v24 = vld [vmem:[%s2631_s1 + $0x80] sm:$0xff]   ;;  %v830_v51 = vpack.c.bf16 %v2340_v19, %v2327_v14 }
  0x12   : > { %1945 = vmatprep.subr.bf16.mxu0 %v2177_v4  ;;  %1961 = vmatprep.subr.bf16.mxu1 %v2178_v5  ;;  %v2188_v25 = vld [vmem:[%s2631_s1 + $0xb0] sm:$0xff]   ;;  %v494_v26 = vld [vmem:[%s2315_s22 + $0x7] sm:$0xff]  ;;  %v2189_v29 = vld [vmem:[%s2631_s1 + $0x78] sm:$0xff]  }
  0x13   : > { %1953 = vmatprep.mubr.msk.bf16.mxu0 %vm349_vm0, %v298_v13  ;;  %1969 = vmatprep.mubr.msk.bf16.mxu1 %vm349_vm0, %v281_v15  ;;  %v495_v27 = vld [vmem:[%s2315_s22 + $0xf] sm:$0xff]  ;;  %v2192_v35 = vld [vmem:[%s2631_s1 + $0xa0] sm:$0xff]   ;;  %v2194_v37 = vld [vmem:[%s2631_s1 + $0x98] sm:$0xff]  }
  0x14   : > { %v497_v28 = vpack.c.bf16 %v495_v27, %v494_v26  ;;  %v605_v30 = vld [vmem:[%s2315_s22 + $0xb] sm:$0xff]  ;;  %v2365_v31 = vld [vmem:[%s2315_s22 + $0x13] sm:$0xff]  ;;  %v2195_v38 = vld [vmem:[%s2631_s1 + $0x60] sm:$0xff]  }
  0x15   : > { %1946 = vmatpush3.bf16.msra.mxu0 %v2177_v4  ;;  %1962 = vmatpush3.bf16.msra.mxu1 %v2178_v5  ;;  %v2190_v32 = vld [vmem:[%s2631_s1 + $0xa8] sm:$0xff]   ;;  %v608_v33 = vpack.c.bf16 %v2365_v31, %v605_v30  ;;  %v2191_v34 = vld [vmem:[%s2631_s1 + $0x70] sm:$0xff]   ;;  %v2396_v42 = vld [vmem:[%s2315_s22 + $0x1b] sm:$0xff] }
  0x16   : > { %1947 = vmatprep.subr.bf16.mxu0 %v2179_v6  ;;  %1963 = vmatprep.subr.bf16.mxu1 %v2180_v7  ;;  %v2193_v36 = vld [vmem:[%s2631_s1 + $0x68] sm:$0xff]   ;;  %v2196_v39 = vld [vmem:[%s2631_s1 + $0x90] sm:$0xff]   ;;  %v2198_v43 = vld [vmem:[%s2631_s1 + $0x118] sm:$0xff]   ;;  %v609_v47 = vpack.c.bf16 %v2396_v42, %v2396_v42 }
  0x17   : > { %v496_v40 = vld [vmem:[%s2315_s22 + $0x17] sm:$0xff]  ;;  %v2197_v41 = vld [vmem:[%s2631_s1 + $0xe8] sm:$0xff]   ;;  %v2199_v48 = vld [vmem:[%s2631_s1 + $0xe0] sm:$0xff]  }
  0x18   : > { %v716_v44 = vld [vmem:[%s2315_s22 + $0xc] sm:$0xff]  ;;  %v498_v45 = vpack.c.bf16 %v496_v40, %v496_v40  ;;  %v717_v46 = vld [vmem:[%s2315_s22 + $0x14] sm:$0xff]  ;;  %v2204_v55 = vld [vmem:[%s2631_s1 + $0x100] sm:$0xff]  }
  0x19   : > { %1948 = vmatpush3.bf16.msra.mxu0 %v2179_v6  ;;  %1964 = vmatpush3.bf16.msra.mxu1 %v2180_v7  ;;  %v2200_v49 = vld [vmem:[%s2631_s1 + $0x110] sm:$0xff]   ;;  %v719_v50 = vpack.c.bf16 %v717_v46, %v716_v44  ;;  %v2201_v52 = vld [vmem:[%s2631_s1 + $0xd8] sm:$0xff]   ;;  %v2202_v53 = vld [vmem:[%s2631_s1 + $0x108] sm:$0xff]  }
  0x1a   : > { %1949 = vmatprep.subr.bf16.mxu0 %v2181_v8  ;;  %1965 = vmatprep.subr.bf16.mxu1 %v2182_v12  ;;  %v2203_v54 = vld [vmem:[%s2631_s1 + $0xd0] sm:$0xff]   ;;  %v2205_v56 = vld [vmem:[%s2631_s1 + $0xc8] sm:$0xff]   ;;  %v2206_v57 = vld [vmem:[%s2631_s1 + $0xf8] sm:$0xff]  }
  0x1b   : > { %v2207_v58 = vld [vmem:[%s2631_s1 + $0xc0] sm:$0xff]   ;;  %v2208_v59 = vld [vmem:[%s2631_s1 + $0xf0] sm:$0xff]   ;;  %v2209_v61 = vld [vmem:[%s2631_s1 + $0x148] sm:$0xff]  }
  0x1c   : > { %v718_v60 = vld [vmem:[%s2315_s22 + $0x1c] sm:$0xff]  ;;  %v938_v1 = vld [vmem:[%s2315_s22 + $0x11] sm:$0xff]  ;;  %v2214_v11 = vld [vmem:[%s2631_s1 + $0x168] sm:$0xff]  }
  0x1d   : > { %1950 = vmatpush3.bf16.msra.mxu0 %v2181_v8  ;;  %1966 = vmatpush3.bf16.msra.mxu1 %v2182_v12  ;;  %v829_v62 = vld [vmem:[%s2315_s22 + $0x1d] sm:$0xff]  ;;  %v720_v0 = vpack.c.bf16 %v718_v60, %v718_v60  ;;  %v1049_v4 = vld [vmem:[%s2315_s22 + $0x12] sm:$0xff]  ;;  %v2217_v14 = vld [vmem:[%s2631_s1 + $0x128] sm:$0xff]  }
  0x1e   : > { %1951 = vmatprep.subr.bf16.mxu0 %v2183_v16  ;;  %1967 = vmatprep.subr.bf16.mxu1 %v2184_v17  ;;  %v2210_v63 = vld [vmem:[%s2631_s1 + $0x178] sm:$0xff]   ;;  %v831_v3 = vpack.c.bf16 %v829_v62, %v829_v62  ;;  %v2211_v6 = vld [vmem:[%s2631_s1 + $0x140] sm:$0xff]   ;;  %v2212_v7 = vld [vmem:[%s2631_s1 + $0x170] sm:$0xff]  }
  0x1f   : > { %v939_v2 = vld [vmem:[%s2315_s22 + $0x19] sm:$0xff]  ;;  %v2215_v12 = vld [vmem:[%s2631_s1 + $0x130] sm:$0xff]   ;;  %v940_v18 = vld [vmem:[%s2315_s22 + $0x21] sm:$0xff] }
  0x20   : > { %v1050_v5 = vld [vmem:[%s2315_s22 + $0x1a] sm:$0xff]  ;;  %v941_v8 = vpack.c.bf16 %v939_v2, %v938_v1  ;;  %v2221_v19 = vld [vmem:[%s2631_s1 + $0x1a8] sm:$0xff]   ;;  %v2224_v26 = vld [vmem:[%s2631_s1 + $0x190] sm:$0xff]  }
  0x21   : > { %1952 = vmatpush3.bf16.msra.mxu0 %v2183_v16  ;;  %1968 = vmatpush3.bf16.msra.mxu1 %v2184_v17  ;;  %v1052_v9 = vpack.c.bf16 %v1050_v5, %v1049_v4  ;;  %v2213_v10 = vld [vmem:[%s2631_s1 + $0x138] sm:$0xff]   ;;  %v2216_v13 = vld [vmem:[%s2631_s1 + $0x160] sm:$0xff]   ;;  %v2220_v17 = vld [vmem:[%s2631_s1 + $0x150] sm:$0xff]  }
  0x22   : > { %1973 = vmatprep.subr.bf16.mxu0 %v2185_v20  ;;  %1989 = vmatprep.subr.bf16.mxu1 %v2186_v21  ;;  %v2218_v15 = vld [vmem:[%s2631_s1 + $0x158] sm:$0xff]   ;;  %v2219_v16 = vld [vmem:[%s2631_s1 + $0x120] sm:$0xff]   ;;  %v2225_v27 = vld [vmem:[%s2631_s1 + $0x188] sm:$0xff]  }
  0x23   : > { %v1434_v40 = vld [vmem:[%s2635_s5 + $0x58] sm:$0xff]  ;;  %v1432_v44 = vld [vmem:[%s2635_s5 + $0x48] sm:$0xff]  ;;  %v1431_v46 = vld [vmem:[%s2635_s5 + $0x40] sm:$0xff] }
  0x24   : > { %1954 = vmatmul.mubr.msk.bf16.vlgmr.msra.gmra.mxu0 %vm349_vm0, %v299_v22  ;;  %1970 = vmatmul.mubr.msk.bf16.vlgmr.msra.gmra.mxu1 %vm349_vm0, %v282_v23  ;;  %v2222_v23 = vld [vmem:[%s2631_s1 + $0x1a0] sm:$0xff]   ;;  %v1424_v60 = vld [vmem:[%s2635_s5 + $0x8] sm:$0xff] }
  0x25   : > { %1974 = vmatpush3.bf16.msra.mxu0 %v2185_v20  ;;  %1990 = vmatpush3.bf16.msra.mxu1 %v2186_v21  ;;  %v1051_v20 = vld [vmem:[%s2315_s22 + $0x22] sm:$0xff]  ;;  %v942_v21 = vpack.c.bf16 %v940_v18, %v940_v18 }
  0x26   : > { %1975 = vmatprep.subr.bf16.mxu0 %v2187_v24  ;;  %1991 = vmatprep.subr.bf16.mxu1 %v2188_v25  ;;  %v1053_v22 = vpack.c.bf16 %v1051_v20, %v1051_v20  ;;  %v1423_v62 = vld [vmem:[%s2635_s5] sm:$0xff] }
  0x27   : > { %1985 = vmatprep.mubr.msk.bf16.mxu0 %vm349_vm0, %v497_v28  ;;  %2001 = vmatprep.mubr.msk.bf16.mxu1 %vm349_vm0, %v608_v33  ;;  %v2226_v28 = vld [vmem:[%s2631_s1 + $0x180] sm:$0xff]   ;;  %v1339_v33 = vld [vmem:[%s2634_s4 + $0x70] sm:$0xff] }
  0x29   : > { %1976 = vmatpush3.bf16.msra.mxu0 %v2187_v24  ;;  %1992 = vmatpush3.bf16.msra.mxu1 %v2188_v25  ;;  %v1163_v24 = vpack.c.bf16 %v2396_v42, %v2365_v31  ;;  %v2223_v25 = vld [vmem:[%s2631_s1 + $0x198] sm:$0xff]   ;;  %v1433_v42 = vld [vmem:[%s2635_s5 + $0x50] sm:$0xff] }
  0x2a   : > { %1977 = vmatprep.subr.bf16.mxu0 %v2189_v29  ;;  %1993 = vmatprep.subr.bf16.mxu1 %v2190_v32  ;;  %v1340_v31 = vld [vmem:[%s2634_s4 + $0x78] sm:$0xff] }
  0x2d   : > { %1978 = vmatpush3.bf16.msra.mxu0 %v2189_v29  ;;  %1994 = vmatpush3.bf16.msra.mxu1 %v2190_v32  ;;  %v1162_v29 = vld [vmem:[%s2315_s22 + $0x23] sm:$0xff]  ;;  %v1438_v32 = vld [vmem:[%s2635_s5 + $0x78] sm:$0xff] }
  0x2e   : > { %1979 = vmatprep.subr.bf16.mxu0 %v2191_v34  ;;  %1995 = vmatprep.subr.bf16.mxu1 %v2192_v35  ;;  %v1164_v30 = vpack.c.bf16 %v1162_v29, %v1162_v29 }
  0x31   : > { %1980 = vmatpush3.bf16.msra.mxu0 %v2191_v34  ;;  %1996 = vmatpush3.bf16.msra.mxu1 %v2192_v35  ;;  %v1437_v34 = vld [vmem:[%s2635_s5 + $0x70] sm:$0xff]  ;;  %v1338_v35 = vld [vmem:[%s2634_s4 + $0x68] sm:$0xff] }
  0x32   : > { %1981 = vmatprep.subr.bf16.mxu0 %v2193_v36  ;;  %1997 = vmatprep.subr.bf16.mxu1 %v2194_v37 }
  0x35   : > { %1982 = vmatpush3.bf16.msra.mxu0 %v2193_v36  ;;  %1998 = vmatpush3.bf16.msra.mxu1 %v2194_v37  ;;  %v1436_v36 = vld [vmem:[%s2635_s5 + $0x68] sm:$0xff]  ;;  %v1337_v37 = vld [vmem:[%s2634_s4 + $0x60] sm:$0xff] }
  0x36   : > { %1983 = vmatprep.subr.bf16.mxu0 %v2195_v38  ;;  %1999 = vmatprep.subr.bf16.mxu1 %v2196_v39 }
  0x39   : > { %1984 = vmatpush3.bf16.msra.mxu0 %v2195_v38  ;;  %2000 = vmatpush3.bf16.msra.mxu1 %v2196_v39  ;;  %v1435_v38 = vld [vmem:[%s2635_s5 + $0x60] sm:$0xff]  ;;  %v1336_v39 = vld [vmem:[%s2634_s4 + $0x58] sm:$0xff] }
  0x3a   : > { %2005 = vmatprep.subr.bf16.mxu0 %v2197_v41  ;;  %2021 = vmatprep.subr.bf16.mxu1 %v2198_v43 }
  0x3c   : > { %1986 = vmatmul.mubr.msk.bf16.vlgmr.msra.gmra.mxu0 %vm349_vm0, %v498_v45  ;;  %2002 = vmatmul.mubr.msk.bf16.vlgmr.msra.gmra.mxu1 %vm349_vm0, %v609_v47  ;;  %v1333_v45 = vld [vmem:[%s2634_s4 + $0x40] sm:$0xff]  ;;  %v1332_v47 = vld [vmem:[%s2634_s4 + $0x38] sm:$0xff] }
  0x3d   : > { %2006 = vmatpush3.bf16.msra.mxu0 %v2197_v41  ;;  %2022 = vmatpush3.bf16.msra.mxu1 %v2198_v43  ;;  %v1335_v41 = vld [vmem:[%s2634_s4 + $0x50] sm:$0xff]  ;;  %v1334_v43 = vld [vmem:[%s2634_s4 + $0x48] sm:$0xff] }
  0x3e   : > { %2007 = vmatprep.subr.bf16.mxu0 %v2199_v48  ;;  %2023 = vmatprep.subr.bf16.mxu1 %v2200_v49 }
  0x3f   : > { %2017 = vmatprep.mubr.msk.bf16.mxu0 %vm349_vm0, %v719_v50  ;;  %2033 = vmatprep.mubr.msk.bf16.mxu1 %vm349_vm0, %v830_v51  ;;  %v1429_v50 = vld [vmem:[%s2635_s5 + $0x30] sm:$0xff]  ;;  %v1330_v51 = vld [vmem:[%s2634_s4 + $0x28] sm:$0xff] }
  0x41   : > { %2008 = vmatpush3.bf16.msra.mxu0 %v2199_v48  ;;  %2024 = vmatpush3.bf16.msra.mxu1 %v2200_v49  ;;  %v1430_v48 = vld [vmem:[%s2635_s5 + $0x38] sm:$0xff]  ;;  %v1331_v49 = vld [vmem:[%s2634_s4 + $0x30] sm:$0xff] }
  0x42   : > { %2009 = vmatprep.subr.bf16.mxu0 %v2201_v52  ;;  %2025 = vmatprep.subr.bf16.mxu1 %v2202_v53 }
  0x45   : > { %2010 = vmatpush3.bf16.msra.mxu0 %v2201_v52  ;;  %2026 = vmatpush3.bf16.msra.mxu1 %v2202_v53  ;;  %v1428_v52 = vld [vmem:[%s2635_s5 + $0x28] sm:$0xff]  ;;  %v1329_v53 = vld [vmem:[%s2634_s4 + $0x20] sm:$0xff] }
  0x46   : > { %2011 = vmatprep.subr.bf16.mxu0 %v2203_v54  ;;  %2027 = vmatprep.subr.bf16.mxu1 %v2204_v55 }
  0x49   : > { %2012 = vmatpush3.bf16.msra.mxu0 %v2203_v54  ;;  %2028 = vmatpush3.bf16.msra.mxu1 %v2204_v55  ;;  %v1427_v54 = vld [vmem:[%s2635_s5 + $0x20] sm:$0xff]  ;;  %v1328_v55 = vld [vmem:[%s2634_s4 + $0x18] sm:$0xff] }
  0x4a   : > { %2013 = vmatprep.subr.bf16.mxu0 %v2205_v56  ;;  %2029 = vmatprep.subr.bf16.mxu1 %v2206_v57 }
  0x4d   : > { %2014 = vmatpush3.bf16.msra.mxu0 %v2205_v56  ;;  %2030 = vmatpush3.bf16.msra.mxu1 %v2206_v57  ;;  %v1426_v56 = vld [vmem:[%s2635_s5 + $0x18] sm:$0xff]  ;;  %v1327_v57 = vld [vmem:[%s2634_s4 + $0x10] sm:$0xff] }
  0x4e   : > { %2015 = vmatprep.subr.bf16.mxu0 %v2207_v58  ;;  %2031 = vmatprep.subr.bf16.mxu1 %v2208_v59 }
  0x51   : > { %2016 = vmatpush3.bf16.msra.mxu0 %v2207_v58  ;;  %2032 = vmatpush3.bf16.msra.mxu1 %v2208_v59  ;;  %v1425_v58 = vld [vmem:[%s2635_s5 + $0x10] sm:$0xff]  ;;  %v1326_v59 = vld [vmem:[%s2634_s4 + $0x8] sm:$0xff] }
  0x52   : > { %2037 = vmatprep.subr.bf16.mxu0 %v2209_v61  ;;  %2053 = vmatprep.subr.bf16.mxu1 %v2210_v63 }
  0x54   : > { %2018 = vmatmul.mubr.msk.bf16.vlgmr.msra.gmra.mxu0 %vm349_vm0, %v720_v0  ;;  %2034 = vmatmul.mubr.msk.bf16.vlgmr.msra.gmra.mxu1 %vm349_vm0, %v831_v3 }
  0x55   : > { %2038 = vmatpush3.bf16.msra.mxu0 %v2209_v61  ;;  %2054 = vmatpush3.bf16.msra.mxu1 %v2210_v63  ;;  %v1325_v61 = vld [vmem:[%s2634_s4] sm:$0xff] }
  0x56   : > { %2039 = vmatprep.subr.bf16.mxu0 %v2211_v6  ;;  %2055 = vmatprep.subr.bf16.mxu1 %v2212_v7 }
  0x57   : > { %2049 = vmatprep.mubr.msk.bf16.mxu0 %vm349_vm0, %v941_v8  ;;  %2065 = vmatprep.mubr.msk.bf16.mxu1 %vm349_vm0, %v1052_v9 }
  0x59   : > { %2040 = vmatpush3.bf16.msra.mxu0 %v2211_v6  ;;  %2056 = vmatpush3.bf16.msra.mxu1 %v2212_v7 }
  0x5a   : > { %2041 = vmatprep.subr.bf16.mxu0 %v2213_v10  ;;  %2057 = vmatprep.subr.bf16.mxu1 %v2214_v11 }
  0x5d   : > { %2042 = vmatpush3.bf16.msra.mxu0 %v2213_v10  ;;  %2058 = vmatpush3.bf16.msra.mxu1 %v2214_v11 }
  0x5e   : > { %2043 = vmatprep.subr.bf16.mxu0 %v2215_v12  ;;  %2059 = vmatprep.subr.bf16.mxu1 %v2216_v13 }
  0x61   : > { %2044 = vmatpush3.bf16.msra.mxu0 %v2215_v12  ;;  %2060 = vmatpush3.bf16.msra.mxu1 %v2216_v13 }
  0x62   : > { %2045 = vmatprep.subr.bf16.mxu0 %v2217_v14  ;;  %2061 = vmatprep.subr.bf16.mxu1 %v2218_v15 }
  0x65   : > { %2046 = vmatpush3.bf16.msra.mxu0 %v2217_v14  ;;  %2062 = vmatpush3.bf16.msra.mxu1 %v2218_v15 }
  0x66   : > { %2047 = vmatprep.subr.bf16.mxu0 %v2219_v16  ;;  %2063 = vmatprep.subr.bf16.mxu1 %v2220_v17 }
  0x69   : > { %2048 = vmatpush3.bf16.msra.mxu0 %v2219_v16  ;;  %2064 = vmatpush3.bf16.msra.mxu1 %v2220_v17 }
  0x6a   : > { %2069 = vmatprep.subr.bf16.mxu0 %v2221_v19  ;;  %2085 = vmatprep.subr.mxu1 %v1340_v31 }
  0x6c   : > { %2050 = vmatmul.mubr.msk.bf16.vlgmr.msra.gmra.mxu0 %vm349_vm0, %v942_v21  ;;  %2066 = vmatmul.mubr.msk.bf16.vlgmr.msra.gmra.mxu1 %vm349_vm0, %v1053_v22 }
  0x6d   : > { %2070 = vmatpush3.bf16.msra.mxu0 %v2221_v19  ;;  %2081 = vmatprep.mubr.msk.bf16.mxu0 %vm349_vm0, %v1163_v24 }
  0x6e   : > { %2071 = vmatprep.subr.bf16.mxu0 %v2222_v23  ;;  %2086 = vmatpush3.msra.mxu1 %v1340_v31 }
  0x6f   : > { %2087 = vmatprep.subr.mxu1 %v1339_v33 }
  0x70   : > { %2088 = vmatpush3.msra.mxu1 %v1339_v33 }
  0x71   : > { %2072 = vmatpush3.bf16.msra.mxu0 %v2222_v23  ;;  %2089 = vmatprep.subr.mxu1 %v1338_v35 }
  0x72   : > { %2073 = vmatprep.subr.bf16.mxu0 %v2223_v25  ;;  %2090 = vmatpush3.msra.mxu1 %v1338_v35 }
  0x73   : > { %2091 = vmatprep.subr.mxu1 %v1337_v37 }
  0x74   : > { %2092 = vmatpush3.msra.mxu1 %v1337_v37 }
  0x75   : > { %2074 = vmatpush3.bf16.msra.mxu0 %v2223_v25  ;;  %2093 = vmatprep.subr.mxu1 %v1336_v39 }
  0x76   : > { %2075 = vmatprep.subr.bf16.mxu0 %v2224_v26  ;;  %2094 = vmatpush3.msra.mxu1 %v1336_v39 }
  0x77   : > { %2095 = vmatprep.subr.mxu1 %v1335_v41 }
  0x78   : > { %2096 = vmatpush3.msra.mxu1 %v1335_v41 }
  0x79   : > { %2076 = vmatpush3.bf16.msra.mxu0 %v2224_v26  ;;  %2097 = vmatprep.subr.mxu1 %v1334_v43 }
  0x7a   : > { %2077 = vmatprep.subr.bf16.mxu0 %v2225_v27  ;;  %2098 = vmatpush3.msra.mxu1 %v1334_v43 }
  0x7b   : > { %2099 = vmatprep.subr.mxu1 %v1333_v45 }
  0x7c   : > { %2100 = vmatpush3.msra.mxu1 %v1333_v45 }
  0x7d   : > { %2078 = vmatpush3.bf16.msra.mxu0 %v2225_v27  ;;  %2101 = vmatprep.subr.mxu1 %v1332_v47 }
  0x7e   : > { %2079 = vmatprep.subr.bf16.mxu0 %v2226_v28  ;;  %2102 = vmatpush3.msra.mxu1 %v1332_v47 }
  0x7f   : > { %2103 = vmatprep.subr.mxu1 %v1331_v49 }
  0x80   : > { %2104 = vmatpush3.msra.mxu1 %v1331_v49  ;;  %v1824_v49 = vld [vmem:[%s2632_s2] ss:$0 sm:$0xff] }
  0x81   : > { %2080 = vmatpush3.bf16.msra.mxu0 %v2226_v28  ;;  %2105 = vmatprep.subr.mxu1 %v1330_v51 }
  0x82   : > { %2120 = vmatprep.subr.mxu0 %v1438_v32  ;;  %2106 = vmatpush3.msra.mxu1 %v1330_v51 }
  0x83   : > { %2107 = vmatprep.subr.mxu1 %v1329_v53 }
  0x84   : > { %2082 = vmatmul.mubr.msk.bf16.vlgmr.msra.gmra.mxu0 %vm349_vm0, %v1164_v30  ;;  %2108 = vmatpush3.msra.mxu1 %v1329_v53 }
  0x85   : > { %2121 = vmatpush3.msra.mxu0 %v1438_v32  ;;  %2109 = vmatprep.subr.mxu1 %v1328_v55 }
  0x86   : > { %2122 = vmatprep.subr.mxu0 %v1437_v34  ;;  %2110 = vmatpush3.msra.mxu1 %v1328_v55 }
  0x87   : > { %2123 = vmatpush3.msra.mxu0 %v1437_v34  ;;  %2111 = vmatprep.subr.mxu1 %v1327_v57 }
  0x88   : > { %2124 = vmatprep.subr.mxu0 %v1436_v36  ;;  %2112 = vmatpush3.msra.mxu1 %v1327_v57  ;;  %v1825_v57 = vld [vmem:[%s2633_s3] ss:$0 sm:$0xff] }
  0x89   : > { %2125 = vmatpush3.msra.mxu0 %v1436_v36  ;;  %2113 = vmatprep.subr.mxu1 %v1326_v59 }
  0x8a   : > { %2126 = vmatprep.subr.mxu0 %v1435_v38  ;;  %2114 = vmatpush3.msra.mxu1 %v1326_v59 }
  0x8b   : > { %2127 = vmatpush3.msra.mxu0 %v1435_v38  ;;  %2115 = vmatprep.subr.mxu1 %v1325_v61 }
  0x8c   : > { %2128 = vmatprep.subr.mxu0 %v1434_v40  ;;  %2116 = vmatpush3.msra.mxu1 %v1325_v61 }
  0x8d   : > { %2129 = vmatpush3.msra.mxu0 %v1434_v40 }
  0x8e   : > { %2130 = vmatprep.subr.mxu0 %v1433_v42 }
  0x8f   : > { %2131 = vmatpush3.msra.mxu0 %v1433_v42 }
  0x90   : > { %2132 = vmatprep.subr.mxu0 %v1432_v44 }
  0x91   : > { %2133 = vmatpush3.msra.mxu0 %v1432_v44 }
  0x92   : > { %2134 = vmatprep.subr.mxu0 %v1431_v46 }
  0x93   : > { %2135 = vmatpush3.msra.mxu0 %v1431_v46 }
  0x94   : > { %2136 = vmatprep.subr.mxu0 %v1430_v48 }
  0x95   : > { %2137 = vmatpush3.msra.mxu0 %v1430_v48 }
  0x96   : > { %2138 = vmatprep.subr.mxu0 %v1429_v50 }
  0x97   : > { %2139 = vmatpush3.msra.mxu0 %v1429_v50 }
  0x98   : > { %2140 = vmatprep.subr.mxu0 %v1428_v52 }
  0x99   : > { %2141 = vmatpush3.msra.mxu0 %v1428_v52 }
  0x9a   : > { %2142 = vmatprep.subr.mxu0 %v1427_v54 }
  0x9b   : > { %2143 = vmatpush3.msra.mxu0 %v1427_v54 }
  0x9c   : > { %2144 = vmatprep.subr.mxu0 %v1426_v56 }
  0x9d   : > { %2145 = vmatpush3.msra.mxu0 %v1426_v56 }
  0x9e   : > { %2146 = vmatprep.subr.mxu0 %v1425_v58 }
  0x9f   : > { %2147 = vmatpush3.msra.mxu0 %v1425_v58 }
  0xa0   : > { %2148 = vmatprep.subr.mxu0 %v1424_v60 }
  0xa1   : > { %2149 = vmatpush3.msra.mxu0 %v1424_v60 }
  0xa2   : > { %2150 = vmatprep.subr.mxu0 %v1423_v62 }
  0xa3   : > { %2151 = vmatpush3.msra.mxu0 %v1423_v62 }
  0xe4   : > { %v1955_v63 = vpop.f32.mrf.mxu0  ;;  %v1971_v0 = vpop.f32.mrf.mxu1 }
  0xe5   : > { %v489_v1 = vadd.f32 %v1971_v0, %v1955_v63 }
  0xe6   : > { %v390_v2 = vpop.f32.mrf.mxu0  ;;  %v480_v3 = vpop.f32.mrf.mxu1 }
  0xe7   : > { %v481_v4 = vadd.f32 %v480_v3, %v390_v2 }
  0xe8   : > { %v1956_v5 = vpop.f32.mrf.mxu0  ;;  %v1972_v6 = vpop.f32.mrf.mxu1 }
  0xea   : > { %v393_v7 = vpop.f32.mrf.mxu0  ;;  %v483_v8 = vpop.f32.mrf.mxu1 }
  0xeb   : > { %v484_v9 = vadd.f32 %v483_v8, %v393_v7 }
  0xfc   : > { %v1987_v10 = vpop.f32.mrf.mxu0  ;;  %v2003_v12 = vpop.f32.mrf.mxu1 }
  0xfd   : > { %v604_v11 = vadd.f32 %v1987_v10, %v489_v1 }
  0xfe   : > { %v588_v13 = vpop.f32.mrf.mxu0  ;;  %v699_v16 = vpop.f32.mrf.mxu1 }
  0xff   : > { %v602_v14 = vadd.f32 %v588_v13, %v481_v4  ;;  %v715_v15 = vadd.f32 %v2003_v12, %v604_v11 }
 0x100   : > { %v1988_v17 = vpop.f32.mrf.mxu0  ;;  %v2004_v19 = vpop.f32.mrf.mxu1 }
 0x101   : > { %v713_v18 = vadd.f32 %v699_v16, %v602_v14 }
 0x102   : > { %v591_v20 = vpop.f32.mrf.mxu0  ;;  %v702_v21 = vpop.f32.mrf.mxu1 }
 0x103   : > { %v603_v36 = vadd.f32 %v591_v20, %v484_v9 }
 0x105   : > { %v714_v39 = vadd.f32 %v702_v21, %v603_v36 }
 0x114   : > { %v2019_v22 = vpop.f32.mrf.mxu0  ;;  %v2035_v23 = vpop.f32.mrf.mxu1 }
 0x115   : > { %v826_v37 = vadd.f32 %v2019_v22, %v715_v15 }
 0x116   : > { %v810_v24 = vpop.f32.mrf.mxu0  ;;  %v921_v25 = vpop.f32.mrf.mxu1 }
 0x117   : > { %v824_v38 = vadd.f32 %v810_v24, %v713_v18  ;;  %v937_v40 = vadd.f32 %v2035_v23, %v826_v37 }
 0x118   : > { %v2020_v26 = vpop.f32.mrf.mxu0  ;;  %v2036_v27 = vpop.f32.mrf.mxu1 }
 0x119   : > { %v935_v41 = vadd.f32 %v921_v25, %v824_v38 }
 0x11a   : > { %v813_v28 = vpop.f32.mrf.mxu0  ;;  %v924_v29 = vpop.f32.mrf.mxu1 }
 0x11b   : > { %v825_v42 = vadd.f32 %v813_v28, %v714_v39  ;;  %v2235_v28 = vmov 0.0  }
 0x11c   : > { %2155 = vmatprep.subr.mxu1 %v2235_v28 }
 0x11d   : > { %v936_v46 = vadd.f32 %v924_v29, %v825_v42 }
 0x12c   : > { %v2051_v30 = vpop.f32.mrf.mxu0  ;;  %v2067_v31 = vpop.f32.mrf.mxu1 }
 0x12d   : > { %v1048_v43 = vadd.f32 %v2051_v30, %v937_v40 }
 0x12e   : > { %v1032_v32 = vpop.f32.mrf.mxu0  ;;  %v1143_v33 = vpop.f32.mrf.mxu1 }
 0x12f   : > { %v1046_v44 = vadd.f32 %v1032_v32, %v935_v41  ;;  %v1159_v47 = vadd.f32 %v2067_v31, %v1048_v43 }
 0x130   : > { %v2052_v34 = vpop.f32.mrf.mxu0  ;;  %v2068_v35 = vpop.f32.mrf.mxu1 }
 0x131   : > { %v1157_v50 = vadd.f32 %v1143_v33, %v1046_v44  ;;  %v1516_v35 = vld [vmem:[%s2636_s6] sm:$0xf] }
 0x132   : > { %v1035_v45 = vpop.f32.mrf.mxu0  ;;  %v1146_v53 = vpop.f32.mrf.mxu1 }
 0x133   : > { %v1047_v51 = vadd.f32 %v1035_v45, %v936_v46 }
 0x135   : > { %v1158_v59 = vadd.f32 %v1146_v53, %v1047_v51 }
 0x144   : > { %v2083_v48 = vpop.f32.mrf.mxu0 }
 0x145   : > { %v1270_v52 = vadd.f32 %v2083_v48, %v1159_v47 }
 0x146   : > { %v1254_v54 = vpop.f32.mrf.mxu0 }
 0x147   : > { %v1280_v55 = vmul.f32 %v1824_v49, %v1270_v52  ;;  %v1268_v56 = vadd.f32 %v1254_v54, %v1157_v50 }
 0x148   : > { %v2084_v58 = vpop.f32.mrf.mxu0 }
 0x149   : > { %v1278_v60 = vmul.f32 %v1824_v49, %v1268_v56  ;;  %v1290_v62 = vadd.f32 %v1825_v57, %v1280_v55 }
 0x14a   : > { %v1257_v61 = vpop.f32.mrf.mxu0 }
 0x14b   : > { %v1288_v63 = vadd.f32 %v1825_v57, %v1278_v60  ;;  %v1269_v0 = vadd.f32 %v1257_v61, %v1158_v59  ;;  %v1293_v2 = vmax.f32 %v1290_v62, 0.0 }
 0x14d   : > { %v1279_v1 = vmul.f32 %v1824_v49, %v1269_v0  ;;  %v1291_v3 = vmax.f32 %v1288_v63, 0.0  ;;  %v1301_v6 = vrot.slane %v1293_v2, 1  ;;  %v1311_v7 = vrot.slane %v1293_v2, 6 }
 0x14e   : > { %v1319_v13 = vrot.slane %v1293_v2, 7 }
 0x14f   : > { %v1289_v4 = vadd.f32 %v1825_v57, %v1279_v1  ;;  %v1298_v8 = vrot.slane %v1291_v3, 1  ;;  %v1308_v9 = vrot.slane %v1291_v3, 6 }
 0x151   : > { %v1292_v5 = vmax.f32 %v1289_v4, 0.0 }
 0x153   : > { %v1299_v10 = vrot.slane %v1292_v5, 1  ;;  %v1309_v11 = vrot.slane %v1292_v5, 6  ;;  %v1318_v12 = vrot.slane %v1292_v5, 7 }
 0x155   : > { %v1300_v14 = vsel %vm1297_vm1, %v1298_v8, %v1299_v10  ;;  %v1302_v15 = vsel %vm1297_vm1, %v1299_v10, %v1301_v6  ;;  %v1310_v16 = vsel %vm1307_vm2, %v1308_v9, %v1309_v11  ;;  %v1312_v17 = vsel %vm1307_vm2, %v1309_v11, %v1311_v7 }
 0x156   : > { %v1305_v18 = vmax.f32 %v1291_v3, %v1300_v14  ;;  %v1306_v19 = vmax.f32 %v1292_v5, %v1302_v15  ;;  %v1320_v20 = vsel %vm1317_vm3, %v1318_v12, %v1319_v13 }
 0x158   : > { %v1315_v21 = vmax.f32 %v1305_v18, %v1310_v16  ;;  %v1316_v22 = vmax.f32 %v1306_v19, %v1312_v17 }
 0x15a   : > { %v1323_v23 = vmax.f32 %v1315_v21, %v1318_v12  ;;  %v1324_v24 = vmax.f32 %v1316_v22, %v1320_v20 }
 0x15c   : > { %v1343_v25 = vrot.slane %v1323_v23, 1  ;;  %v1344_v26 = vrot.slane %v1324_v24, 1 }
 0x15e   : > { %v1345_v27 = vsel %vm1297_vm1, %v1343_v25, %v1344_v26 }
 0x15f   : > { %2117 = vmatprep.mubr.f32.mxu1 %v1345_v27  ;;  %2152 = vmatprep.mubr.f32.mxu0 %v1345_v27 }
 0x160   : > { %2118 = vmatmul.mubr.f32.vlgmr.msra.gmra.mxu1 %v1344_v26  ;;  %2153 = vmatmul.mubr.f32.vlgmr.msra.gmra.mxu0 %v1344_v26 }
 0x161   : > { %2159 = vmatprep.mubr.msk.f32.mxu1 %vm2236_vm4, %v2235_v28 }
 0x220   : > { %v2119_v29 = vpop.f32.mrf.mxu1  ;;  %v2154_v30 = vpop.f32.mrf.mxu0 }
 0x221   : > { %v1515_v31 = vmax.f32 %v2119_v29, %v2154_v30 }
 0x222   : > { %v1414_v32 = vpop.f32.mrf.mxu1  ;;  %v1505_v33 = vpop.f32.mrf.mxu0 }
 0x223   : > { %v1514_v34 = vmax.f32 %v1414_v32, %v1505_v33  ;;  %2156 = vmatpush3.msk.msra.mxu1 %vm1297_vm1, %v1515_v31 }
 0x224   : > { %2157 = vmatprep.subr.mxu1 %v2235_v28 }
 0x225   : > { %2158 = vmatpush3.msra.mxu1 %v1514_v34 }
 0x226   : > { %2160 = vmatmul.mubr.msk.f32.vlgmr.msra.gmra.mxu1 %vm1517_vm5, %v1516_v35 }
 0x2e6   : > { %v1590_v36 = vpop.f32.mrf.mxu1 }
 0x2e7   : > { %1595 = vst.msk [vmem:[%s276_s26] sm:$0xf] %vm1594_vm6, %v1590_v36 }
 0x2e8   : > { %v2161_v37 = vpop.f32.mrf.mxu1 }
 0x2e9 PF: > { %s17_s24 = sadd.s32 1, %s2233_s24  }
 0x2ea   : > { %p14_p4 = scmp.ge.s32.totalorder %s17_s24, 4  }
 0x2ec   :  { %16 = sbr.rel (!%p14_p4) target bundleno = 1 (0x1), region = 86 }

// kernel: enhanced_cnn_forward.6
= control target key start
LH: loop header
LB: loop body
LE: loop exit
PB: predicated region body
PF: predicated region fallthrough
CT: control target
= control target key end

     0   :  { %s2104_s21 = smov 0   ;;  %s2524_s0 = inlined_call_operand.vmem [shape: f32[2,24,128], index: 0, kind: input, shape index: {}]   ;;  %s2525_s1 = inlined_call_operand.vmem [shape: bf16[9,128,128], index: 1, kind: input, shape index: {}]   ;;  %s2526_s2 = inlined_call_operand.vmem [shape: f32[1,128], index: 2, kind: input, shape index: {}]   ;;  %s2527_s3 = inlined_call_operand.vmem [shape: f32[1,128], index: 3, kind: input, shape index: {}]   ;;  %s2528_s4 = inlined_call_operand.vmem [shape: f32[1,8], index: 4, kind: input, shape index: {}]   ;;  %s2529_s5 = inlined_call_operand.vmem [shape: f32[128,64], index: 5, kind: input, shape index: {}]   ;;  %s2530_s6 = inlined_call_operand.vmem [shape: f32[2,1,64], index: 6, kind: output, shape index: {}]  }
   0x1 LB: > { %s1445_s22 = sadd.s32 4294967295, %s2065_s21   ;;  %p1449_p0 = scmp.ge.s32.totalorder %s2065_s21, 1  ;;  %s2065_s21 = sphi %s2104_s21, %s16_s21  }
   0x2   : > { %p212_p1 = scmp.lt.s32.totalorder %s2065_s21, 3 }
   0x4   : > { %p213_p2 = pnand %p1449_p0, %p212_p1 }
   0x5   : > { %p240_p3 = scmp.lt.s32.totalorder (!%p213_p2), %s1445_s22, 1 }
   0x6   : > { %216 = sbr.rel (%p213_p2) target bundleno = 762 (0x2fa), region = 44 }
   0xb   : > { %v1987_v0 = vld [vmem:[%s2525_s1 + $0x78] sm:$0xff]   ;;  %v2067_v1 = vmov 0.0   ;;  %v1989_v3 = vld [vmem:[%s2525_s1 + $0x70] sm:$0xff]   ;;  %vm2068_vm0 = vmmov 0   ;;  %v1991_v5 = vld [vmem:[%s2525_s1 + $0x68] sm:$0xff]   ;;  %s2532_s22 = smov (!%p240_p3, %s1445_s22), 1 }
   0xc   : > { %1756 = vmatprep.subr.bf16.mxu0 %v2067_v1  ;;  %1776 = vmatprep.subr.bf16.mxu1 %v2067_v1  ;;  %v1988_v2 = vld [vmem:[%s2525_s1 + $0x38] sm:$0xff]   ;;  %v1990_v4 = vld [vmem:[%s2525_s1 + $0x30] sm:$0xff]   ;;  %v1992_v6 = vld [vmem:[%s2525_s1 + $0x28] sm:$0xff]   ;;  %s1976_s25 = smul.u32 24, %s2532_s22  ;;  %vm1236_vm1 = vcmask 64512   ;;  %s247_s16 = scalar_lea.vmem %s2530_s6, %s2532_s22  ;;  %vm1396_vm2 = vcmask 516096  }
   0xd   : > { %1757 = vmatpush3.bf16.msra.mxu0 %v1987_v0  ;;  %1772 = vmatprep.mubr.msk.bf16.mxu0 %vm2068_vm0, %v2067_v1  ;;  %v1993_v7 = vld [vmem:[%s2525_s1 + $0x60] sm:$0xff]   ;;  %v1995_v9 = vld [vmem:[%s2525_s1 + $0x58] sm:$0xff]   ;;  %v1997_v11 = vld [vmem:[%s2525_s1 + $0x50] sm:$0xff]  }
   0xe   : > { %1777 = vmatpush3.bf16.msra.mxu1 %v1988_v2  ;;  %1758 = vmatprep.subr.bf16.mxu0 %v2067_v1  ;;  %v1994_v8 = vld [vmem:[%s2525_s1 + $0x20] sm:$0xff]   ;;  %v1996_v10 = vld [vmem:[%s2525_s1 + $0x18] sm:$0xff]   ;;  %v1998_v12 = vld [vmem:[%s2525_s1 + $0x10] sm:$0xff]   ;;  %s2181_s8 = scalar_lea.vmem %s2524_s0, %s1976_s25 }
   0xf   : > { %1778 = vmatprep.subr.bf16.mxu1 %v2067_v1  ;;  %1792 = vmatprep.mubr.msk.bf16.mxu1 %vm2068_vm0, %v2067_v1  ;;  %v1999_v13 = vld [vmem:[%s2525_s1 + $0x48] sm:$0xff]   ;;  %v2001_v15 = vld [vmem:[%s2525_s1 + $0x40] sm:$0xff]   ;;  %v2003_v21 = vld [vmem:[%s2525_s1 + $0xb8] sm:$0xff]  }
  0x10   : > { %v2000_v14 = vld [vmem:[%s2525_s1 + $0x8] sm:$0xff]   ;;  %v2002_v16 = vld [vmem:[%s2525_s1] sm:$0xff]   ;;  %v2004_v22 = vld [vmem:[%s2525_s1 + $0xf8] sm:$0xff]  }
  0x11   : > { %1759 = vmatpush3.bf16.msra.mxu0 %v1989_v3  ;;  %v267_v17 = vld [vmem:[%s2181_s8 + $0x4] sm:$0xff]  ;;  %v2005_v23 = vld [vmem:[%s2525_s1 + $0xb0] sm:$0xff]   ;;  %v2011_v29 = vld [vmem:[%s2525_s1 + $0x98] sm:$0xff]  }
  0x12   : > { %1779 = vmatpush3.bf16.msra.mxu1 %v1990_v4  ;;  %1760 = vmatprep.subr.bf16.mxu0 %v2067_v1  ;;  %v249_v18 = vld [vmem:[%s2181_s8 + $0x3] sm:$0xff]  ;;  %v268_v19 = vpack.c.bf16 %v267_v17, %v267_v17  ;;  %v2006_v24 = vld [vmem:[%s2525_s1 + $0xf0] sm:$0xff]   ;;  %v2012_v30 = vld [vmem:[%s2525_s1 + $0xd8] sm:$0xff]  }
  0x13   : > { %1780 = vmatprep.subr.bf16.mxu1 %v2067_v1  ;;  %v250_v20 = vpack.c.bf16 %v249_v18, %v249_v18  ;;  %v2007_v25 = vld [vmem:[%s2525_s1 + $0xa8] sm:$0xff]   ;;  %v2009_v27 = vld [vmem:[%s2525_s1 + $0xa0] sm:$0xff]   ;;  %v2013_v31 = vld [vmem:[%s2525_s1 + $0x90] sm:$0xff]  }
  0x14   : > { %v2008_v26 = vld [vmem:[%s2525_s1 + $0xe8] sm:$0xff]   ;;  %v2010_v28 = vld [vmem:[%s2525_s1 + $0xe0] sm:$0xff]   ;;  %v2014_v32 = vld [vmem:[%s2525_s1 + $0xd0] sm:$0xff]  }
  0x15   : > { %1761 = vmatpush3.bf16.msra.mxu0 %v1991_v5  ;;  %v2015_v33 = vld [vmem:[%s2525_s1 + $0x88] sm:$0xff]   ;;  %v2017_v35 = vld [vmem:[%s2525_s1 + $0x80] sm:$0xff]   ;;  %v2019_v40 = vld [vmem:[%s2525_s1 + $0x138] sm:$0xff]  }
  0x16   : > { %1781 = vmatpush3.bf16.msra.mxu1 %v1992_v6  ;;  %1762 = vmatprep.subr.bf16.mxu0 %v2067_v1  ;;  %v2016_v34 = vld [vmem:[%s2525_s1 + $0xc8] sm:$0xff]   ;;  %v2018_v36 = vld [vmem:[%s2525_s1 + $0xc0] sm:$0xff]   ;;  %v2020_v42 = vld [vmem:[%s2525_s1 + $0x178] sm:$0xff]  }
  0x17   : > { %1782 = vmatprep.subr.bf16.mxu1 %v2067_v1  ;;  %v462_v37 = vld [vmem:[%s2181_s8 + $0x5] sm:$0xff]  ;;  %v2021_v43 = vld [vmem:[%s2525_s1 + $0x130] sm:$0xff]   ;;  %v2027_v49 = vld [vmem:[%s2525_s1 + $0x118] sm:$0xff]  }
  0x18   : > { %v570_v38 = vld [vmem:[%s2181_s8 + $0x7] sm:$0xff]  ;;  %v463_v39 = vpack.c.bf16 %v462_v37, %v462_v37  ;;  %v2022_v44 = vld [vmem:[%s2525_s1 + $0x170] sm:$0xff]   ;;  %v2028_v50 = vld [vmem:[%s2525_s1 + $0x158] sm:$0xff]  }
  0x19   : > { %1763 = vmatpush3.bf16.msra.mxu0 %v1993_v7  ;;  %v571_v41 = vpack.c.bf16 %v570_v38, %v570_v38  ;;  %v2023_v45 = vld [vmem:[%s2525_s1 + $0x128] sm:$0xff]   ;;  %v2025_v47 = vld [vmem:[%s2525_s1 + $0x120] sm:$0xff]   ;;  %v2029_v51 = vld [vmem:[%s2525_s1 + $0x110] sm:$0xff]  }
  0x1a   : > { %1783 = vmatpush3.bf16.msra.mxu1 %v1994_v8  ;;  %1764 = vmatprep.subr.bf16.mxu0 %v2067_v1  ;;  %v2024_v46 = vld [vmem:[%s2525_s1 + $0x168] sm:$0xff]   ;;  %v2026_v48 = vld [vmem:[%s2525_s1 + $0x160] sm:$0xff]   ;;  %v2030_v52 = vld [vmem:[%s2525_s1 + $0x150] sm:$0xff]  }
  0x1b   : > { %1784 = vmatprep.subr.bf16.mxu1 %v2067_v1  ;;  %v2031_v53 = vld [vmem:[%s2525_s1 + $0x108] sm:$0xff]   ;;  %v2033_v55 = vld [vmem:[%s2525_s1 + $0x100] sm:$0xff]   ;;  %v2035_v60 = vld [vmem:[%s2525_s1 + $0x1b8] sm:$0xff]  }
  0x1c   : > { %v2032_v54 = vld [vmem:[%s2525_s1 + $0x148] sm:$0xff]   ;;  %v2034_v57 = vld [vmem:[%s2525_s1 + $0x140] sm:$0xff]   ;;  %v2036_v62 = vld [vmem:[%s2525_s1 + $0x1f8] sm:$0xff]  }
  0x1d   : > { %1765 = vmatpush3.bf16.msra.mxu0 %v1995_v9  ;;  %v678_v56 = vld [vmem:[%s2181_s8 + $0x8] sm:$0xff]  ;;  %v2037_v63 = vld [vmem:[%s2525_s1 + $0x1b0] sm:$0xff]   ;;  %v2041_v4 = vld [vmem:[%s2525_s1 + $0x1a0] sm:$0xff]  }
  0x1e   : > { %1785 = vmatpush3.bf16.msra.mxu1 %v1996_v10  ;;  %1766 = vmatprep.subr.bf16.mxu0 %v2067_v1  ;;  %v786_v58 = vld [vmem:[%s2181_s8 + $0x9] sm:$0xff]  ;;  %v679_v59 = vpack.c.bf16 %v678_v56, %v678_v56  ;;  %v2042_v5 = vld [vmem:[%s2525_s1 + $0x1e0] sm:$0xff]   ;;  %v2043_v6 = vld [vmem:[%s2525_s1 + $0x198] sm:$0xff]  }
  0x1f   : > { %1786 = vmatprep.subr.bf16.mxu1 %v2067_v1  ;;  %v787_v61 = vpack.c.bf16 %v786_v58, %v786_v58  ;;  %v2038_v0 = vld [vmem:[%s2525_s1 + $0x1f0] sm:$0xff]   ;;  %v2039_v2 = vld [vmem:[%s2525_s1 + $0x1a8] sm:$0xff]   ;;  %v2044_v7 = vld [vmem:[%s2525_s1 + $0x1d8] sm:$0xff]  }
  0x20   : > { %v2040_v3 = vld [vmem:[%s2525_s1 + $0x1e8] sm:$0xff]   ;;  %v2045_v8 = vld [vmem:[%s2525_s1 + $0x190] sm:$0xff]   ;;  %v2051_v17 = vld [vmem:[%s2525_s1 + $0x238] sm:$0xff]  }
  0x21   : > { %1767 = vmatpush3.bf16.msra.mxu0 %v1997_v11  ;;  %v2046_v9 = vld [vmem:[%s2525_s1 + $0x1d0] sm:$0xff]   ;;  %v2047_v10 = vld [vmem:[%s2525_s1 + $0x188] sm:$0xff]  }
  0x22   : > { %1787 = vmatpush3.bf16.msra.mxu1 %v1998_v12  ;;  %1768 = vmatprep.subr.bf16.mxu0 %v2067_v1  ;;  %v2048_v11 = vld [vmem:[%s2525_s1 + $0x1c8] sm:$0xff]   ;;  %v2049_v12 = vld [vmem:[%s2525_s1 + $0x180] sm:$0xff]  }
  0x23   : > { %1788 = vmatprep.subr.bf16.mxu1 %v2067_v1 }
  0x25   : > { %1769 = vmatpush3.bf16.msra.mxu0 %v1999_v13  ;;  %v894_v13 = vld [vmem:[%s2181_s8 + $0xb] sm:$0xff] }
  0x26   : > { %1789 = vmatpush3.bf16.msra.mxu1 %v2000_v14  ;;  %1770 = vmatprep.subr.bf16.mxu0 %v2067_v1  ;;  %v2050_v14 = vld [vmem:[%s2525_s1 + $0x1c0] sm:$0xff]  }
  0x27   : > { %1790 = vmatprep.subr.bf16.mxu1 %v2067_v1 }
  0x29   : > { %1771 = vmatpush3.bf16.msra.mxu0 %v2001_v15  ;;  %v1002_v15 = vld [vmem:[%s2181_s8 + $0xc] sm:$0xff] }
  0x2a   : > { %1791 = vmatpush3.bf16.msra.mxu1 %v2002_v16  ;;  %1796 = vmatprep.subr.bf16.mxu0 %v2067_v1  ;;  %v895_v16 = vpack.c.bf16 %v894_v13, %v894_v13  ;;  %v1003_v18 = vpack.c.bf16 %v1002_v15, %v1002_v15  ;;  %v1325_v15 = vld [vmem:[%s2529_s5 + $0x78] sm:$0xff] }
  0x2b   : > { %1816 = vmatprep.subr.bf16.mxu1 %v2067_v1 }
  0x2c   : > { %1773 = vmatmul.mubr.bf16.vlgmr.msra.gmra.mxu0 %v268_v19  ;;  %v2052_v19 = vld [vmem:[%s2525_s1 + $0x230] sm:$0xff]  }
  0x2d   : > { %1793 = vmatmul.mubr.bf16.vlgmr.msra.gmra.mxu1 %v250_v20  ;;  %1797 = vmatpush3.bf16.msra.mxu0 %v2003_v21  ;;  %v2053_v20 = vld [vmem:[%s2525_s1 + $0x228] sm:$0xff]   ;;  %v2054_v21 = vld [vmem:[%s2525_s1 + $0x220] sm:$0xff]  }
  0x2e   : > { %1817 = vmatpush3.bf16.msra.mxu1 %v2004_v22  ;;  %1798 = vmatprep.subr.bf16.mxu0 %v2067_v1  ;;  %v2055_v22 = vld [vmem:[%s2525_s1 + $0x218] sm:$0xff]  }
  0x2f   : > { %1818 = vmatprep.subr.bf16.mxu1 %v2067_v1  ;;  %1812 = vmatprep.mubr.msk.bf16.mxu0 %vm2068_vm0, %v2067_v1 }
  0x30   : > { %1832 = vmatprep.mubr.msk.bf16.mxu1 %vm2068_vm0, %v2067_v1 }
  0x31   : > { %1799 = vmatpush3.bf16.msra.mxu0 %v2005_v23  ;;  %v2056_v23 = vld [vmem:[%s2525_s1 + $0x210] sm:$0xff]  }
  0x32   : > { %1819 = vmatpush3.bf16.msra.mxu1 %v2006_v24  ;;  %1800 = vmatprep.subr.bf16.mxu0 %v2067_v1  ;;  %v2057_v24 = vld [vmem:[%s2525_s1 + $0x208] sm:$0xff]  }
  0x33   : > { %1820 = vmatprep.subr.bf16.mxu1 %v2067_v1 }
  0x35   : > { %1801 = vmatpush3.bf16.msra.mxu0 %v2007_v25  ;;  %v2058_v25 = vld [vmem:[%s2525_s1 + $0x200] sm:$0xff]  }
  0x36   : > { %1821 = vmatpush3.bf16.msra.mxu1 %v2008_v26  ;;  %1802 = vmatprep.subr.bf16.mxu0 %v2067_v1  ;;  %v1110_v26 = vld [vmem:[%s2181_s8 + $0xd] sm:$0xff] }
  0x37   : > { %1822 = vmatprep.subr.bf16.mxu1 %v2067_v1 }
  0x39   : > { %1803 = vmatpush3.bf16.msra.mxu0 %v2009_v27  ;;  %v1111_v27 = vpack.c.bf16 %v1110_v26, %v1110_v26  ;;  %v1314_v26 = vld [vmem:[%s2529_s5 + $0x20] sm:$0xff] }
  0x3a   : > { %1823 = vmatpush3.bf16.msra.mxu1 %v2010_v28  ;;  %1804 = vmatprep.subr.bf16.mxu0 %v2067_v1 }
  0x3b   : > { %1824 = vmatprep.subr.bf16.mxu1 %v2067_v1 }
  0x3d   : > { %1805 = vmatpush3.bf16.msra.mxu0 %v2011_v29 }
  0x3e   : > { %1825 = vmatpush3.bf16.msra.mxu1 %v2012_v30  ;;  %1806 = vmatprep.subr.bf16.mxu0 %v2067_v1 }
  0x3f   : > { %1826 = vmatprep.subr.bf16.mxu1 %v2067_v1 }
  0x41   : > { %1807 = vmatpush3.bf16.msra.mxu0 %v2013_v31 }
  0x42   : > { %1827 = vmatpush3.bf16.msra.mxu1 %v2014_v32  ;;  %1808 = vmatprep.subr.bf16.mxu0 %v2067_v1 }
  0x43   : > { %1828 = vmatprep.subr.bf16.mxu1 %v2067_v1 }
  0x45   : > { %1809 = vmatpush3.bf16.msra.mxu0 %v2015_v33 }
  0x46   : > { %1829 = vmatpush3.bf16.msra.mxu1 %v2016_v34  ;;  %1810 = vmatprep.subr.bf16.mxu0 %v2067_v1 }
  0x47   : > { %1830 = vmatprep.subr.bf16.mxu1 %v2067_v1 }
  0x49   : > { %1811 = vmatpush3.bf16.msra.mxu0 %v2017_v35 }
  0x4a   : > { %1831 = vmatpush3.bf16.msra.mxu1 %v2018_v36  ;;  %1836 = vmatprep.subr.bf16.mxu0 %v2067_v1 }
  0x4b   : > { %1856 = vmatprep.subr.bf16.mxu1 %v2067_v1 }
  0x4c   : > { %1813 = vmatmul.mubr.bf16.vlgmr.msra.gmra.mxu0 %v463_v39 }
  0x4d   : > { %1837 = vmatpush3.bf16.msra.mxu0 %v2019_v40  ;;  %1833 = vmatmul.mubr.bf16.vlgmr.msra.gmra.mxu1 %v571_v41 }
  0x4e   : > { %1857 = vmatpush3.bf16.msra.mxu1 %v2020_v42  ;;  %1838 = vmatprep.subr.bf16.mxu0 %v2067_v1 }
  0x4f   : > { %1858 = vmatprep.subr.bf16.mxu1 %v2067_v1  ;;  %1852 = vmatprep.mubr.msk.bf16.mxu0 %vm2068_vm0, %v2067_v1 }
  0x50   : > { %1872 = vmatprep.mubr.msk.bf16.mxu1 %vm2068_vm0, %v2067_v1 }
  0x51   : > { %1839 = vmatpush3.bf16.msra.mxu0 %v2021_v43 }
  0x52   : > { %1859 = vmatpush3.bf16.msra.mxu1 %v2022_v44  ;;  %1840 = vmatprep.subr.bf16.mxu0 %v2067_v1 }
  0x53   : > { %1860 = vmatprep.subr.bf16.mxu1 %v2067_v1 }
  0x55   : > { %1841 = vmatpush3.bf16.msra.mxu0 %v2023_v45 }
  0x56   : > { %1861 = vmatpush3.bf16.msra.mxu1 %v2024_v46  ;;  %1842 = vmatprep.subr.bf16.mxu0 %v2067_v1 }
  0x57   : > { %1862 = vmatprep.subr.bf16.mxu1 %v2067_v1 }
  0x59   : > { %1843 = vmatpush3.bf16.msra.mxu0 %v2025_v47 }
  0x5a   : > { %1863 = vmatpush3.bf16.msra.mxu1 %v2026_v48  ;;  %1844 = vmatprep.subr.bf16.mxu0 %v2067_v1 }
  0x5b   : > { %1864 = vmatprep.subr.bf16.mxu1 %v2067_v1 }
  0x5d   : > { %1845 = vmatpush3.bf16.msra.mxu0 %v2027_v49 }
  0x5e   : > { %1865 = vmatpush3.bf16.msra.mxu1 %v2028_v50  ;;  %1846 = vmatprep.subr.bf16.mxu0 %v2067_v1 }
  0x5f   : > { %1866 = vmatprep.subr.bf16.mxu1 %v2067_v1 }
  0x61   : > { %1847 = vmatpush3.bf16.msra.mxu0 %v2029_v51 }
  0x62   : > { %1867 = vmatpush3.bf16.msra.mxu1 %v2030_v52  ;;  %1848 = vmatprep.subr.bf16.mxu0 %v2067_v1 }
  0x63   : > { %1868 = vmatprep.subr.bf16.mxu1 %v2067_v1 }
  0x65   : > { %1849 = vmatpush3.bf16.msra.mxu0 %v2031_v53 }
  0x66   : > { %1869 = vmatpush3.bf16.msra.mxu1 %v2032_v54  ;;  %1850 = vmatprep.subr.bf16.mxu0 %v2067_v1 }
  0x67   : > { %1870 = vmatprep.subr.bf16.mxu1 %v2067_v1 }
  0x69   : > { %1851 = vmatpush3.bf16.msra.mxu0 %v2033_v55 }
  0x6a   : > { %1871 = vmatpush3.bf16.msra.mxu1 %v2034_v57  ;;  %1876 = vmatprep.subr.bf16.mxu0 %v2067_v1 }
  0x6b   : > { %1896 = vmatprep.subr.bf16.mxu1 %v2067_v1 }
  0x6c   : > { %1853 = vmatmul.mubr.bf16.vlgmr.msra.gmra.mxu0 %v679_v59 }
  0x6d   : > { %1877 = vmatpush3.bf16.msra.mxu0 %v2035_v60  ;;  %1873 = vmatmul.mubr.bf16.vlgmr.msra.gmra.mxu1 %v787_v61 }
  0x6e   : > { %1897 = vmatpush3.bf16.msra.mxu1 %v2036_v62  ;;  %1878 = vmatprep.subr.bf16.mxu0 %v2067_v1 }
  0x6f   : > { %1898 = vmatprep.subr.bf16.mxu1 %v2067_v1  ;;  %1892 = vmatprep.mubr.msk.bf16.mxu0 %vm2068_vm0, %v2067_v1 }
  0x70   : > { %1912 = vmatprep.mubr.msk.bf16.mxu1 %vm2068_vm0, %v2067_v1 }
  0x71   : > { %1879 = vmatpush3.bf16.msra.mxu0 %v2037_v63 }
  0x72   : > { %1899 = vmatpush3.bf16.msra.mxu1 %v2038_v0  ;;  %1880 = vmatprep.subr.bf16.mxu0 %v2067_v1 }
  0x73   : > { %1900 = vmatprep.subr.bf16.mxu1 %v2067_v1 }
  0x75   : > { %1881 = vmatpush3.bf16.msra.mxu0 %v2039_v2 }
  0x76   : > { %1901 = vmatpush3.bf16.msra.mxu1 %v2040_v3  ;;  %1882 = vmatprep.subr.bf16.mxu0 %v2067_v1 }
  0x77   : > { %1902 = vmatprep.subr.bf16.mxu1 %v2067_v1 }
  0x79   : > { %1883 = vmatpush3.bf16.msra.mxu0 %v2041_v4 }
  0x7a   : > { %1903 = vmatpush3.bf16.msra.mxu1 %v2042_v5  ;;  %1884 = vmatprep.subr.bf16.mxu0 %v2067_v1  ;;  %v1651_v5 = vld [vmem:[%s2526_s2] ss:$0 sm:$0xff] }
  0x7b   : > { %1904 = vmatprep.subr.bf16.mxu1 %v2067_v1 }
  0x7d   : > { %1885 = vmatpush3.bf16.msra.mxu0 %v2043_v6 }
  0x7e   : > { %1905 = vmatpush3.bf16.msra.mxu1 %v2044_v7  ;;  %1886 = vmatprep.subr.bf16.mxu0 %v2067_v1  ;;  %v1652_v7 = vld [vmem:[%s2527_s3] ss:$0 sm:$0xff] }
  0x7f   : > { %1906 = vmatprep.subr.bf16.mxu1 %v2067_v1 }
  0x81   : > { %1887 = vmatpush3.bf16.msra.mxu0 %v2045_v8 }
  0x82   : > { %1907 = vmatpush3.bf16.msra.mxu1 %v2046_v9  ;;  %1888 = vmatprep.subr.bf16.mxu0 %v2067_v1 }
  0x83   : > { %1908 = vmatprep.subr.bf16.mxu1 %v2067_v1 }
  0x85   : > { %1889 = vmatpush3.bf16.msra.mxu0 %v2047_v10 }
  0x86   : > { %1909 = vmatpush3.bf16.msra.mxu1 %v2048_v11  ;;  %1890 = vmatprep.subr.bf16.mxu0 %v2067_v1 }
  0x87   : > { %1910 = vmatprep.subr.bf16.mxu1 %v2067_v1 }
  0x89   : > { %1891 = vmatpush3.bf16.msra.mxu0 %v2049_v12 }
  0x8a   : > { %1911 = vmatpush3.bf16.msra.mxu1 %v2050_v14  ;;  %1916 = vmatprep.subr.bf16.mxu0 %v2067_v1  ;;  %v1235_v14 = vld [vmem:[%s2528_s4] sm:$0x1] }
  0x8b   : > { %1936 = vmatprep.subr.mxu1 %v2067_v1 }
  0x8c   : > { %1893 = vmatmul.mubr.bf16.vlgmr.msra.gmra.mxu0 %v895_v16  ;;  %v1324_v16 = vld [vmem:[%s2529_s5 + $0x70] sm:$0xff] }
  0x8d   : > { %1917 = vmatpush3.bf16.msra.mxu0 %v2051_v17  ;;  %1913 = vmatmul.mubr.bf16.vlgmr.msra.gmra.mxu1 %v1003_v18  ;;  %v1323_v17 = vld [vmem:[%s2529_s5 + $0x68] sm:$0xff]  ;;  %v1322_v18 = vld [vmem:[%s2529_s5 + $0x60] sm:$0xff] }
  0x8e   : > { %1918 = vmatprep.subr.bf16.mxu0 %v2067_v1  ;;  %1932 = vmatprep.mubr.msk.bf16.mxu0 %vm2068_vm0, %v2067_v1 }
  0x8f   : > { %1938 = vmatprep.mubr.msk.f32.mxu1 %vm2068_vm0, %v2067_v1 }
  0x91   : > { %1919 = vmatpush3.bf16.msra.mxu0 %v2052_v19  ;;  %v1321_v19 = vld [vmem:[%s2529_s5 + $0x58] sm:$0xff] }
  0x92   : > { %1920 = vmatprep.subr.bf16.mxu0 %v2067_v1 }
  0x95   : > { %1921 = vmatpush3.bf16.msra.mxu0 %v2053_v20  ;;  %v1320_v20 = vld [vmem:[%s2529_s5 + $0x50] sm:$0xff] }
  0x96   : > { %1922 = vmatprep.subr.bf16.mxu0 %v2067_v1 }
  0x99   : > { %1923 = vmatpush3.bf16.msra.mxu0 %v2054_v21  ;;  %v1319_v21 = vld [vmem:[%s2529_s5 + $0x48] sm:$0xff] }
  0x9a   : > { %1924 = vmatprep.subr.bf16.mxu0 %v2067_v1 }
  0x9d   : > { %1925 = vmatpush3.bf16.msra.mxu0 %v2055_v22  ;;  %v1318_v22 = vld [vmem:[%s2529_s5 + $0x40] sm:$0xff] }
  0x9e   : > { %1926 = vmatprep.subr.bf16.mxu0 %v2067_v1 }
  0xa1   : > { %1927 = vmatpush3.bf16.msra.mxu0 %v2056_v23  ;;  %v1317_v23 = vld [vmem:[%s2529_s5 + $0x38] sm:$0xff] }
  0xa2   : > { %1928 = vmatprep.subr.bf16.mxu0 %v2067_v1 }
  0xa5   : > { %1929 = vmatpush3.bf16.msra.mxu0 %v2057_v24  ;;  %v1316_v24 = vld [vmem:[%s2529_s5 + $0x30] sm:$0xff] }
  0xa6   : > { %1930 = vmatprep.subr.bf16.mxu0 %v2067_v1 }
  0xa9   : > { %1931 = vmatpush3.bf16.msra.mxu0 %v2058_v25  ;;  %v1315_v25 = vld [vmem:[%s2529_s5 + $0x28] sm:$0xff] }
  0xac   : > { %1933 = vmatmul.mubr.bf16.vlgmr.msra.gmra.mxu0 %v1111_v27  ;;  %v1313_v27 = vld [vmem:[%s2529_s5 + $0x18] sm:$0xff] }
  0xec   : > { %v368_v28 = vpop.f32.mrf.mxu0 }
  0xed   : > { %v456_v29 = vpop.f32.mrf.mxu1 }
  0xee   : > { %v457_v30 = vadd.f32 %v456_v29, %v368_v28  ;;  %v1774_v31 = vpop.f32.mrf.mxu0  ;;  %v1312_v28 = vld [vmem:[%s2529_s5 + $0x10] sm:$0xff]  ;;  %v1311_v29 = vld [vmem:[%s2529_s5 + $0x8] sm:$0xff] }
  0xef   : > { %v1794_v32 = vpop.f32.mrf.mxu1 }
  0xf0   : > { %v371_v33 = vpop.f32.mrf.mxu0 }
  0xf1   : > { %v459_v34 = vpop.f32.mrf.mxu1 }
  0xf2   : > { %v1775_v35 = vpop.f32.mrf.mxu0 }
  0xf3   : > { %v1795_v36 = vpop.f32.mrf.mxu1 }
 0x10c   : > { %v563_v37 = vpop.f32.mrf.mxu0 }
 0x10d   : > { %v569_v38 = vadd.f32 %v563_v37, %v457_v30  ;;  %v671_v39 = vpop.f32.mrf.mxu1  ;;  %v1310_v30 = vld [vmem:[%s2529_s5] sm:$0xff] }
 0x10e   : > { %v1814_v40 = vpop.f32.mrf.mxu0 }
 0x10f   : > { %v677_v41 = vadd.f32 %v671_v39, %v569_v38  ;;  %v1834_v42 = vpop.f32.mrf.mxu1 }
 0x110   : > { %v566_v43 = vpop.f32.mrf.mxu0 }
 0x111   : > { %v674_v44 = vpop.f32.mrf.mxu1 }
 0x112   : > { %v1815_v45 = vpop.f32.mrf.mxu0 }
 0x113   : > { %v1835_v46 = vpop.f32.mrf.mxu1 }
 0x12c   : > { %v779_v47 = vpop.f32.mrf.mxu0 }
 0x12d   : > { %v887_v48 = vpop.f32.mrf.mxu1  ;;  %v785_v63 = vadd.f32 %v779_v47, %v677_v41 }
 0x12e   : > { %v1854_v49 = vpop.f32.mrf.mxu0 }
 0x12f   : > { %v1874_v50 = vpop.f32.mrf.mxu1  ;;  %v893_v0 = vadd.f32 %v887_v48, %v785_v63 }
 0x130   : > { %v782_v51 = vpop.f32.mrf.mxu0 }
 0x131   : > { %v890_v52 = vpop.f32.mrf.mxu1 }
 0x132   : > { %v1855_v53 = vpop.f32.mrf.mxu0 }
 0x133   : > { %v1875_v54 = vpop.f32.mrf.mxu1 }
 0x14c   : > { %v995_v55 = vpop.f32.mrf.mxu0 }
 0x14d   : > { %v1103_v56 = vpop.f32.mrf.mxu1  ;;  %v1001_v2 = vadd.f32 %v995_v55, %v893_v0 }
 0x14e   : > { %v1894_v57 = vpop.f32.mrf.mxu0 }
 0x14f   : > { %v1914_v58 = vpop.f32.mrf.mxu1  ;;  %v1109_v3 = vadd.f32 %v1103_v56, %v1001_v2 }
 0x150   : > { %v998_v59 = vpop.f32.mrf.mxu0 }
 0x151   : > { %v1106_v60 = vpop.f32.mrf.mxu1 }
 0x152   : > { %v1895_v61 = vpop.f32.mrf.mxu0 }
 0x153   : > { %v1915_v62 = vpop.f32.mrf.mxu1 }
 0x16c   : > { %v1211_v4 = vpop.f32.mrf.mxu0 }
 0x16d   : > { %v1217_v6 = vadd.f32 %v1211_v4, %v1109_v3 }
 0x16e   : > { %v1934_v8 = vpop.f32.mrf.mxu0 }
 0x16f   : > { %v1225_v9 = vmul.f32 %v1651_v5, %v1217_v6 }
 0x170   : > { %v1214_v10 = vpop.f32.mrf.mxu0 }
 0x171   : > { %v1233_v11 = vadd.f32 %v1652_v7, %v1225_v9 }
 0x172   : > { %v1935_v12 = vpop.f32.mrf.mxu0 }
 0x173   : > { %v1234_v13 = vmax.f32 %v1233_v11, 0.0 }
 0x175   : > { %1937 = vmatpush3.msra.mxu1 %v1234_v13 }
 0x176   : > { %1939 = vmatmul.mubr.msk.f32.vlgmr.msra.gmra.mxu1 %vm1236_vm1, %v1235_v14  ;;  %1941 = vmatprep.subr.mxu1 %v2067_v1 }
 0x177   : > { %1942 = vmatpush3.msra.mxu1 %v1325_v15  ;;  %1973 = vmatprep.mubr.msk.f32.mxu1 %vm2068_vm0, %v2067_v1 }
 0x178   : > { %1943 = vmatprep.subr.mxu1 %v2067_v1 }
 0x179   : > { %1944 = vmatpush3.msra.mxu1 %v1324_v16 }
 0x17a   : > { %1945 = vmatprep.subr.mxu1 %v2067_v1 }
 0x17b   : > { %1946 = vmatpush3.msra.mxu1 %v1323_v17 }
 0x17c   : > { %1947 = vmatprep.subr.mxu1 %v2067_v1 }
 0x17d   : > { %1948 = vmatpush3.msra.mxu1 %v1322_v18 }
 0x17e   : > { %1949 = vmatprep.subr.mxu1 %v2067_v1 }
 0x17f   : > { %1950 = vmatpush3.msra.mxu1 %v1321_v19 }
 0x180   : > { %1951 = vmatprep.subr.mxu1 %v2067_v1 }
 0x181   : > { %1952 = vmatpush3.msra.mxu1 %v1320_v20 }
 0x182   : > { %1953 = vmatprep.subr.mxu1 %v2067_v1 }
 0x183   : > { %1954 = vmatpush3.msra.mxu1 %v1319_v21 }
 0x184   : > { %1955 = vmatprep.subr.mxu1 %v2067_v1 }
 0x185   : > { %1956 = vmatpush3.msra.mxu1 %v1318_v22 }
 0x186   : > { %1957 = vmatprep.subr.mxu1 %v2067_v1 }
 0x187   : > { %1958 = vmatpush3.msra.mxu1 %v1317_v23 }
 0x188   : > { %1959 = vmatprep.subr.mxu1 %v2067_v1 }
 0x189   : > { %1960 = vmatpush3.msra.mxu1 %v1316_v24 }
 0x18a   : > { %1961 = vmatprep.subr.mxu1 %v2067_v1 }
 0x18b   : > { %1962 = vmatpush3.msra.mxu1 %v1315_v25 }
 0x18c   : > { %1963 = vmatprep.subr.mxu1 %v2067_v1 }
 0x18d   : > { %1964 = vmatpush3.msra.mxu1 %v1314_v26 }
 0x18e   : > { %1965 = vmatprep.subr.mxu1 %v2067_v1 }
 0x18f   : > { %1966 = vmatpush3.msra.mxu1 %v1313_v27 }
 0x190   : > { %1967 = vmatprep.subr.mxu1 %v2067_v1 }
 0x191   : > { %1968 = vmatpush3.msra.mxu1 %v1312_v28 }
 0x192   : > { %1969 = vmatprep.subr.mxu1 %v2067_v1 }
 0x193   : > { %1970 = vmatpush3.msra.mxu1 %v1311_v29 }
 0x194   : > { %1971 = vmatprep.subr.mxu1 %v2067_v1 }
 0x195   : > { %1972 = vmatpush3.msra.mxu1 %v1310_v30 }
 0x236   : > { %v1306_v31 = vpop.f32.mrf.mxu1 }
 0x237   : > { %1974 = vmatmul.mubr.f32.vlgmr.msra.gmra.mxu1 %v1306_v31 }
 0x238   : > { %v1940_v32 = vpop.f32.mrf.mxu1 }
 0x2f7   : > { %v1392_v33 = vpop.f32.mrf.mxu1 }
 0x2f8   : > { %1397 = vst.msk [vmem:[%s247_s16] sm:$0x1] %vm1396_vm2, %v1392_v33 }
 0x2f9   : > { %v1975_v34 = vpop.f32.mrf.mxu1 }
 0x2fa PF: > { %s16_s21 = sadd.s32 1, %s2065_s21  }
 0x2fb   : > { %p13_p4 = scmp.ge.s32.totalorder %s16_s21, 4  }
 0x2fd   :  { %15 = sbr.rel (!%p13_p4) target bundleno = 1 (0x1), region = 82 }

</bundles_post_ra>
